<compile_context>
chip_gen: v6e
topology: v6e:2x2x1
jax: 0.10.0
libtpu: 0.0.40
codegen_flags: <defaults>
</compile_context>

<pallas_src>
import functools

import jax
import jax.numpy as jnp
from jax.experimental import pallas as pl
from jax.experimental.pallas import tpu as pltpu

EPS = 1e-5


# ----------------------------- pass 1: conv (+fused conv1) + per-sample BN partials -----------------------------
def _conv_stats_kernel(x_ref, wb_ref, y_ref, stats_ref, *, D, H, W, cout, c2):
    """Per-sample kernel.

    x_ref    : ((D+2)*(H+2), (W+2)*Cin) bf16 padded slab (rows = (d_in, h_in)).
    wb_ref   : (9, (W+2)*Cin, C2*W)     bf16 W-banded weights, taps = (kd, kh).
    y_ref    : (D, H, C2*W)             f32 raw conv output (conv0 cols first).
    stats_ref: (2, Cout*W)              f32 [sum ; centered SSD] over (D, H) per column.
    """
    hp = H + 2
    cw = cout * W

    for dd in range(D):                                   # output depth
        acc = jnp.zeros((H, c2 * W), jnp.float32)
        for kd in range(3):
            for kh in range(3):
                r0 = (dd + kd) * hp + kh                  # contiguous (H, L) window
                acc = acc + jnp.dot(x_ref[r0:r0 + H, :], wb_ref[3 * kd + kh],
                                    preferred_element_type=jnp.float32)
        y_ref[dd, :, :] = acc

    # Per-sample BN partials over the conv0 columns, centered at the per-sample
    # column mean (numerically robust; host combines samples with Chan's formula).
    yall = y_ref[...]
    y0 = yall[:, :, :cw]
    s = jnp.sum(jnp.sum(y0, axis=0), axis=0, keepdims=True)          # (1, Cout*W)
    mu = s * (1.0 / (D * H))
    d2 = (y0 - mu) * (y0 - mu)
    ssd = jnp.sum(jnp.sum(d2, axis=0), axis=0, keepdims=True)        # (1, Cout*W)
    stats_ref[...] = jnp.concatenate([s, ssd], axis=0)


# ----------------------------- pass 2: BN scale/shift + residual + pool + relu (pure VPU) -----------------------------
def _finalize_kernel(y_ref, scale_ref, shift_ref, o_ref, *, H, W, cout, identity):
    """y_ref: (D, H, C2*W) f32; scale/shift: (1, C2*W) f32; o_ref: (D/2, H/2, Cout*W) f32."""
    cw = cout * W
    dq = o_ref.shape[0]
    scale = scale_ref[...]
    shift = shift_ref[...]
    for j in range(dq):
        ya = y_ref[2 * j] * scale + shift                 # fused BN (+ b1 on conv1 cols)
        yb = y_ref[2 * j + 1] * scale + shift
        if identity:
            ya = ya[:, :cw] + ya[:, cw:]                  # residual add (conv1 columns)
            yb = yb[:, :cw] + yb[:, cw:]
        # MaxPool3d(2, 2): three pairwise maxes.
        m = jnp.maximum(ya, yb)                           # depth pairs  -> (H, Cout*W)
        m = m.reshape(H // 2, 2, cw)
        m = jnp.maximum(m[:, 0, :], m[:, 1, :])           # height pairs -> (H/2, Cout*W)
        # width pairs: neighbor at lane+1 (wrap + odd-lane junk discarded by wrapper).
        nbr = jnp.concatenate([m[:, 1:], m[:, :1]], axis=1)
        m = jnp.maximum(m, nbr)
        o_ref[j, :, :] = jnp.maximum(m, 0.0)              # ReLU


# ----------------------------- JAX wrapper -----------------------------
def sub_block_forward(x_ncdhw, w0, b0, w1, b1, gamma=None, beta=None,
                      identity=True, eps=EPS):
    """x_ncdhw: (N, Cin, D, H, W) f32. Returns (N, Cout, D/2, H/2, W/2) f32.

    Note: with train-mode BatchNorm the conv0 bias b0 cancels exactly; it is
    accepted for API parity but does not affect the output.
    """
    n, cin, d, h, w = x_ncdhw.shape
    cout = w0.shape[0]
    assert d % 2 == 0 and h % 2 == 0 and w % 2 == 0
    if gamma is None:
        gamma = jnp.ones((cout,), jnp.float32)
    if beta is None:
        beta = jnp.zeros((cout,), jnp.float32)

    dq, hq = d // 2, h // 2
    c2 = 2 * cout if identity else cout
    L = (w + 2) * cin                # lane width of the padded slab
    cw = cout * w                    # conv0 columns (chan-major, w-minor)
    c2w = c2 * w                     # all fused columns
    hp = h + 2

    # --- activations: NDHWC, pad=1, 2-D slab ((D+2)*(H+2), (W+2)*Cin), bf16
    xt = jnp.transpose(x_ncdhw, (0, 2, 3, 4, 1)).astype(jnp.float32)
    xp = jnp.pad(xt, ((0, 0), (1, 1), (1, 1), (1, 1), (0, 0)))
    x2d = xp.reshape(n, (d + 2) * hp, L).astype(jnp.bfloat16)

    # --- fused + W-banded weights: wb[3*kd+kh][(w_in,ci), (co,w_out)]
    w0t = jnp.transpose(w0, (2, 3, 4, 1, 0)).astype(jnp.float32)      # (3,3,3,Cin,C)
    if identity:
        w1c = jnp.zeros((3, 3, 3, cin, cout), jnp.float32).at[1, 1, 1].set(
            w1.reshape(cout, cin).T.astype(jnp.float32))              # center tap only
        wcat = jnp.concatenate([w0t, w1c], axis=-1)                   # (3,3,3,Cin,2C)
    else:
        wcat = w0t
    kwi = jnp.arange(w + 2)[:, None] - jnp.arange(w)[None, :]         # (W+2, W)
    valid = ((kwi >= 0) & (kwi < 3)).astype(jnp.float32)
    g = wcat[:, :, jnp.clip(kwi, 0, 2)]                               # (3,3,W+2,W,Cin,C2)
    g = g * valid[None, None, :, :, None, None]
    g = jnp.transpose(g, (0, 1, 2, 4, 5, 3))                          # (3,3,W+2,Cin,C2,W)
    wb = g.reshape(9, L, c2w).astype(jnp.bfloat16)

    cparams = pltpu.CompilerParams(dimension_semantics=("parallel",))

    # ---------------- pass 1: conv + per-sample BN partials ----------------
    y_conv, stats = pl.pallas_call(
        functools.partial(_conv_stats_kernel, D=d, H=h, W=w, cout=cout, c2=c2),
        out_shape=(jax.ShapeDtypeStruct((n, d, h, c2w), jnp.float32),
                   jax.ShapeDtypeStruct((n, 2, cw), jnp.float32)),
        grid=(n,),
        in_specs=[
            pl.BlockSpec((None, (d + 2) * hp, L), lambda i: (i, 0, 0)),
            pl.BlockSpec((9, L, c2w), lambda i: (0, 0, 0)),
        ],
        out_specs=(
            pl.BlockSpec((None, d, h, c2w), lambda i: (i, 0, 0, 0)),
            pl.BlockSpec((None, 2, cw), lambda i: (i, 0, 0)),
        ),
        compiler_params=cparams,
    )(x2d, wb)

    # ---------------- host: combine per-sample centered partials (Chan) ----------------
    cnt_tile = float(d * h)                 # elements per (sample, column)
    cnt_tot = float(n * d * h * w)          # elements per channel
    sums = stats[:, 0, :].reshape(n, cout, w)
    ssds = stats[:, 1, :].reshape(n, cout, w)
    mean_c = sums.sum(axis=(0, 2)) / cnt_tot                              # (Cout,)
    mean_col = sums / cnt_tile                                            # (N, Cout, W)
    delta = mean_col - mean_c[None, :, None]
    ssd_c = ssds.sum(axis=(0, 2)) + cnt_tile * jnp.sum(delta * delta, axis=(0, 2))
    var_c = ssd_c / cnt_tot                                               # biased (BN train)
    invstd = jax.lax.rsqrt(var_c + eps)

    g32 = gamma.astype(jnp.float32)
    scale0 = g32 * invstd
    shift0 = beta.astype(jnp.float32) - mean_c * scale0
    if identity:
        scale_vec = jnp.concatenate([scale0, jnp.ones((cout,), jnp.float32)])
        shift_vec = jnp.concatenate([shift0, b1.astype(jnp.float32)])
    else:
        scale_vec, shift_vec = scale0, shift0
    scale_t = jnp.repeat(scale_vec, w)[None, :].astype(jnp.float32)       # (1, C2*W)
    shift_t = jnp.repeat(shift_vec, w)[None, :].astype(jnp.float32)

    # ---------------- pass 2: normalize + residual + pool + relu ----------------
    out = pl.pallas_call(
        functools.partial(_finalize_kernel, H=h, W=w, cout=cout, identity=identity),
        out_shape=jax.ShapeDtypeStruct((n, dq, hq, cw), jnp.float32),
        grid=(n,),
        in_specs=[
            pl.BlockSpec((None, d, h, c2w), lambda i: (i, 0, 0, 0)),
            pl.BlockSpec((1, c2w), lambda i: (0, 0)),
            pl.BlockSpec((1, c2w), lambda i: (0, 0)),
        ],
        out_specs=pl.BlockSpec((None, dq, hq, cw), lambda i: (i, 0, 0, 0)),
        compiler_params=cparams,
    )(y_conv, scale_t, shift_t)

    # Valid pooled values sit at even-w lanes of each channel block (odd lanes are
    # the cross-channel-contaminated wrap values and are discarded here).
    out = out.reshape(n, dq, hq, cout, w)[..., 0::2]                      # (N,Dq,Hq,C,Wq)
    return jnp.transpose(out, (0, 3, 1, 2, 4))                            # NCDHW


# ----------------------------- pure-JAX reference -----------------------------
def sub_block_reference(x_ncdhw, w0, b0, w1, b1, gamma, beta, identity=True, eps=EPS):
    # Matches the kernel's numerics: bf16 conv inputs, f32 accumulation, f32 BN.
    xb = jnp.transpose(x_ncdhw, (0, 2, 3, 4, 1)).astype(jnp.bfloat16)
    k0 = jnp.transpose(w0, (2, 3, 4, 1, 0)).astype(jnp.bfloat16)
    dn = ("NDHWC", "DHWIO", "NDHWC")
    y = jax.lax.conv_general_dilated(
        xb, k0, (1, 1, 1), ((1, 1), (1, 1), (1, 1)), dimension_numbers=dn,
        preferred_element_type=jnp.float32) + b0
    m = jnp.mean(y, axis=(0, 1, 2, 3), keepdims=True)
    v = jnp.mean((y - m) ** 2, axis=(0, 1, 2, 3), keepdims=True)
    y = (y - m) * jax.lax.rsqrt(v + eps) * gamma + beta
    if identity:
        k1 = jnp.transpose(w1, (2, 3, 4, 1, 0)).astype(jnp.bfloat16)
        y1 = jax.lax.conv_general_dilated(
            xb, k1, (1, 1, 1), "VALID", dimension_numbers=dn,
            preferred_element_type=jnp.float32) + b1
        y = y + y1
    y = jax.lax.reduce_window(y, -jnp.inf, jax.lax.max,
                              (1, 2, 2, 2, 1), (1, 2, 2, 2, 1), "VALID")
    y = jnp.maximum(y, 0.0)
    return jnp.transpose(y, (0, 4, 1, 2, 3))


# ----------------------------- main -----------------------------
if __name__ == "__main__":
    N, CIN, COUT, D, H, W = 2, 4, 8, 8, 8, 8

    key = jax.random.PRNGKey(0)
    kx, k0, kb0, k1, kb1, kg, kb = jax.random.split(key, 7)
    x = jax.random.normal(kx, (N, CIN, D, H, W), dtype=jnp.float32)
    w0 = 0.1 * jax.random.normal(k0, (COUT, CIN, 3, 3, 3), dtype=jnp.float32)
    b0 = 0.1 * jax.random.normal(kb0, (COUT,), dtype=jnp.float32)
    w1 = 0.1 * jax.random.normal(k1, (COUT, CIN, 1, 1, 1), dtype=jnp.float32)
    b1 = 0.1 * jax.random.normal(kb1, (COUT,), dtype=jnp.float32)
    gamma = 1.0 + 0.1 * jax.random.normal(kg, (COUT,), dtype=jnp.float32)
    beta = 0.1 * jax.random.normal(kb, (COUT,), dtype=jnp.float32)

    for identity in (True, False):
        out = jax.block_until_ready(
            sub_block_forward(x, w0, b0, w1, b1, gamma=gamma, beta=beta,
                              identity=identity))
        ref = jax.block_until_ready(
            sub_block_reference(x, w0, b0, w1, b1, gamma, beta, identity=identity))
        assert out.shape == (N, COUT, D // 2, H // 2, W // 2), out.shape
        err = float(jnp.max(jnp.abs(out - ref)))
        if err > 2e-3:
            raise SystemExit(f"mismatch vs reference (identity={identity}): "
                             f"max abs err = {err}")

    print("KERNEL_OK")
</pallas_src>

<mosaic_0001>
module attributes {stable_mosaic.version = 11 : i64} {
  func.func @_conv_stats_kernel(%arg0: i32, %arg1: memref<1x100x40xbf16, #tpu.memory_space<vmem>>, %arg2: memref<9x40x128xbf16, #tpu.memory_space<vmem>>, %arg3: memref<1x8x8x128xf32, #tpu.memory_space<vmem>>, %arg4: memref<1x2x64xf32, #tpu.memory_space<vmem>>) attributes {dimension_semantics = [#tpu.dimension_semantics<parallel>], iteration_bounds = array<i64: 2>, scalar_prefetch = 0 : i64, scratch_operands = 0 : i64, tpu.core_type = #tpu.core_type<tc>, window_params = [{transform_indices = @transform_0, window_bounds = array<i64: 1, 100, 40>}, {pipeline_mode = #tpu.pipeline_mode<synchronous>, transform_indices = @transform_1, window_bounds = array<i64: 9, 40, 128>}, {transform_indices = @transform_2, window_bounds = array<i64: 1, 8, 8, 128>}, {transform_indices = @transform_3, window_bounds = array<i64: 1, 2, 64>}]} {
    %cst = arith.constant 0.000000e+00 : f32
    %0 = vector.broadcast %cst : f32 to vector<8x128xf32>
    %c0 = arith.constant 0 : index
    %c0_0 = arith.constant 0 : index
    %c0_1 = arith.constant 0 : index
    %1 = vector.load %arg1[%c0, %c0_0, %c0_1] : memref<1x100x40xbf16, #tpu.memory_space<vmem>>, vector<1x8x40xbf16>
    %2 = vector.shape_cast %1 : vector<1x8x40xbf16> to vector<8x40xbf16>
    %c0_2 = arith.constant 0 : index
    %c0_3 = arith.constant 0 : index
    %c0_4 = arith.constant 0 : index
    %3 = vector.load %arg2[%c0_2, %c0_3, %c0_4] : memref<9x40x128xbf16, #tpu.memory_space<vmem>>, vector<1x40x128xbf16>
    %4 = vector.shape_cast %3 : vector<1x40x128xbf16> to vector<40x128xbf16>
    %cst_5 = arith.constant dense<0.000000e+00> : vector<8x128xf32>
    %5 = tpu.matmul %2, %4, %cst_5 {dimension_numbers = #tpu.dot_dimension_numbers<[1], [0], [0], [1], [0, 0, 1, 1], [], []>} : vector<8x40xbf16>, vector<40x128xbf16>, vector<8x128xf32> -> vector<8x128xf32>
    %6 = arith.addf %0, %5 : vector<8x128xf32>
    %c0_6 = arith.constant 0 : index
    %c1 = arith.constant 1 : index
    %c0_7 = arith.constant 0 : index
    %7 = vector.load %arg1[%c0_6, %c1, %c0_7] : memref<1x100x40xbf16, #tpu.memory_space<vmem>>, vector<1x8x40xbf16>
    %8 = vector.shape_cast %7 : vector<1x8x40xbf16> to vector<8x40xbf16>
    %c1_8 = arith.constant 1 : index
    %c0_9 = arith.constant 0 : index
    %c0_10 = arith.constant 0 : index
    %9 = vector.load %arg2[%c1_8, %c0_9, %c0_10] : memref<9x40x128xbf16, #tpu.memory_space<vmem>>, vector<1x40x128xbf16>
    %10 = vector.shape_cast %9 : vector<1x40x128xbf16> to vector<40x128xbf16>
    %cst_11 = arith.constant dense<0.000000e+00> : vector<8x128xf32>
    %11 = tpu.matmul %8, %10, %cst_11 {dimension_numbers = #tpu.dot_dimension_numbers<[1], [0], [0], [1], [0, 0, 1, 1], [], []>} : vector<8x40xbf16>, vector<40x128xbf16>, vector<8x128xf32> -> vector<8x128xf32>
    %12 = arith.addf %6, %11 : vector<8x128xf32>
    %c0_12 = arith.constant 0 : index
    %c2 = arith.constant 2 : index
    %c0_13 = arith.constant 0 : index
    %13 = vector.load %arg1[%c0_12, %c2, %c0_13] : memref<1x100x40xbf16, #tpu.memory_space<vmem>>, vector<1x8x40xbf16>
    %14 = vector.shape_cast %13 : vector<1x8x40xbf16> to vector<8x40xbf16>
    %c2_14 = arith.constant 2 : index
    %c0_15 = arith.constant 0 : index
    %c0_16 = arith.constant 0 : index
    %15 = vector.load %arg2[%c2_14, %c0_15, %c0_16] : memref<9x40x128xbf16, #tpu.memory_space<vmem>>, vector<1x40x128xbf16>
    %16 = vector.shape_cast %15 : vector<1x40x128xbf16> to vector<40x128xbf16>
    %cst_17 = arith.constant dense<0.000000e+00> : vector<8x128xf32>
    %17 = tpu.matmul %14, %16, %cst_17 {dimension_numbers = #tpu.dot_dimension_numbers<[1], [0], [0], [1], [0, 0, 1, 1], [], []>} : vector<8x40xbf16>, vector<40x128xbf16>, vector<8x128xf32> -> vector<8x128xf32>
    %18 = arith.addf %12, %17 : vector<8x128xf32>
    %c0_18 = arith.constant 0 : index
    %c10 = arith.constant 10 : index
    %c0_19 = arith.constant 0 : index
    %19 = vector.load %arg1[%c0_18, %c10, %c0_19] : memref<1x100x40xbf16, #tpu.memory_space<vmem>>, vector<1x8x40xbf16>
    %20 = vector.shape_cast %19 : vector<1x8x40xbf16> to vector<8x40xbf16>
    %c3 = arith.constant 3 : index
    %c0_20 = arith.constant 0 : index
    %c0_21 = arith.constant 0 : index
    %21 = vector.load %arg2[%c3, %c0_20, %c0_21] : memref<9x40x128xbf16, #tpu.memory_space<vmem>>, vector<1x40x128xbf16>
    %22 = vector.shape_cast %21 : vector<1x40x128xbf16> to vector<40x128xbf16>
    %cst_22 = arith.constant dense<0.000000e+00> : vector<8x128xf32>
    %23 = tpu.matmul %20, %22, %cst_22 {dimension_numbers = #tpu.dot_dimension_numbers<[1], [0], [0], [1], [0, 0, 1, 1], [], []>} : vector<8x40xbf16>, vector<40x128xbf16>, vector<8x128xf32> -> vector<8x128xf32>
    %24 = arith.addf %18, %23 : vector<8x128xf32>
    %c0_23 = arith.constant 0 : index
    %c11 = arith.constant 11 : index
    %c0_24 = arith.constant 0 : index
    %25 = vector.load %arg1[%c0_23, %c11, %c0_24] : memref<1x100x40xbf16, #tpu.memory_space<vmem>>, vector<1x8x40xbf16>
    %26 = vector.shape_cast %25 : vector<1x8x40xbf16> to vector<8x40xbf16>
    %c4 = arith.constant 4 : index
    %c0_25 = arith.constant 0 : index
    %c0_26 = arith.constant 0 : index
    %27 = vector.load %arg2[%c4, %c0_25, %c0_26] : memref<9x40x128xbf16, #tpu.memory_space<vmem>>, vector<1x40x128xbf16>
    %28 = vector.shape_cast %27 : vector<1x40x128xbf16> to vector<40x128xbf16>
    %cst_27 = arith.constant dense<0.000000e+00> : vector<8x128xf32>
    %29 = tpu.matmul %26, %28, %cst_27 {dimension_numbers = #tpu.dot_dimension_numbers<[1], [0], [0], [1], [0, 0, 1, 1], [], []>} : vector<8x40xbf16>, vector<40x128xbf16>, vector<8x128xf32> -> vector<8x128xf32>
    %30 = arith.addf %24, %29 : vector<8x128xf32>
    %c0_28 = arith.constant 0 : index
    %c12 = arith.constant 12 : index
    %c0_29 = arith.constant 0 : index
    %31 = vector.load %arg1[%c0_28, %c12, %c0_29] : memref<1x100x40xbf16, #tpu.memory_space<vmem>>, vector<1x8x40xbf16>
    %32 = vector.shape_cast %31 : vector<1x8x40xbf16> to vector<8x40xbf16>
    %c5 = arith.constant 5 : index
    %c0_30 = arith.constant 0 : index
    %c0_31 = arith.constant 0 : index
    %33 = vector.load %arg2[%c5, %c0_30, %c0_31] : memref<9x40x128xbf16, #tpu.memory_space<vmem>>, vector<1x40x128xbf16>
    %34 = vector.shape_cast %33 : vector<1x40x128xbf16> to vector<40x128xbf16>
    %cst_32 = arith.constant dense<0.000000e+00> : vector<8x128xf32>
    %35 = tpu.matmul %32, %34, %cst_32 {dimension_numbers = #tpu.dot_dimension_numbers<[1], [0], [0], [1], [0, 0, 1, 1], [], []>} : vector<8x40xbf16>, vector<40x128xbf16>, vector<8x128xf32> -> vector<8x128xf32>
    %36 = arith.addf %30, %35 : vector<8x128xf32>
    %c0_33 = arith.constant 0 : index
    %c20 = arith.constant 20 : index
    %c0_34 = arith.constant 0 : index
    %37 = vector.load %arg1[%c0_33, %c20, %c0_34] : memref<1x100x40xbf16, #tpu.memory_space<vmem>>, vector<1x8x40xbf16>
    %38 = vector.shape_cast %37 : vector<1x8x40xbf16> to vector<8x40xbf16>
    %c6 = arith.constant 6 : index
    %c0_35 = arith.constant 0 : index
    %c0_36 = arith.constant 0 : index
    %39 = vector.load %arg2[%c6, %c0_35, %c0_36] : memref<9x40x128xbf16, #tpu.memory_space<vmem>>, vector<1x40x128xbf16>
    %40 = vector.shape_cast %39 : vector<1x40x128xbf16> to vector<40x128xbf16>
    %cst_37 = arith.constant dense<0.000000e+00> : vector<8x128xf32>
    %41 = tpu.matmul %38, %40, %cst_37 {dimension_numbers = #tpu.dot_dimension_numbers<[1], [0], [0], [1], [0, 0, 1, 1], [], []>} : vector<8x40xbf16>, vector<40x128xbf16>, vector<8x128xf32> -> vector<8x128xf32>
    %42 = arith.addf %36, %41 : vector<8x128xf32>
    %c0_38 = arith.constant 0 : index
    %c21 = arith.constant 21 : index
    %c0_39 = arith.constant 0 : index
    %43 = vector.load %arg1[%c0_38, %c21, %c0_39] : memref<1x100x40xbf16, #tpu.memory_space<vmem>>, vector<1x8x40xbf16>
    %44 = vector.shape_cast %43 : vector<1x8x40xbf16> to vector<8x40xbf16>
    %c7 = arith.constant 7 : index
    %c0_40 = arith.constant 0 : index
    %c0_41 = arith.constant 0 : index
    %45 = vector.load %arg2[%c7, %c0_40, %c0_41] : memref<9x40x128xbf16, #tpu.memory_space<vmem>>, vector<1x40x128xbf16>
    %46 = vector.shape_cast %45 : vector<1x40x128xbf16> to vector<40x128xbf16>
    %cst_42 = arith.constant dense<0.000000e+00> : vector<8x128xf32>
    %47 = tpu.matmul %44, %46, %cst_42 {dimension_numbers = #tpu.dot_dimension_numbers<[1], [0], [0], [1], [0, 0, 1, 1], [], []>} : vector<8x40xbf16>, vector<40x128xbf16>, vector<8x128xf32> -> vector<8x128xf32>
    %48 = arith.addf %42, %47 : vector<8x128xf32>
    %c0_43 = arith.constant 0 : index
    %c22 = arith.constant 22 : index
    %c0_44 = arith.constant 0 : index
    %49 = vector.load %arg1[%c0_43, %c22, %c0_44] : memref<1x100x40xbf16, #tpu.memory_space<vmem>>, vector<1x8x40xbf16>
    %50 = vector.shape_cast %49 : vector<1x8x40xbf16> to vector<8x40xbf16>
    %c8 = arith.constant 8 : index
    %c0_45 = arith.constant 0 : index
    %c0_46 = arith.constant 0 : index
    %51 = vector.load %arg2[%c8, %c0_45, %c0_46] : memref<9x40x128xbf16, #tpu.memory_space<vmem>>, vector<1x40x128xbf16>
    %52 = vector.shape_cast %51 : vector<1x40x128xbf16> to vector<40x128xbf16>
    %cst_47 = arith.constant dense<0.000000e+00> : vector<8x128xf32>
    %53 = tpu.matmul %50, %52, %cst_47 {dimension_numbers = #tpu.dot_dimension_numbers<[1], [0], [0], [1], [0, 0, 1, 1], [], []>} : vector<8x40xbf16>, vector<40x128xbf16>, vector<8x128xf32> -> vector<8x128xf32>
    %54 = arith.addf %48, %53 : vector<8x128xf32>
    %c0_48 = arith.constant 0 : index
    %c0_49 = arith.constant 0 : index
    %c0_50 = arith.constant 0 : index
    %c0_51 = arith.constant 0 : index
    %55 = vector.load %arg3[%c0_48, %c0_49, %c0_50, %c0_51] : memref<1x8x8x128xf32, #tpu.memory_space<vmem>>, vector<1x1x8x128xf32>
    %56 = vector.shape_cast %55 : vector<1x1x8x128xf32> to vector<8x128xf32>
    %57 = vector.shape_cast %54 : vector<8x128xf32> to vector<1x1x8x128xf32>
    tpu.vector_store %arg3[%c0_48, %c0_49, %c0_50, %c0_51], %57 {strides = array<i32>} : memref<1x8x8x128xf32, #tpu.memory_space<vmem>>, vector<1x1x8x128xf32>,
    %cst_52 = arith.constant 0.000000e+00 : f32
    %58 = vector.broadcast %cst_52 : f32 to vector<8x128xf32>
    %c0_53 = arith.constant 0 : index
    %c10_54 = arith.constant 10 : index
    %c0_55 = arith.constant 0 : index
    %59 = vector.load %arg1[%c0_53, %c10_54, %c0_55] : memref<1x100x40xbf16, #tpu.memory_space<vmem>>, vector<1x8x40xbf16>
    %60 = vector.shape_cast %59 : vector<1x8x40xbf16> to vector<8x40xbf16>
    %c0_56 = arith.constant 0 : index
    %c0_57 = arith.constant 0 : index
    %c0_58 = arith.constant 0 : index
    %61 = vector.load %arg2[%c0_56, %c0_57, %c0_58] : memref<9x40x128xbf16, #tpu.memory_space<vmem>>, vector<1x40x128xbf16>
    %62 = vector.shape_cast %61 : vector<1x40x128xbf16> to vector<40x128xbf16>
    %cst_59 = arith.constant dense<0.000000e+00> : vector<8x128xf32>
    %63 = tpu.matmul %60, %62, %cst_59 {dimension_numbers = #tpu.dot_dimension_numbers<[1], [0], [0], [1], [0, 0, 1, 1], [], []>} : vector<8x40xbf16>, vector<40x128xbf16>, vector<8x128xf32> -> vector<8x128xf32>
    %64 = arith.addf %58, %63 : vector<8x128xf32>
    %c0_60 = arith.constant 0 : index
    %c11_61 = arith.constant 11 : index
    %c0_62 = arith.constant 0 : index
    %65 = vector.load %arg1[%c0_60, %c11_61, %c0_62] : memref<1x100x40xbf16, #tpu.memory_space<vmem>>, vector<1x8x40xbf16>
    %66 = vector.shape_cast %65 : vector<1x8x40xbf16> to vector<8x40xbf16>
    %c1_63 = arith.constant 1 : index
    %c0_64 = arith.constant 0 : index
    %c0_65 = arith.constant 0 : index
    %67 = vector.load %arg2[%c1_63, %c0_64, %c0_65] : memref<9x40x128xbf16, #tpu.memory_space<vmem>>, vector<1x40x128xbf16>
    %68 = vector.shape_cast %67 : vector<1x40x128xbf16> to vector<40x128xbf16>
    %cst_66 = arith.constant dense<0.000000e+00> : vector<8x128xf32>
    %69 = tpu.matmul %66, %68, %cst_66 {dimension_numbers = #tpu.dot_dimension_numbers<[1], [0], [0], [1], [0, 0, 1, 1], [], []>} : vector<8x40xbf16>, vector<40x128xbf16>, vector<8x128xf32> -> vector<8x128xf32>
    %70 = arith.addf %64, %69 : vector<8x128xf32>
    %c0_67 = arith.constant 0 : index
    %c12_68 = arith.constant 12 : index
    %c0_69 = arith.constant 0 : index
    %71 = vector.load %arg1[%c0_67, %c12_68, %c0_69] : memref<1x100x40xbf16, #tpu.memory_space<vmem>>, vector<1x8x40xbf16>
    %72 = vector.shape_cast %71 : vector<1x8x40xbf16> to vector<8x40xbf16>
    %c2_70 = arith.constant 2 : index
    %c0_71 = arith.constant 0 : index
    %c0_72 = arith.constant 0 : index
    %73 = vector.load %arg2[%c2_70, %c0_71, %c0_72] : memref<9x40x128xbf16, #tpu.memory_space<vmem>>, vector<1x40x128xbf16>
    %74 = vector.shape_cast %73 : vector<1x40x128xbf16> to vector<40x128xbf16>
    %cst_73 = arith.constant dense<0.000000e+00> : vector<8x128xf32>
    %75 = tpu.matmul %72, %74, %cst_73 {dimension_numbers = #tpu.dot_dimension_numbers<[1], [0], [0], [1], [0, 0, 1, 1], [], []>} : vector<8x40xbf16>, vector<40x128xbf16>, vector<8x128xf32> -> vector<8x128xf32>
    %76 = arith.addf %70, %75 : vector<8x128xf32>
    %c0_74 = arith.constant 0 : index
    %c20_75 = arith.constant 20 : index
    %c0_76 = arith.constant 0 : index
    %77 = vector.load %arg1[%c0_74, %c20_75, %c0_76] : memref<1x100x40xbf16, #tpu.memory_space<vmem>>, vector<1x8x40xbf16>
    %78 = vector.shape_cast %77 : vector<1x8x40xbf16> to vector<8x40xbf16>
    %c3_77 = arith.constant 3 : index
    %c0_78 = arith.constant 0 : index
    %c0_79 = arith.constant 0 : index
    %79 = vector.load %arg2[%c3_77, %c0_78, %c0_79] : memref<9x40x128xbf16, #tpu.memory_space<vmem>>, vector<1x40x128xbf16>
    %80 = vector.shape_cast %79 : vector<1x40x128xbf16> to vector<40x128xbf16>
    %cst_80 = arith.constant dense<0.000000e+00> : vector<8x128xf32>
    %81 = tpu.matmul %78, %80, %cst_80 {dimension_numbers = #tpu.dot_dimension_numbers<[1], [0], [0], [1], [0, 0, 1, 1], [], []>} : vector<8x40xbf16>, vector<40x128xbf16>, vector<8x128xf32> -> vector<8x128xf32>
    %82 = arith.addf %76, %81 : vector<8x128xf32>
    %c0_81 = arith.constant 0 : index
    %c21_82 = arith.constant 21 : index
    %c0_83 = arith.constant 0 : index
    %83 = vector.load %arg1[%c0_81, %c21_82, %c0_83] : memref<1x100x40xbf16, #tpu.memory_space<vmem>>, vector<1x8x40xbf16>
    %84 = vector.shape_cast %83 : vector<1x8x40xbf16> to vector<8x40xbf16>
    %c4_84 = arith.constant 4 : index
    %c0_85 = arith.constant 0 : index
    %c0_86 = arith.constant 0 : index
    %85 = vector.load %arg2[%c4_84, %c0_85, %c0_86] : memref<9x40x128xbf16, #tpu.memory_space<vmem>>, vector<1x40x128xbf16>
    %86 = vector.shape_cast %85 : vector<1x40x128xbf16> to vector<40x128xbf16>
    %cst_87 = arith.constant dense<0.000000e+00> : vector<8x128xf32>
    %87 = tpu.matmul %84, %86, %cst_87 {dimension_numbers = #tpu.dot_dimension_numbers<[1], [0], [0], [1], [0, 0, 1, 1], [], []>} : vector<8x40xbf16>, vector<40x128xbf16>, vector<8x128xf32> -> vector<8x128xf32>
    %88 = arith.addf %82, %87 : vector<8x128xf32>
    %c0_88 = arith.constant 0 : index
    %c22_89 = arith.constant 22 : index
    %c0_90 = arith.constant 0 : index
    %89 = vector.load %arg1[%c0_88, %c22_89, %c0_90] : memref<1x100x40xbf16, #tpu.memory_space<vmem>>, vector<1x8x40xbf16>
    %90 = vector.shape_cast %89 : vector<1x8x40xbf16> to vector<8x40xbf16>
    %c5_91 = arith.constant 5 : index
    %c0_92 = arith.constant 0 : index
    %c0_93 = arith.constant 0 : index
    %91 = vector.load %arg2[%c5_91, %c0_92, %c0_93] : memref<9x40x128xbf16, #tpu.memory_space<vmem>>, vector<1x40x128xbf16>
    %92 = vector.shape_cast %91 : vector<1x40x128xbf16> to vector<40x128xbf16>
    %cst_94 = arith.constant dense<0.000000e+00> : vector<8x128xf32>
    %93 = tpu.matmul %90, %92, %cst_94 {dimension_numbers = #tpu.dot_dimension_numbers<[1], [0], [0], [1], [0, 0, 1, 1], [], []>} : vector<8x40xbf16>, vector<40x128xbf16>, vector<8x128xf32> -> vector<8x128xf32>
    %94 = arith.addf %88, %93 : vector<8x128xf32>
    %c0_95 = arith.constant 0 : index
    %c30 = arith.constant 30 : index
    %c0_96 = arith.constant 0 : index
    %95 = vector.load %arg1[%c0_95, %c30, %c0_96] : memref<1x100x40xbf16, #tpu.memory_space<vmem>>, vector<1x8x40xbf16>
    %96 = vector.shape_cast %95 : vector<1x8x40xbf16> to vector<8x40xbf16>
    %c6_97 = arith.constant 6 : index
    %c0_98 = arith.constant 0 : index
    %c0_99 = arith.constant 0 : index
    %97 = vector.load %arg2[%c6_97, %c0_98, %c0_99] : memref<9x40x128xbf16, #tpu.memory_space<vmem>>, vector<1x40x128xbf16>
    %98 = vector.shape_cast %97 : vector<1x40x128xbf16> to vector<40x128xbf16>
    %cst_100 = arith.constant dense<0.000000e+00> : vector<8x128xf32>
    %99 = tpu.matmul %96, %98, %cst_100 {dimension_numbers = #tpu.dot_dimension_numbers<[1], [0], [0], [1], [0, 0, 1, 1], [], []>} : vector<8x40xbf16>, vector<40x128xbf16>, vector<8x128xf32> -> vector<8x128xf32>
    %100 = arith.addf %94, %99 : vector<8x128xf32>
    %c0_101 = arith.constant 0 : index
    %c31 = arith.constant 31 : index
    %c0_102 = arith.constant 0 : index
    %101 = vector.load %arg1[%c0_101, %c31, %c0_102] : memref<1x100x40xbf16, #tpu.memory_space<vmem>>, vector<1x8x40xbf16>
    %102 = vector.shape_cast %101 : vector<1x8x40xbf16> to vector<8x40xbf16>
    %c7_103 = arith.constant 7 : index
    %c0_104 = arith.constant 0 : index
    %c0_105 = arith.constant 0 : index
    %103 = vector.load %arg2[%c7_103, %c0_104, %c0_105] : memref<9x40x128xbf16, #tpu.memory_space<vmem>>, vector<1x40x128xbf16>
    %104 = vector.shape_cast %103 : vector<1x40x128xbf16> to vector<40x128xbf16>
    %cst_106 = arith.constant dense<0.000000e+00> : vector<8x128xf32>
    %105 = tpu.matmul %102, %104, %cst_106 {dimension_numbers = #tpu.dot_dimension_numbers<[1], [0], [0], [1], [0, 0, 1, 1], [], []>} : vector<8x40xbf16>, vector<40x128xbf16>, vector<8x128xf32> -> vector<8x128xf32>
    %106 = arith.addf %100, %105 : vector<8x128xf32>
    %c0_107 = arith.constant 0 : index
    %c32 = arith.constant 32 : index
    %c0_108 = arith.constant 0 : index
    %107 = vector.load %arg1[%c0_107, %c32, %c0_108] : memref<1x100x40xbf16, #tpu.memory_space<vmem>>, vector<1x8x40xbf16>
    %108 = vector.shape_cast %107 : vector<1x8x40xbf16> to vector<8x40xbf16>
    %c8_109 = arith.constant 8 : index
    %c0_110 = arith.constant 0 : index
    %c0_111 = arith.constant 0 : index
    %109 = vector.load %arg2[%c8_109, %c0_110, %c0_111] : memref<9x40x128xbf16, #tpu.memory_space<vmem>>, vector<1x40x128xbf16>
    %110 = vector.shape_cast %109 : vector<1x40x128xbf16> to vector<40x128xbf16>
    %cst_112 = arith.constant dense<0.000000e+00> : vector<8x128xf32>
    %111 = tpu.matmul %108, %110, %cst_112 {dimension_numbers = #tpu.dot_dimension_numbers<[1], [0], [0], [1], [0, 0, 1, 1], [], []>} : vector<8x40xbf16>, vector<40x128xbf16>, vector<8x128xf32> -> vector<8x128xf32>
    %112 = arith.addf %106, %111 : vector<8x128xf32>
    %c0_113 = arith.constant 0 : index
    %c1_114 = arith.constant 1 : index
    %c0_115 = arith.constant 0 : index
    %c0_116 = arith.constant 0 : index
    %113 = vector.load %arg3[%c0_113, %c1_114, %c0_115, %c0_116] : memref<1x8x8x128xf32, #tpu.memory_space<vmem>>, vector<1x1x8x128xf32>
    %114 = vector.shape_cast %113 : vector<1x1x8x128xf32> to vector<8x128xf32>
    %115 = vector.shape_cast %112 : vector<8x128xf32> to vector<1x1x8x128xf32>
    tpu.vector_store %arg3[%c0_113, %c1_114, %c0_115, %c0_116], %115 {strides = array<i32>} : memref<1x8x8x128xf32, #tpu.memory_space<vmem>>, vector<1x1x8x128xf32>,
    %cst_117 = arith.constant 0.000000e+00 : f32
    %116 = vector.broadcast %cst_117 : f32 to vector<8x128xf32>
    %c0_118 = arith.constant 0 : index
    %c20_119 = arith.constant 20 : index
    %c0_120 = arith.constant 0 : index
    %117 = vector.load %arg1[%c0_118, %c20_119, %c0_120] : memref<1x100x40xbf16, #tpu.memory_space<vmem>>, vector<1x8x40xbf16>
    %118 = vector.shape_cast %117 : vector<1x8x40xbf16> to vector<8x40xbf16>
    %c0_121 = arith.constant 0 : index
    %c0_122 = arith.constant 0 : index
    %c0_123 = arith.constant 0 : index
    %119 = vector.load %arg2[%c0_121, %c0_122, %c0_123] : memref<9x40x128xbf16, #tpu.memory_space<vmem>>, vector<1x40x128xbf16>
    %120 = vector.shape_cast %119 : vector<1x40x128xbf16> to vector<40x128xbf16>
    %cst_124 = arith.constant dense<0.000000e+00> : vector<8x128xf32>
    %121 = tpu.matmul %118, %120, %cst_124 {dimension_numbers = #tpu.dot_dimension_numbers<[1], [0], [0], [1], [0, 0, 1, 1], [], []>} : vector<8x40xbf16>, vector<40x128xbf16>, vector<8x128xf32> -> vector<8x128xf32>
    %122 = arith.addf %116, %121 : vector<8x128xf32>
    %c0_125 = arith.constant 0 : index
    %c21_126 = arith.constant 21 : index
    %c0_127 = arith.constant 0 : index
    %123 = vector.load %arg1[%c0_125, %c21_126, %c0_127] : memref<1x100x40xbf16, #tpu.memory_space<vmem>>, vector<1x8x40xbf16>
    %124 = vector.shape_cast %123 : vector<1x8x40xbf16> to vector<8x40xbf16>
    %c1_128 = arith.constant 1 : index
    %c0_129 = arith.constant 0 : index
    %c0_130 = arith.constant 0 : index
    %125 = vector.load %arg2[%c1_128, %c0_129, %c0_130] : memref<9x40x128xbf16, #tpu.memory_space<vmem>>, vector<1x40x128xbf16>
    %126 = vector.shape_cast %125 : vector<1x40x128xbf16> to vector<40x128xbf16>
    %cst_131 = arith.constant dense<0.000000e+00> : vector<8x128xf32>
    %127 = tpu.matmul %124, %126, %cst_131 {dimension_numbers = #tpu.dot_dimension_numbers<[1], [0], [0], [1], [0, 0, 1, 1], [], []>} : vector<8x40xbf16>, vector<40x128xbf16>, vector<8x128xf32> -> vector<8x128xf32>
    %128 = arith.addf %122, %127 : vector<8x128xf32>
    %c0_132 = arith.constant 0 : index
    %c22_133 = arith.constant 22 : index
    %c0_134 = arith.constant 0 : index
    %129 = vector.load %arg1[%c0_132, %c22_133, %c0_134] : memref<1x100x40xbf16, #tpu.memory_space<vmem>>, vector<1x8x40xbf16>
    %130 = vector.shape_cast %129 : vector<1x8x40xbf16> to vector<8x40xbf16>
    %c2_135 = arith.constant 2 : index
    %c0_136 = arith.constant 0 : index
    %c0_137 = arith.constant 0 : index
    %131 = vector.load %arg2[%c2_135, %c0_136, %c0_137] : memref<9x40x128xbf16, #tpu.memory_space<vmem>>, vector<1x40x128xbf16>
    %132 = vector.shape_cast %131 : vector<1x40x128xbf16> to vector<40x128xbf16>
    %cst_138 = arith.constant dense<0.000000e+00> : vector<8x128xf32>
    %133 = tpu.matmul %130, %132, %cst_138 {dimension_numbers = #tpu.dot_dimension_numbers<[1], [0], [0], [1], [0, 0, 1, 1], [], []>} : vector<8x40xbf16>, vector<40x128xbf16>, vector<8x128xf32> -> vector<8x128xf32>
    %134 = arith.addf %128, %133 : vector<8x128xf32>
    %c0_139 = arith.constant 0 : index
    %c30_140 = arith.constant 30 : index
    %c0_141 = arith.constant 0 : index
    %135 = vector.load %arg1[%c0_139, %c30_140, %c0_141] : memref<1x100x40xbf16, #tpu.memory_space<vmem>>, vector<1x8x40xbf16>
    %136 = vector.shape_cast %135 : vector<1x8x40xbf16> to vector<8x40xbf16>
    %c3_142 = arith.constant 3 : index
    %c0_143 = arith.constant 0 : index
    %c0_144 = arith.constant 0 : index
    %137 = vector.load %arg2[%c3_142, %c0_143, %c0_144] : memref<9x40x128xbf16, #tpu.memory_space<vmem>>, vector<1x40x128xbf16>
    %138 = vector.shape_cast %137 : vector<1x40x128xbf16> to vector<40x128xbf16>
    %cst_145 = arith.constant dense<0.000000e+00> : vector<8x128xf32>
    %139 = tpu.matmul %136, %138, %cst_145 {dimension_numbers = #tpu.dot_dimension_numbers<[1], [0], [0], [1], [0, 0, 1, 1], [], []>} : vector<8x40xbf16>, vector<40x128xbf16>, vector<8x128xf32> -> vector<8x128xf32>
    %140 = arith.addf %134, %139 : vector<8x128xf32>
    %c0_146 = arith.constant 0 : index
    %c31_147 = arith.constant 31 : index
    %c0_148 = arith.constant 0 : index
    %141 = vector.load %arg1[%c0_146, %c31_147, %c0_148] : memref<1x100x40xbf16, #tpu.memory_space<vmem>>, vector<1x8x40xbf16>
    %142 = vector.shape_cast %141 : vector<1x8x40xbf16> to vector<8x40xbf16>
    %c4_149 = arith.constant 4 : index
    %c0_150 = arith.constant 0 : index
    %c0_151 = arith.constant 0 : index
    %143 = vector.load %arg2[%c4_149, %c0_150, %c0_151] : memref<9x40x128xbf16, #tpu.memory_space<vmem>>, vector<1x40x128xbf16>
    %144 = vector.shape_cast %143 : vector<1x40x128xbf16> to vector<40x128xbf16>
    %cst_152 = arith.constant dense<0.000000e+00> : vector<8x128xf32>
    %145 = tpu.matmul %142, %144, %cst_152 {dimension_numbers = #tpu.dot_dimension_numbers<[1], [0], [0], [1], [0, 0, 1, 1], [], []>} : vector<8x40xbf16>, vector<40x128xbf16>, vector<8x128xf32> -> vector<8x128xf32>
    %146 = arith.addf %140, %145 : vector<8x128xf32>
    %c0_153 = arith.constant 0 : index
    %c32_154 = arith.constant 32 : index
    %c0_155 = arith.constant 0 : index
    %147 = vector.load %arg1[%c0_153, %c32_154, %c0_155] : memref<1x100x40xbf16, #tpu.memory_space<vmem>>, vector<1x8x40xbf16>
    %148 = vector.shape_cast %147 : vector<1x8x40xbf16> to vector<8x40xbf16>
    %c5_156 = arith.constant 5 : index
    %c0_157 = arith.constant 0 : index
    %c0_158 = arith.constant 0 : index
    %149 = vector.load %arg2[%c5_156, %c0_157, %c0_158] : memref<9x40x128xbf16, #tpu.memory_space<vmem>>, vector<1x40x128xbf16>
    %150 = vector.shape_cast %149 : vector<1x40x128xbf16> to vector<40x128xbf16>
    %cst_159 = arith.constant dense<0.000000e+00> : vector<8x128xf32>
    %151 = tpu.matmul %148, %150, %cst_159 {dimension_numbers = #tpu.dot_dimension_numbers<[1], [0], [0], [1], [0, 0, 1, 1], [], []>} : vector<8x40xbf16>, vector<40x128xbf16>, vector<8x128xf32> -> vector<8x128xf32>
    %152 = arith.addf %146, %151 : vector<8x128xf32>
    %c0_160 = arith.constant 0 : index
    %c40 = arith.constant 40 : index
    %c0_161 = arith.constant 0 : index
    %153 = vector.load %arg1[%c0_160, %c40, %c0_161] : memref<1x100x40xbf16, #tpu.memory_space<vmem>>, vector<1x8x40xbf16>
    %154 = vector.shape_cast %153 : vector<1x8x40xbf16> to vector<8x40xbf16>
    %c6_162 = arith.constant 6 : index
    %c0_163 = arith.constant 0 : index
    %c0_164 = arith.constant 0 : index
    %155 = vector.load %arg2[%c6_162, %c0_163, %c0_164] : memref<9x40x128xbf16, #tpu.memory_space<vmem>>, vector<1x40x128xbf16>
    %156 = vector.shape_cast %155 : vector<1x40x128xbf16> to vector<40x128xbf16>
    %cst_165 = arith.constant dense<0.000000e+00> : vector<8x128xf32>
    %157 = tpu.matmul %154, %156, %cst_165 {dimension_numbers = #tpu.dot_dimension_numbers<[1], [0], [0], [1], [0, 0, 1, 1], [], []>} : vector<8x40xbf16>, vector<40x128xbf16>, vector<8x128xf32> -> vector<8x128xf32>
    %158 = arith.addf %152, %157 : vector<8x128xf32>
    %c0_166 = arith.constant 0 : index
    %c41 = arith.constant 41 : index
    %c0_167 = arith.constant 0 : index
    %159 = vector.load %arg1[%c0_166, %c41, %c0_167] : memref<1x100x40xbf16, #tpu.memory_space<vmem>>, vector<1x8x40xbf16>
    %160 = vector.shape_cast %159 : vector<1x8x40xbf16> to vector<8x40xbf16>
    %c7_168 = arith.constant 7 : index
    %c0_169 = arith.constant 0 : index
    %c0_170 = arith.constant 0 : index
    %161 = vector.load %arg2[%c7_168, %c0_169, %c0_170] : memref<9x40x128xbf16, #tpu.memory_space<vmem>>, vector<1x40x128xbf16>
    %162 = vector.shape_cast %161 : vector<1x40x128xbf16> to vector<40x128xbf16>
    %cst_171 = arith.constant dense<0.000000e+00> : vector<8x128xf32>
    %163 = tpu.matmul %160, %162, %cst_171 {dimension_numbers = #tpu.dot_dimension_numbers<[1], [0], [0], [1], [0, 0, 1, 1], [], []>} : vector<8x40xbf16>, vector<40x128xbf16>, vector<8x128xf32> -> vector<8x128xf32>
    %164 = arith.addf %158, %163 : vector<8x128xf32>
    %c0_172 = arith.constant 0 : index
    %c42 = arith.constant 42 : index
    %c0_173 = arith.constant 0 : index
    %165 = vector.load %arg1[%c0_172, %c42, %c0_173] : memref<1x100x40xbf16, #tpu.memory_space<vmem>>, vector<1x8x40xbf16>
    %166 = vector.shape_cast %165 : vector<1x8x40xbf16> to vector<8x40xbf16>
    %c8_174 = arith.constant 8 : index
    %c0_175 = arith.constant 0 : index
    %c0_176 = arith.constant 0 : index
    %167 = vector.load %arg2[%c8_174, %c0_175, %c0_176] : memref<9x40x128xbf16, #tpu.memory_space<vmem>>, vector<1x40x128xbf16>
    %168 = vector.shape_cast %167 : vector<1x40x128xbf16> to vector<40x128xbf16>
    %cst_177 = arith.constant dense<0.000000e+00> : vector<8x128xf32>
    %169 = tpu.matmul %166, %168, %cst_177 {dimension_numbers = #tpu.dot_dimension_numbers<[1], [0], [0], [1], [0, 0, 1, 1], [], []>} : vector<8x40xbf16>, vector<40x128xbf16>, vector<8x128xf32> -> vector<8x128xf32>
    %170 = arith.addf %164, %169 : vector<8x128xf32>
    %c0_178 = arith.constant 0 : index
    %c2_179 = arith.constant 2 : index
    %c0_180 = arith.constant 0 : index
    %c0_181 = arith.constant 0 : index
    %171 = vector.load %arg3[%c0_178, %c2_179, %c0_180, %c0_181] : memref<1x8x8x128xf32, #tpu.memory_space<vmem>>, vector<1x1x8x128xf32>
    %172 = vector.shape_cast %171 : vector<1x1x8x128xf32> to vector<8x128xf32>
    %173 = vector.shape_cast %170 : vector<8x128xf32> to vector<1x1x8x128xf32>
    tpu.vector_store %arg3[%c0_178, %c2_179, %c0_180, %c0_181], %173 {strides = array<i32>} : memref<1x8x8x128xf32, #tpu.memory_space<vmem>>, vector<1x1x8x128xf32>,
    %cst_182 = arith.constant 0.000000e+00 : f32
    %174 = vector.broadcast %cst_182 : f32 to vector<8x128xf32>
    %c0_183 = arith.constant 0 : index
    %c30_184 = arith.constant 30 : index
    %c0_185 = arith.constant 0 : index
    %175 = vector.load %arg1[%c0_183, %c30_184, %c0_185] : memref<1x100x40xbf16, #tpu.memory_space<vmem>>, vector<1x8x40xbf16>
    %176 = vector.shape_cast %175 : vector<1x8x40xbf16> to vector<8x40xbf16>
    %c0_186 = arith.constant 0 : index
    %c0_187 = arith.constant 0 : index
    %c0_188 = arith.constant 0 : index
    %177 = vector.load %arg2[%c0_186, %c0_187, %c0_188] : memref<9x40x128xbf16, #tpu.memory_space<vmem>>, vector<1x40x128xbf16>
    %178 = vector.shape_cast %177 : vector<1x40x128xbf16> to vector<40x128xbf16>
    %cst_189 = arith.constant dense<0.000000e+00> : vector<8x128xf32>
    %179 = tpu.matmul %176, %178, %cst_189 {dimension_numbers = #tpu.dot_dimension_numbers<[1], [0], [0], [1], [0, 0, 1, 1], [], []>} : vector<8x40xbf16>, vector<40x128xbf16>, vector<8x128xf32> -> vector<8x128xf32>
    %180 = arith.addf %174, %179 : vector<8x128xf32>
    %c0_190 = arith.constant 0 : index
    %c31_191 = arith.constant 31 : index
    %c0_192 = arith.constant 0 : index
    %181 = vector.load %arg1[%c0_190, %c31_191, %c0_192] : memref<1x100x40xbf16, #tpu.memory_space<vmem>>, vector<1x8x40xbf16>
    %182 = vector.shape_cast %181 : vector<1x8x40xbf16> to vector<8x40xbf16>
    %c1_193 = arith.constant 1 : index
    %c0_194 = arith.constant 0 : index
    %c0_195 = arith.constant 0 : index
    %183 = vector.load %arg2[%c1_193, %c0_194, %c0_195] : memref<9x40x128xbf16, #tpu.memory_space<vmem>>, vector<1x40x128xbf16>
    %184 = vector.shape_cast %183 : vector<1x40x128xbf16> to vector<40x128xbf16>
    %cst_196 = arith.constant dense<0.000000e+00> : vector<8x128xf32>
    %185 = tpu.matmul %182, %184, %cst_196 {dimension_numbers = #tpu.dot_dimension_numbers<[1], [0], [0], [1], [0, 0, 1, 1], [], []>} : vector<8x40xbf16>, vector<40x128xbf16>, vector<8x128xf32> -> vector<8x128xf32>
    %186 = arith.addf %180, %185 : vector<8x128xf32>
    %c0_197 = arith.constant 0 : index
    %c32_198 = arith.constant 32 : index
    %c0_199 = arith.constant 0 : index
    %187 = vector.load %arg1[%c0_197, %c32_198, %c0_199] : memref<1x100x40xbf16, #tpu.memory_space<vmem>>, vector<1x8x40xbf16>
    %188 = vector.shape_cast %187 : vector<1x8x40xbf16> to vector<8x40xbf16>
    %c2_200 = arith.constant 2 : index
    %c0_201 = arith.constant 0 : index
    %c0_202 = arith.constant 0 : index
    %189 = vector.load %arg2[%c2_200, %c0_201, %c0_202] : memref<9x40x128xbf16, #tpu.memory_space<vmem>>, vector<1x40x128xbf16>
    %190 = vector.shape_cast %189 : vector<1x40x128xbf16> to vector<40x128xbf16>
    %cst_203 = arith.constant dense<0.000000e+00> : vector<8x128xf32>
    %191 = tpu.matmul %188, %190, %cst_203 {dimension_numbers = #tpu.dot_dimension_numbers<[1], [0], [0], [1], [0, 0, 1, 1], [], []>} : vector<8x40xbf16>, vector<40x128xbf16>, vector<8x128xf32> -> vector<8x128xf32>
    %192 = arith.addf %186, %191 : vector<8x128xf32>
    %c0_204 = arith.constant 0 : index
    %c40_205 = arith.constant 40 : index
    %c0_206 = arith.constant 0 : index
    %193 = vector.load %arg1[%c0_204, %c40_205, %c0_206] : memref<1x100x40xbf16, #tpu.memory_space<vmem>>, vector<1x8x40xbf16>
    %194 = vector.shape_cast %193 : vector<1x8x40xbf16> to vector<8x40xbf16>
    %c3_207 = arith.constant 3 : index
    %c0_208 = arith.constant 0 : index
    %c0_209 = arith.constant 0 : index
    %195 = vector.load %arg2[%c3_207, %c0_208, %c0_209] : memref<9x40x128xbf16, #tpu.memory_space<vmem>>, vector<1x40x128xbf16>
    %196 = vector.shape_cast %195 : vector<1x40x128xbf16> to vector<40x128xbf16>
    %cst_210 = arith.constant dense<0.000000e+00> : vector<8x128xf32>
    %197 = tpu.matmul %194, %196, %cst_210 {dimension_numbers = #tpu.dot_dimension_numbers<[1], [0], [0], [1], [0, 0, 1, 1], [], []>} : vector<8x40xbf16>, vector<40x128xbf16>, vector<8x128xf32> -> vector<8x128xf32>
    %198 = arith.addf %192, %197 : vector<8x128xf32>
    %c0_211 = arith.constant 0 : index
    %c41_212 = arith.constant 41 : index
    %c0_213 = arith.constant 0 : index
    %199 = vector.load %arg1[%c0_211, %c41_212, %c0_213] : memref<1x100x40xbf16, #tpu.memory_space<vmem>>, vector<1x8x40xbf16>
    %200 = vector.shape_cast %199 : vector<1x8x40xbf16> to vector<8x40xbf16>
    %c4_214 = arith.constant 4 : index
    %c0_215 = arith.constant 0 : index
    %c0_216 = arith.constant 0 : index
    %201 = vector.load %arg2[%c4_214, %c0_215, %c0_216] : memref<9x40x128xbf16, #tpu.memory_space<vmem>>, vector<1x40x128xbf16>
    %202 = vector.shape_cast %201 : vector<1x40x128xbf16> to vector<40x128xbf16>
    %cst_217 = arith.constant dense<0.000000e+00> : vector<8x128xf32>
    %203 = tpu.matmul %200, %202, %cst_217 {dimension_numbers = #tpu.dot_dimension_numbers<[1], [0], [0], [1], [0, 0, 1, 1], [], []>} : vector<8x40xbf16>, vector<40x128xbf16>, vector<8x128xf32> -> vector<8x128xf32>
    %204 = arith.addf %198, %203 : vector<8x128xf32>
    %c0_218 = arith.constant 0 : index
    %c42_219 = arith.constant 42 : index
    %c0_220 = arith.constant 0 : index
    %205 = vector.load %arg1[%c0_218, %c42_219, %c0_220] : memref<1x100x40xbf16, #tpu.memory_space<vmem>>, vector<1x8x40xbf16>
    %206 = vector.shape_cast %205 : vector<1x8x40xbf16> to vector<8x40xbf16>
    %c5_221 = arith.constant 5 : index
    %c0_222 = arith.constant 0 : index
    %c0_223 = arith.constant 0 : index
    %207 = vector.load %arg2[%c5_221, %c0_222, %c0_223] : memref<9x40x128xbf16, #tpu.memory_space<vmem>>, vector<1x40x128xbf16>
    %208 = vector.shape_cast %207 : vector<1x40x128xbf16> to vector<40x128xbf16>
    %cst_224 = arith.constant dense<0.000000e+00> : vector<8x128xf32>
    %209 = tpu.matmul %206, %208, %cst_224 {dimension_numbers = #tpu.dot_dimension_numbers<[1], [0], [0], [1], [0, 0, 1, 1], [], []>} : vector<8x40xbf16>, vector<40x128xbf16>, vector<8x128xf32> -> vector<8x128xf32>
    %210 = arith.addf %204, %209 : vector<8x128xf32>
    %c0_225 = arith.constant 0 : index
    %c50 = arith.constant 50 : index
    %c0_226 = arith.constant 0 : index
    %211 = vector.load %arg1[%c0_225, %c50, %c0_226] : memref<1x100x40xbf16, #tpu.memory_space<vmem>>, vector<1x8x40xbf16>
    %212 = vector.shape_cast %211 : vector<1x8x40xbf16> to vector<8x40xbf16>
    %c6_227 = arith.constant 6 : index
    %c0_228 = arith.constant 0 : index
    %c0_229 = arith.constant 0 : index
    %213 = vector.load %arg2[%c6_227, %c0_228, %c0_229] : memref<9x40x128xbf16, #tpu.memory_space<vmem>>, vector<1x40x128xbf16>
    %214 = vector.shape_cast %213 : vector<1x40x128xbf16> to vector<40x128xbf16>
    %cst_230 = arith.constant dense<0.000000e+00> : vector<8x128xf32>
    %215 = tpu.matmul %212, %214, %cst_230 {dimension_numbers = #tpu.dot_dimension_numbers<[1], [0], [0], [1], [0, 0, 1, 1], [], []>} : vector<8x40xbf16>, vector<40x128xbf16>, vector<8x128xf32> -> vector<8x128xf32>
    %216 = arith.addf %210, %215 : vector<8x128xf32>
    %c0_231 = arith.constant 0 : index
    %c51 = arith.constant 51 : index
    %c0_232 = arith.constant 0 : index
    %217 = vector.load %arg1[%c0_231, %c51, %c0_232] : memref<1x100x40xbf16, #tpu.memory_space<vmem>>, vector<1x8x40xbf16>
    %218 = vector.shape_cast %217 : vector<1x8x40xbf16> to vector<8x40xbf16>
    %c7_233 = arith.constant 7 : index
    %c0_234 = arith.constant 0 : index
    %c0_235 = arith.constant 0 : index
    %219 = vector.load %arg2[%c7_233, %c0_234, %c0_235] : memref<9x40x128xbf16, #tpu.memory_space<vmem>>, vector<1x40x128xbf16>
    %220 = vector.shape_cast %219 : vector<1x40x128xbf16> to vector<40x128xbf16>
    %cst_236 = arith.constant dense<0.000000e+00> : vector<8x128xf32>
    %221 = tpu.matmul %218, %220, %cst_236 {dimension_numbers = #tpu.dot_dimension_numbers<[1], [0], [0], [1], [0, 0, 1, 1], [], []>} : vector<8x40xbf16>, vector<40x128xbf16>, vector<8x128xf32> -> vector<8x128xf32>
    %222 = arith.addf %216, %221 : vector<8x128xf32>
    %c0_237 = arith.constant 0 : index
    %c52 = arith.constant 52 : index
    %c0_238 = arith.constant 0 : index
    %223 = vector.load %arg1[%c0_237, %c52, %c0_238] : memref<1x100x40xbf16, #tpu.memory_space<vmem>>, vector<1x8x40xbf16>
    %224 = vector.shape_cast %223 : vector<1x8x40xbf16> to vector<8x40xbf16>
    %c8_239 = arith.constant 8 : index
    %c0_240 = arith.constant 0 : index
    %c0_241 = arith.constant 0 : index
    %225 = vector.load %arg2[%c8_239, %c0_240, %c0_241] : memref<9x40x128xbf16, #tpu.memory_space<vmem>>, vector<1x40x128xbf16>
    %226 = vector.shape_cast %225 : vector<1x40x128xbf16> to vector<40x128xbf16>
    %cst_242 = arith.constant dense<0.000000e+00> : vector<8x128xf32>
    %227 = tpu.matmul %224, %226, %cst_242 {dimension_numbers = #tpu.dot_dimension_numbers<[1], [0], [0], [1], [0, 0, 1, 1], [], []>} : vector<8x40xbf16>, vector<40x128xbf16>, vector<8x128xf32> -> vector<8x128xf32>
    %228 = arith.addf %222, %227 : vector<8x128xf32>
    %c0_243 = arith.constant 0 : index
    %c3_244 = arith.constant 3 : index
    %c0_245 = arith.constant 0 : index
    %c0_246 = arith.constant 0 : index
    %229 = vector.load %arg3[%c0_243, %c3_244, %c0_245, %c0_246] : memref<1x8x8x128xf32, #tpu.memory_space<vmem>>, vector<1x1x8x128xf32>
    %230 = vector.shape_cast %229 : vector<1x1x8x128xf32> to vector<8x128xf32>
    %231 = vector.shape_cast %228 : vector<8x128xf32> to vector<1x1x8x128xf32>
    tpu.vector_store %arg3[%c0_243, %c3_244, %c0_245, %c0_246], %231 {strides = array<i32>} : memref<1x8x8x128xf32, #tpu.memory_space<vmem>>, vector<1x1x8x128xf32>,
    %cst_247 = arith.constant 0.000000e+00 : f32
    %232 = vector.broadcast %cst_247 : f32 to vector<8x128xf32>
    %c0_248 = arith.constant 0 : index
    %c40_249 = arith.constant 40 : index
    %c0_250 = arith.constant 0 : index
    %233 = vector.load %arg1[%c0_248, %c40_249, %c0_250] : memref<1x100x40xbf16, #tpu.memory_space<vmem>>, vector<1x8x40xbf16>
    %234 = vector.shape_cast %233 : vector<1x8x40xbf16> to vector<8x40xbf16>
    %c0_251 = arith.constant 0 : index
    %c0_252 = arith.constant 0 : index
    %c0_253 = arith.constant 0 : index
    %235 = vector.load %arg2[%c0_251, %c0_252, %c0_253] : memref<9x40x128xbf16, #tpu.memory_space<vmem>>, vector<1x40x128xbf16>
    %236 = vector.shape_cast %235 : vector<1x40x128xbf16> to vector<40x128xbf16>
    %cst_254 = arith.constant dense<0.000000e+00> : vector<8x128xf32>
    %237 = tpu.matmul %234, %236, %cst_254 {dimension_numbers = #tpu.dot_dimension_numbers<[1], [0], [0], [1], [0, 0, 1, 1], [], []>} : vector<8x40xbf16>, vector<40x128xbf16>, vector<8x128xf32> -> vector<8x128xf32>
    %238 = arith.addf %232, %237 : vector<8x128xf32>
    %c0_255 = arith.constant 0 : index
    %c41_256 = arith.constant 41 : index
    %c0_257 = arith.constant 0 : index
    %239 = vector.load %arg1[%c0_255, %c41_256, %c0_257] : memref<1x100x40xbf16, #tpu.memory_space<vmem>>, vector<1x8x40xbf16>
    %240 = vector.shape_cast %239 : vector<1x8x40xbf16> to vector<8x40xbf16>
    %c1_258 = arith.constant 1 : index
    %c0_259 = arith.constant 0 : index
    %c0_260 = arith.constant 0 : index
    %241 = vector.load %arg2[%c1_258, %c0_259, %c0_260] : memref<9x40x128xbf16, #tpu.memory_space<vmem>>, vector<1x40x128xbf16>
    %242 = vector.shape_cast %241 : vector<1x40x128xbf16> to vector<40x128xbf16>
    %cst_261 = arith.constant dense<0.000000e+00> : vector<8x128xf32>
    %243 = tpu.matmul %240, %242, %cst_261 {dimension_numbers = #tpu.dot_dimension_numbers<[1], [0], [0], [1], [0, 0, 1, 1], [], []>} : vector<8x40xbf16>, vector<40x128xbf16>, vector<8x128xf32> -> vector<8x128xf32>
    %244 = arith.addf %238, %243 : vector<8x128xf32>
    %c0_262 = arith.constant 0 : index
    %c42_263 = arith.constant 42 : index
    %c0_264 = arith.constant 0 : index
    %245 = vector.load %arg1[%c0_262, %c42_263, %c0_264] : memref<1x100x40xbf16, #tpu.memory_space<vmem>>, vector<1x8x40xbf16>
    %246 = vector.shape_cast %245 : vector<1x8x40xbf16> to vector<8x40xbf16>
    %c2_265 = arith.constant 2 : index
    %c0_266 = arith.constant 0 : index
    %c0_267 = arith.constant 0 : index
    %247 = vector.load %arg2[%c2_265, %c0_266, %c0_267] : memref<9x40x128xbf16, #tpu.memory_space<vmem>>, vector<1x40x128xbf16>
    %248 = vector.shape_cast %247 : vector<1x40x128xbf16> to vector<40x128xbf16>
    %cst_268 = arith.constant dense<0.000000e+00> : vector<8x128xf32>
    %249 = tpu.matmul %246, %248, %cst_268 {dimension_numbers = #tpu.dot_dimension_numbers<[1], [0], [0], [1], [0, 0, 1, 1], [], []>} : vector<8x40xbf16>, vector<40x128xbf16>, vector<8x128xf32> -> vector<8x128xf32>
    %250 = arith.addf %244, %249 : vector<8x128xf32>
    %c0_269 = arith.constant 0 : index
    %c50_270 = arith.constant 50 : index
    %c0_271 = arith.constant 0 : index
    %251 = vector.load %arg1[%c0_269, %c50_270, %c0_271] : memref<1x100x40xbf16, #tpu.memory_space<vmem>>, vector<1x8x40xbf16>
    %252 = vector.shape_cast %251 : vector<1x8x40xbf16> to vector<8x40xbf16>
    %c3_272 = arith.constant 3 : index
    %c0_273 = arith.constant 0 : index
    %c0_274 = arith.constant 0 : index
    %253 = vector.load %arg2[%c3_272, %c0_273, %c0_274] : memref<9x40x128xbf16, #tpu.memory_space<vmem>>, vector<1x40x128xbf16>
    %254 = vector.shape_cast %253 : vector<1x40x128xbf16> to vector<40x128xbf16>
    %cst_275 = arith.constant dense<0.000000e+00> : vector<8x128xf32>
    %255 = tpu.matmul %252, %254, %cst_275 {dimension_numbers = #tpu.dot_dimension_numbers<[1], [0], [0], [1], [0, 0, 1, 1], [], []>} : vector<8x40xbf16>, vector<40x128xbf16>, vector<8x128xf32> -> vector<8x128xf32>
    %256 = arith.addf %250, %255 : vector<8x128xf32>
    %c0_276 = arith.constant 0 : index
    %c51_277 = arith.constant 51 : index
    %c0_278 = arith.constant 0 : index
    %257 = vector.load %arg1[%c0_276, %c51_277, %c0_278] : memref<1x100x40xbf16, #tpu.memory_space<vmem>>, vector<1x8x40xbf16>
    %258 = vector.shape_cast %257 : vector<1x8x40xbf16> to vector<8x40xbf16>
    %c4_279 = arith.constant 4 : index
    %c0_280 = arith.constant 0 : index
    %c0_281 = arith.constant 0 : index
    %259 = vector.load %arg2[%c4_279, %c0_280, %c0_281] : memref<9x40x128xbf16, #tpu.memory_space<vmem>>, vector<1x40x128xbf16>
    %260 = vector.shape_cast %259 : vector<1x40x128xbf16> to vector<40x128xbf16>
    %cst_282 = arith.constant dense<0.000000e+00> : vector<8x128xf32>
    %261 = tpu.matmul %258, %260, %cst_282 {dimension_numbers = #tpu.dot_dimension_numbers<[1], [0], [0], [1], [0, 0, 1, 1], [], []>} : vector<8x40xbf16>, vector<40x128xbf16>, vector<8x128xf32> -> vector<8x128xf32>
    %262 = arith.addf %256, %261 : vector<8x128xf32>
    %c0_283 = arith.constant 0 : index
    %c52_284 = arith.constant 52 : index
    %c0_285 = arith.constant 0 : index
    %263 = vector.load %arg1[%c0_283, %c52_284, %c0_285] : memref<1x100x40xbf16, #tpu.memory_space<vmem>>, vector<1x8x40xbf16>
    %264 = vector.shape_cast %263 : vector<1x8x40xbf16> to vector<8x40xbf16>
    %c5_286 = arith.constant 5 : index
    %c0_287 = arith.constant 0 : index
    %c0_288 = arith.constant 0 : index
    %265 = vector.load %arg2[%c5_286, %c0_287, %c0_288] : memref<9x40x128xbf16, #tpu.memory_space<vmem>>, vector<1x40x128xbf16>
    %266 = vector.shape_cast %265 : vector<1x40x128xbf16> to vector<40x128xbf16>
    %cst_289 = arith.constant dense<0.000000e+00> : vector<8x128xf32>
    %267 = tpu.matmul %264, %266, %cst_289 {dimension_numbers = #tpu.dot_dimension_numbers<[1], [0], [0], [1], [0, 0, 1, 1], [], []>} : vector<8x40xbf16>, vector<40x128xbf16>, vector<8x128xf32> -> vector<8x128xf32>
    %268 = arith.addf %262, %267 : vector<8x128xf32>
    %c0_290 = arith.constant 0 : index
    %c60 = arith.constant 60 : index
    %c0_291 = arith.constant 0 : index
    %269 = vector.load %arg1[%c0_290, %c60, %c0_291] : memref<1x100x40xbf16, #tpu.memory_space<vmem>>, vector<1x8x40xbf16>
    %270 = vector.shape_cast %269 : vector<1x8x40xbf16> to vector<8x40xbf16>
    %c6_292 = arith.constant 6 : index
    %c0_293 = arith.constant 0 : index
    %c0_294 = arith.constant 0 : index
    %271 = vector.load %arg2[%c6_292, %c0_293, %c0_294] : memref<9x40x128xbf16, #tpu.memory_space<vmem>>, vector<1x40x128xbf16>
    %272 = vector.shape_cast %271 : vector<1x40x128xbf16> to vector<40x128xbf16>
    %cst_295 = arith.constant dense<0.000000e+00> : vector<8x128xf32>
    %273 = tpu.matmul %270, %272, %cst_295 {dimension_numbers = #tpu.dot_dimension_numbers<[1], [0], [0], [1], [0, 0, 1, 1], [], []>} : vector<8x40xbf16>, vector<40x128xbf16>, vector<8x128xf32> -> vector<8x128xf32>
    %274 = arith.addf %268, %273 : vector<8x128xf32>
    %c0_296 = arith.constant 0 : index
    %c61 = arith.constant 61 : index
    %c0_297 = arith.constant 0 : index
    %275 = vector.load %arg1[%c0_296, %c61, %c0_297] : memref<1x100x40xbf16, #tpu.memory_space<vmem>>, vector<1x8x40xbf16>
    %276 = vector.shape_cast %275 : vector<1x8x40xbf16> to vector<8x40xbf16>
    %c7_298 = arith.constant 7 : index
    %c0_299 = arith.constant 0 : index
    %c0_300 = arith.constant 0 : index
    %277 = vector.load %arg2[%c7_298, %c0_299, %c0_300] : memref<9x40x128xbf16, #tpu.memory_space<vmem>>, vector<1x40x128xbf16>
    %278 = vector.shape_cast %277 : vector<1x40x128xbf16> to vector<40x128xbf16>
    %cst_301 = arith.constant dense<0.000000e+00> : vector<8x128xf32>
    %279 = tpu.matmul %276, %278, %cst_301 {dimension_numbers = #tpu.dot_dimension_numbers<[1], [0], [0], [1], [0, 0, 1, 1], [], []>} : vector<8x40xbf16>, vector<40x128xbf16>, vector<8x128xf32> -> vector<8x128xf32>
    %280 = arith.addf %274, %279 : vector<8x128xf32>
    %c0_302 = arith.constant 0 : index
    %c62 = arith.constant 62 : index
    %c0_303 = arith.constant 0 : index
    %281 = vector.load %arg1[%c0_302, %c62, %c0_303] : memref<1x100x40xbf16, #tpu.memory_space<vmem>>, vector<1x8x40xbf16>
    %282 = vector.shape_cast %281 : vector<1x8x40xbf16> to vector<8x40xbf16>
    %c8_304 = arith.constant 8 : index
    %c0_305 = arith.constant 0 : index
    %c0_306 = arith.constant 0 : index
    %283 = vector.load %arg2[%c8_304, %c0_305, %c0_306] : memref<9x40x128xbf16, #tpu.memory_space<vmem>>, vector<1x40x128xbf16>
    %284 = vector.shape_cast %283 : vector<1x40x128xbf16> to vector<40x128xbf16>
    %cst_307 = arith.constant dense<0.000000e+00> : vector<8x128xf32>
    %285 = tpu.matmul %282, %284, %cst_307 {dimension_numbers = #tpu.dot_dimension_numbers<[1], [0], [0], [1], [0, 0, 1, 1], [], []>} : vector<8x40xbf16>, vector<40x128xbf16>, vector<8x128xf32> -> vector<8x128xf32>
    %286 = arith.addf %280, %285 : vector<8x128xf32>
    %c0_308 = arith.constant 0 : index
    %c4_309 = arith.constant 4 : index
    %c0_310 = arith.constant 0 : index
    %c0_311 = arith.constant 0 : index
    %287 = vector.load %arg3[%c0_308, %c4_309, %c0_310, %c0_311] : memref<1x8x8x128xf32, #tpu.memory_space<vmem>>, vector<1x1x8x128xf32>
    %288 = vector.shape_cast %287 : vector<1x1x8x128xf32> to vector<8x128xf32>
    %289 = vector.shape_cast %286 : vector<8x128xf32> to vector<1x1x8x128xf32>
    tpu.vector_store %arg3[%c0_308, %c4_309, %c0_310, %c0_311], %289 {strides = array<i32>} : memref<1x8x8x128xf32, #tpu.memory_space<vmem>>, vector<1x1x8x128xf32>,
    %cst_312 = arith.constant 0.000000e+00 : f32
    %290 = vector.broadcast %cst_312 : f32 to vector<8x128xf32>
    %c0_313 = arith.constant 0 : index
    %c50_314 = arith.constant 50 : index
    %c0_315 = arith.constant 0 : index
    %291 = vector.load %arg1[%c0_313, %c50_314, %c0_315] : memref<1x100x40xbf16, #tpu.memory_space<vmem>>, vector<1x8x40xbf16>
    %292 = vector.shape_cast %291 : vector<1x8x40xbf16> to vector<8x40xbf16>
    %c0_316 = arith.constant 0 : index
    %c0_317 = arith.constant 0 : index
    %c0_318 = arith.constant 0 : index
    %293 = vector.load %arg2[%c0_316, %c0_317, %c0_318] : memref<9x40x128xbf16, #tpu.memory_space<vmem>>, vector<1x40x128xbf16>
    %294 = vector.shape_cast %293 : vector<1x40x128xbf16> to vector<40x128xbf16>
    %cst_319 = arith.constant dense<0.000000e+00> : vector<8x128xf32>
    %295 = tpu.matmul %292, %294, %cst_319 {dimension_numbers = #tpu.dot_dimension_numbers<[1], [0], [0], [1], [0, 0, 1, 1], [], []>} : vector<8x40xbf16>, vector<40x128xbf16>, vector<8x128xf32> -> vector<8x128xf32>
    %296 = arith.addf %290, %295 : vector<8x128xf32>
    %c0_320 = arith.constant 0 : index
    %c51_321 = arith.constant 51 : index
    %c0_322 = arith.constant 0 : index
    %297 = vector.load %arg1[%c0_320, %c51_321, %c0_322] : memref<1x100x40xbf16, #tpu.memory_space<vmem>>, vector<1x8x40xbf16>
    %298 = vector.shape_cast %297 : vector<1x8x40xbf16> to vector<8x40xbf16>
    %c1_323 = arith.constant 1 : index
    %c0_324 = arith.constant 0 : index
    %c0_325 = arith.constant 0 : index
    %299 = vector.load %arg2[%c1_323, %c0_324, %c0_325] : memref<9x40x128xbf16, #tpu.memory_space<vmem>>, vector<1x40x128xbf16>
    %300 = vector.shape_cast %299 : vector<1x40x128xbf16> to vector<40x128xbf16>
    %cst_326 = arith.constant dense<0.000000e+00> : vector<8x128xf32>
    %301 = tpu.matmul %298, %300, %cst_326 {dimension_numbers = #tpu.dot_dimension_numbers<[1], [0], [0], [1], [0, 0, 1, 1], [], []>} : vector<8x40xbf16>, vector<40x128xbf16>, vector<8x128xf32> -> vector<8x128xf32>
    %302 = arith.addf %296, %301 : vector<8x128xf32>
    %c0_327 = arith.constant 0 : index
    %c52_328 = arith.constant 52 : index
    %c0_329 = arith.constant 0 : index
    %303 = vector.load %arg1[%c0_327, %c52_328, %c0_329] : memref<1x100x40xbf16, #tpu.memory_space<vmem>>, vector<1x8x40xbf16>
    %304 = vector.shape_cast %303 : vector<1x8x40xbf16> to vector<8x40xbf16>
    %c2_330 = arith.constant 2 : index
    %c0_331 = arith.constant 0 : index
    %c0_332 = arith.constant 0 : index
    %305 = vector.load %arg2[%c2_330, %c0_331, %c0_332] : memref<9x40x128xbf16, #tpu.memory_space<vmem>>, vector<1x40x128xbf16>
    %306 = vector.shape_cast %305 : vector<1x40x128xbf16> to vector<40x128xbf16>
    %cst_333 = arith.constant dense<0.000000e+00> : vector<8x128xf32>
    %307 = tpu.matmul %304, %306, %cst_333 {dimension_numbers = #tpu.dot_dimension_numbers<[1], [0], [0], [1], [0, 0, 1, 1], [], []>} : vector<8x40xbf16>, vector<40x128xbf16>, vector<8x128xf32> -> vector<8x128xf32>
    %308 = arith.addf %302, %307 : vector<8x128xf32>
    %c0_334 = arith.constant 0 : index
    %c60_335 = arith.constant 60 : index
    %c0_336 = arith.constant 0 : index
    %309 = vector.load %arg1[%c0_334, %c60_335, %c0_336] : memref<1x100x40xbf16, #tpu.memory_space<vmem>>, vector<1x8x40xbf16>
    %310 = vector.shape_cast %309 : vector<1x8x40xbf16> to vector<8x40xbf16>
    %c3_337 = arith.constant 3 : index
    %c0_338 = arith.constant 0 : index
    %c0_339 = arith.constant 0 : index
    %311 = vector.load %arg2[%c3_337, %c0_338, %c0_339] : memref<9x40x128xbf16, #tpu.memory_space<vmem>>, vector<1x40x128xbf16>
    %312 = vector.shape_cast %311 : vector<1x40x128xbf16> to vector<40x128xbf16>
    %cst_340 = arith.constant dense<0.000000e+00> : vector<8x128xf32>
    %313 = tpu.matmul %310, %312, %cst_340 {dimension_numbers = #tpu.dot_dimension_numbers<[1], [0], [0], [1], [0, 0, 1, 1], [], []>} : vector<8x40xbf16>, vector<40x128xbf16>, vector<8x128xf32> -> vector<8x128xf32>
    %314 = arith.addf %308, %313 : vector<8x128xf32>
    %c0_341 = arith.constant 0 : index
    %c61_342 = arith.constant 61 : index
    %c0_343 = arith.constant 0 : index
    %315 = vector.load %arg1[%c0_341, %c61_342, %c0_343] : memref<1x100x40xbf16, #tpu.memory_space<vmem>>, vector<1x8x40xbf16>
    %316 = vector.shape_cast %315 : vector<1x8x40xbf16> to vector<8x40xbf16>
    %c4_344 = arith.constant 4 : index
    %c0_345 = arith.constant 0 : index
    %c0_346 = arith.constant 0 : index
    %317 = vector.load %arg2[%c4_344, %c0_345, %c0_346] : memref<9x40x128xbf16, #tpu.memory_space<vmem>>, vector<1x40x128xbf16>
    %318 = vector.shape_cast %317 : vector<1x40x128xbf16> to vector<40x128xbf16>
    %cst_347 = arith.constant dense<0.000000e+00> : vector<8x128xf32>
    %319 = tpu.matmul %316, %318, %cst_347 {dimension_numbers = #tpu.dot_dimension_numbers<[1], [0], [0], [1], [0, 0, 1, 1], [], []>} : vector<8x40xbf16>, vector<40x128xbf16>, vector<8x128xf32> -> vector<8x128xf32>
    %320 = arith.addf %314, %319 : vector<8x128xf32>
    %c0_348 = arith.constant 0 : index
    %c62_349 = arith.constant 62 : index
    %c0_350 = arith.constant 0 : index
    %321 = vector.load %arg1[%c0_348, %c62_349, %c0_350] : memref<1x100x40xbf16, #tpu.memory_space<vmem>>, vector<1x8x40xbf16>
    %322 = vector.shape_cast %321 : vector<1x8x40xbf16> to vector<8x40xbf16>
    %c5_351 = arith.constant 5 : index
    %c0_352 = arith.constant 0 : index
    %c0_353 = arith.constant 0 : index
    %323 = vector.load %arg2[%c5_351, %c0_352, %c0_353] : memref<9x40x128xbf16, #tpu.memory_space<vmem>>, vector<1x40x128xbf16>
    %324 = vector.shape_cast %323 : vector<1x40x128xbf16> to vector<40x128xbf16>
    %cst_354 = arith.constant dense<0.000000e+00> : vector<8x128xf32>
    %325 = tpu.matmul %322, %324, %cst_354 {dimension_numbers = #tpu.dot_dimension_numbers<[1], [0], [0], [1], [0, 0, 1, 1], [], []>} : vector<8x40xbf16>, vector<40x128xbf16>, vector<8x128xf32> -> vector<8x128xf32>
    %326 = arith.addf %320, %325 : vector<8x128xf32>
    %c0_355 = arith.constant 0 : index
    %c70 = arith.constant 70 : index
    %c0_356 = arith.constant 0 : index
    %327 = vector.load %arg1[%c0_355, %c70, %c0_356] : memref<1x100x40xbf16, #tpu.memory_space<vmem>>, vector<1x8x40xbf16>
    %328 = vector.shape_cast %327 : vector<1x8x40xbf16> to vector<8x40xbf16>
    %c6_357 = arith.constant 6 : index
    %c0_358 = arith.constant 0 : index
    %c0_359 = arith.constant 0 : index
    %329 = vector.load %arg2[%c6_357, %c0_358, %c0_359] : memref<9x40x128xbf16, #tpu.memory_space<vmem>>, vector<1x40x128xbf16>
    %330 = vector.shape_cast %329 : vector<1x40x128xbf16> to vector<40x128xbf16>
    %cst_360 = arith.constant dense<0.000000e+00> : vector<8x128xf32>
    %331 = tpu.matmul %328, %330, %cst_360 {dimension_numbers = #tpu.dot_dimension_numbers<[1], [0], [0], [1], [0, 0, 1, 1], [], []>} : vector<8x40xbf16>, vector<40x128xbf16>, vector<8x128xf32> -> vector<8x128xf32>
    %332 = arith.addf %326, %331 : vector<8x128xf32>
    %c0_361 = arith.constant 0 : index
    %c71 = arith.constant 71 : index
    %c0_362 = arith.constant 0 : index
    %333 = vector.load %arg1[%c0_361, %c71, %c0_362] : memref<1x100x40xbf16, #tpu.memory_space<vmem>>, vector<1x8x40xbf16>
    %334 = vector.shape_cast %333 : vector<1x8x40xbf16> to vector<8x40xbf16>
    %c7_363 = arith.constant 7 : index
    %c0_364 = arith.constant 0 : index
    %c0_365 = arith.constant 0 : index
    %335 = vector.load %arg2[%c7_363, %c0_364, %c0_365] : memref<9x40x128xbf16, #tpu.memory_space<vmem>>, vector<1x40x128xbf16>
    %336 = vector.shape_cast %335 : vector<1x40x128xbf16> to vector<40x128xbf16>
    %cst_366 = arith.constant dense<0.000000e+00> : vector<8x128xf32>
    %337 = tpu.matmul %334, %336, %cst_366 {dimension_numbers = #tpu.dot_dimension_numbers<[1], [0], [0], [1], [0, 0, 1, 1], [], []>} : vector<8x40xbf16>, vector<40x128xbf16>, vector<8x128xf32> -> vector<8x128xf32>
    %338 = arith.addf %332, %337 : vector<8x128xf32>
    %c0_367 = arith.constant 0 : index
    %c72 = arith.constant 72 : index
    %c0_368 = arith.constant 0 : index
    %339 = vector.load %arg1[%c0_367, %c72, %c0_368] : memref<1x100x40xbf16, #tpu.memory_space<vmem>>, vector<1x8x40xbf16>
    %340 = vector.shape_cast %339 : vector<1x8x40xbf16> to vector<8x40xbf16>
    %c8_369 = arith.constant 8 : index
    %c0_370 = arith.constant 0 : index
    %c0_371 = arith.constant 0 : index
    %341 = vector.load %arg2[%c8_369, %c0_370, %c0_371] : memref<9x40x128xbf16, #tpu.memory_space<vmem>>, vector<1x40x128xbf16>
    %342 = vector.shape_cast %341 : vector<1x40x128xbf16> to vector<40x128xbf16>
    %cst_372 = arith.constant dense<0.000000e+00> : vector<8x128xf32>
    %343 = tpu.matmul %340, %342, %cst_372 {dimension_numbers = #tpu.dot_dimension_numbers<[1], [0], [0], [1], [0, 0, 1, 1], [], []>} : vector<8x40xbf16>, vector<40x128xbf16>, vector<8x128xf32> -> vector<8x128xf32>
    %344 = arith.addf %338, %343 : vector<8x128xf32>
    %c0_373 = arith.constant 0 : index
    %c5_374 = arith.constant 5 : index
    %c0_375 = arith.constant 0 : index
    %c0_376 = arith.constant 0 : index
    %345 = vector.load %arg3[%c0_373, %c5_374, %c0_375, %c0_376] : memref<1x8x8x128xf32, #tpu.memory_space<vmem>>, vector<1x1x8x128xf32>
    %346 = vector.shape_cast %345 : vector<1x1x8x128xf32> to vector<8x128xf32>
    %347 = vector.shape_cast %344 : vector<8x128xf32> to vector<1x1x8x128xf32>
    tpu.vector_store %arg3[%c0_373, %c5_374, %c0_375, %c0_376], %347 {strides = array<i32>} : memref<1x8x8x128xf32, #tpu.memory_space<vmem>>, vector<1x1x8x128xf32>,
    %cst_377 = arith.constant 0.000000e+00 : f32
    %348 = vector.broadcast %cst_377 : f32 to vector<8x128xf32>
    %c0_378 = arith.constant 0 : index
    %c60_379 = arith.constant 60 : index
    %c0_380 = arith.constant 0 : index
    %349 = vector.load %arg1[%c0_378, %c60_379, %c0_380] : memref<1x100x40xbf16, #tpu.memory_space<vmem>>, vector<1x8x40xbf16>
    %350 = vector.shape_cast %349 : vector<1x8x40xbf16> to vector<8x40xbf16>
    %c0_381 = arith.constant 0 : index
    %c0_382 = arith.constant 0 : index
    %c0_383 = arith.constant 0 : index
    %351 = vector.load %arg2[%c0_381, %c0_382, %c0_383] : memref<9x40x128xbf16, #tpu.memory_space<vmem>>, vector<1x40x128xbf16>
    %352 = vector.shape_cast %351 : vector<1x40x128xbf16> to vector<40x128xbf16>
    %cst_384 = arith.constant dense<0.000000e+00> : vector<8x128xf32>
    %353 = tpu.matmul %350, %352, %cst_384 {dimension_numbers = #tpu.dot_dimension_numbers<[1], [0], [0], [1], [0, 0, 1, 1], [], []>} : vector<8x40xbf16>, vector<40x128xbf16>, vector<8x128xf32> -> vector<8x128xf32>
    %354 = arith.addf %348, %353 : vector<8x128xf32>
    %c0_385 = arith.constant 0 : index
    %c61_386 = arith.constant 61 : index
    %c0_387 = arith.constant 0 : index
    %355 = vector.load %arg1[%c0_385, %c61_386, %c0_387] : memref<1x100x40xbf16, #tpu.memory_space<vmem>>, vector<1x8x40xbf16>
    %356 = vector.shape_cast %355 : vector<1x8x40xbf16> to vector<8x40xbf16>
    %c1_388 = arith.constant 1 : index
    %c0_389 = arith.constant 0 : index
    %c0_390 = arith.constant 0 : index
    %357 = vector.load %arg2[%c1_388, %c0_389, %c0_390] : memref<9x40x128xbf16, #tpu.memory_space<vmem>>, vector<1x40x128xbf16>
    %358 = vector.shape_cast %357 : vector<1x40x128xbf16> to vector<40x128xbf16>
    %cst_391 = arith.constant dense<0.000000e+00> : vector<8x128xf32>
    %359 = tpu.matmul %356, %358, %cst_391 {dimension_numbers = #tpu.dot_dimension_numbers<[1], [0], [0], [1], [0, 0, 1, 1], [], []>} : vector<8x40xbf16>, vector<40x128xbf16>, vector<8x128xf32> -> vector<8x128xf32>
    %360 = arith.addf %354, %359 : vector<8x128xf32>
    %c0_392 = arith.constant 0 : index
    %c62_393 = arith.constant 62 : index
    %c0_394 = arith.constant 0 : index
    %361 = vector.load %arg1[%c0_392, %c62_393, %c0_394] : memref<1x100x40xbf16, #tpu.memory_space<vmem>>, vector<1x8x40xbf16>
    %362 = vector.shape_cast %361 : vector<1x8x40xbf16> to vector<8x40xbf16>
    %c2_395 = arith.constant 2 : index
    %c0_396 = arith.constant 0 : index
    %c0_397 = arith.constant 0 : index
    %363 = vector.load %arg2[%c2_395, %c0_396, %c0_397] : memref<9x40x128xbf16, #tpu.memory_space<vmem>>, vector<1x40x128xbf16>
    %364 = vector.shape_cast %363 : vector<1x40x128xbf16> to vector<40x128xbf16>
    %cst_398 = arith.constant dense<0.000000e+00> : vector<8x128xf32>
    %365 = tpu.matmul %362, %364, %cst_398 {dimension_numbers = #tpu.dot_dimension_numbers<[1], [0], [0], [1], [0, 0, 1, 1], [], []>} : vector<8x40xbf16>, vector<40x128xbf16>, vector<8x128xf32> -> vector<8x128xf32>
    %366 = arith.addf %360, %365 : vector<8x128xf32>
    %c0_399 = arith.constant 0 : index
    %c70_400 = arith.constant 70 : index
    %c0_401 = arith.constant 0 : index
    %367 = vector.load %arg1[%c0_399, %c70_400, %c0_401] : memref<1x100x40xbf16, #tpu.memory_space<vmem>>, vector<1x8x40xbf16>
    %368 = vector.shape_cast %367 : vector<1x8x40xbf16> to vector<8x40xbf16>
    %c3_402 = arith.constant 3 : index
    %c0_403 = arith.constant 0 : index
    %c0_404 = arith.constant 0 : index
    %369 = vector.load %arg2[%c3_402, %c0_403, %c0_404] : memref<9x40x128xbf16, #tpu.memory_space<vmem>>, vector<1x40x128xbf16>
    %370 = vector.shape_cast %369 : vector<1x40x128xbf16> to vector<40x128xbf16>
    %cst_405 = arith.constant dense<0.000000e+00> : vector<8x128xf32>
    %371 = tpu.matmul %368, %370, %cst_405 {dimension_numbers = #tpu.dot_dimension_numbers<[1], [0], [0], [1], [0, 0, 1, 1], [], []>} : vector<8x40xbf16>, vector<40x128xbf16>, vector<8x128xf32> -> vector<8x128xf32>
    %372 = arith.addf %366, %371 : vector<8x128xf32>
    %c0_406 = arith.constant 0 : index
    %c71_407 = arith.constant 71 : index
    %c0_408 = arith.constant 0 : index
    %373 = vector.load %arg1[%c0_406, %c71_407, %c0_408] : memref<1x100x40xbf16, #tpu.memory_space<vmem>>, vector<1x8x40xbf16>
    %374 = vector.shape_cast %373 : vector<1x8x40xbf16> to vector<8x40xbf16>
    %c4_409 = arith.constant 4 : index
    %c0_410 = arith.constant 0 : index
    %c0_411 = arith.constant 0 : index
    %375 = vector.load %arg2[%c4_409, %c0_410, %c0_411] : memref<9x40x128xbf16, #tpu.memory_space<vmem>>, vector<1x40x128xbf16>
    %376 = vector.shape_cast %375 : vector<1x40x128xbf16> to vector<40x128xbf16>
    %cst_412 = arith.constant dense<0.000000e+00> : vector<8x128xf32>
    %377 = tpu.matmul %374, %376, %cst_412 {dimension_numbers = #tpu.dot_dimension_numbers<[1], [0], [0], [1], [0, 0, 1, 1], [], []>} : vector<8x40xbf16>, vector<40x128xbf16>, vector<8x128xf32> -> vector<8x128xf32>
    %378 = arith.addf %372, %377 : vector<8x128xf32>
    %c0_413 = arith.constant 0 : index
    %c72_414 = arith.constant 72 : index
    %c0_415 = arith.constant 0 : index
    %379 = vector.load %arg1[%c0_413, %c72_414, %c0_415] : memref<1x100x40xbf16, #tpu.memory_space<vmem>>, vector<1x8x40xbf16>
    %380 = vector.shape_cast %379 : vector<1x8x40xbf16> to vector<8x40xbf16>
    %c5_416 = arith.constant 5 : index
    %c0_417 = arith.constant 0 : index
    %c0_418 = arith.constant 0 : index
    %381 = vector.load %arg2[%c5_416, %c0_417, %c0_418] : memref<9x40x128xbf16, #tpu.memory_space<vmem>>, vector<1x40x128xbf16>
    %382 = vector.shape_cast %381 : vector<1x40x128xbf16> to vector<40x128xbf16>
    %cst_419 = arith.constant dense<0.000000e+00> : vector<8x128xf32>
    %383 = tpu.matmul %380, %382, %cst_419 {dimension_numbers = #tpu.dot_dimension_numbers<[1], [0], [0], [1], [0, 0, 1, 1], [], []>} : vector<8x40xbf16>, vector<40x128xbf16>, vector<8x128xf32> -> vector<8x128xf32>
    %384 = arith.addf %378, %383 : vector<8x128xf32>
    %c0_420 = arith.constant 0 : index
    %c80 = arith.constant 80 : index
    %c0_421 = arith.constant 0 : index
    %385 = vector.load %arg1[%c0_420, %c80, %c0_421] : memref<1x100x40xbf16, #tpu.memory_space<vmem>>, vector<1x8x40xbf16>
    %386 = vector.shape_cast %385 : vector<1x8x40xbf16> to vector<8x40xbf16>
    %c6_422 = arith.constant 6 : index
    %c0_423 = arith.constant 0 : index
    %c0_424 = arith.constant 0 : index
    %387 = vector.load %arg2[%c6_422, %c0_423, %c0_424] : memref<9x40x128xbf16, #tpu.memory_space<vmem>>, vector<1x40x128xbf16>
    %388 = vector.shape_cast %387 : vector<1x40x128xbf16> to vector<40x128xbf16>
    %cst_425 = arith.constant dense<0.000000e+00> : vector<8x128xf32>
    %389 = tpu.matmul %386, %388, %cst_425 {dimension_numbers = #tpu.dot_dimension_numbers<[1], [0], [0], [1], [0, 0, 1, 1], [], []>} : vector<8x40xbf16>, vector<40x128xbf16>, vector<8x128xf32> -> vector<8x128xf32>
    %390 = arith.addf %384, %389 : vector<8x128xf32>
    %c0_426 = arith.constant 0 : index
    %c81 = arith.constant 81 : index
    %c0_427 = arith.constant 0 : index
    %391 = vector.load %arg1[%c0_426, %c81, %c0_427] : memref<1x100x40xbf16, #tpu.memory_space<vmem>>, vector<1x8x40xbf16>
    %392 = vector.shape_cast %391 : vector<1x8x40xbf16> to vector<8x40xbf16>
    %c7_428 = arith.constant 7 : index
    %c0_429 = arith.constant 0 : index
    %c0_430 = arith.constant 0 : index
    %393 = vector.load %arg2[%c7_428, %c0_429, %c0_430] : memref<9x40x128xbf16, #tpu.memory_space<vmem>>, vector<1x40x128xbf16>
    %394 = vector.shape_cast %393 : vector<1x40x128xbf16> to vector<40x128xbf16>
    %cst_431 = arith.constant dense<0.000000e+00> : vector<8x128xf32>
    %395 = tpu.matmul %392, %394, %cst_431 {dimension_numbers = #tpu.dot_dimension_numbers<[1], [0], [0], [1], [0, 0, 1, 1], [], []>} : vector<8x40xbf16>, vector<40x128xbf16>, vector<8x128xf32> -> vector<8x128xf32>
    %396 = arith.addf %390, %395 : vector<8x128xf32>
    %c0_432 = arith.constant 0 : index
    %c82 = arith.constant 82 : index
    %c0_433 = arith.constant 0 : index
    %397 = vector.load %arg1[%c0_432, %c82, %c0_433] : memref<1x100x40xbf16, #tpu.memory_space<vmem>>, vector<1x8x40xbf16>
    %398 = vector.shape_cast %397 : vector<1x8x40xbf16> to vector<8x40xbf16>
    %c8_434 = arith.constant 8 : index
    %c0_435 = arith.constant 0 : index
    %c0_436 = arith.constant 0 : index
    %399 = vector.load %arg2[%c8_434, %c0_435, %c0_436] : memref<9x40x128xbf16, #tpu.memory_space<vmem>>, vector<1x40x128xbf16>
    %400 = vector.shape_cast %399 : vector<1x40x128xbf16> to vector<40x128xbf16>
    %cst_437 = arith.constant dense<0.000000e+00> : vector<8x128xf32>
    %401 = tpu.matmul %398, %400, %cst_437 {dimension_numbers = #tpu.dot_dimension_numbers<[1], [0], [0], [1], [0, 0, 1, 1], [], []>} : vector<8x40xbf16>, vector<40x128xbf16>, vector<8x128xf32> -> vector<8x128xf32>
    %402 = arith.addf %396, %401 : vector<8x128xf32>
    %c0_438 = arith.constant 0 : index
    %c6_439 = arith.constant 6 : index
    %c0_440 = arith.constant 0 : index
    %c0_441 = arith.constant 0 : index
    %403 = vector.load %arg3[%c0_438, %c6_439, %c0_440, %c0_441] : memref<1x8x8x128xf32, #tpu.memory_space<vmem>>, vector<1x1x8x128xf32>
    %404 = vector.shape_cast %403 : vector<1x1x8x128xf32> to vector<8x128xf32>
    %405 = vector.shape_cast %402 : vector<8x128xf32> to vector<1x1x8x128xf32>
    tpu.vector_store %arg3[%c0_438, %c6_439, %c0_440, %c0_441], %405 {strides = array<i32>} : memref<1x8x8x128xf32, #tpu.memory_space<vmem>>, vector<1x1x8x128xf32>,
    %cst_442 = arith.constant 0.000000e+00 : f32
    %406 = vector.broadcast %cst_442 : f32 to vector<8x128xf32>
    %c0_443 = arith.constant 0 : index
    %c70_444 = arith.constant 70 : index
    %c0_445 = arith.constant 0 : index
    %407 = vector.load %arg1[%c0_443, %c70_444, %c0_445] : memref<1x100x40xbf16, #tpu.memory_space<vmem>>, vector<1x8x40xbf16>
    %408 = vector.shape_cast %407 : vector<1x8x40xbf16> to vector<8x40xbf16>
    %c0_446 = arith.constant 0 : index
    %c0_447 = arith.constant 0 : index
    %c0_448 = arith.constant 0 : index
    %409 = vector.load %arg2[%c0_446, %c0_447, %c0_448] : memref<9x40x128xbf16, #tpu.memory_space<vmem>>, vector<1x40x128xbf16>
    %410 = vector.shape_cast %409 : vector<1x40x128xbf16> to vector<40x128xbf16>
    %cst_449 = arith.constant dense<0.000000e+00> : vector<8x128xf32>
    %411 = tpu.matmul %408, %410, %cst_449 {dimension_numbers = #tpu.dot_dimension_numbers<[1], [0], [0], [1], [0, 0, 1, 1], [], []>} : vector<8x40xbf16>, vector<40x128xbf16>, vector<8x128xf32> -> vector<8x128xf32>
    %412 = arith.addf %406, %411 : vector<8x128xf32>
    %c0_450 = arith.constant 0 : index
    %c71_451 = arith.constant 71 : index
    %c0_452 = arith.constant 0 : index
    %413 = vector.load %arg1[%c0_450, %c71_451, %c0_452] : memref<1x100x40xbf16, #tpu.memory_space<vmem>>, vector<1x8x40xbf16>
    %414 = vector.shape_cast %413 : vector<1x8x40xbf16> to vector<8x40xbf16>
    %c1_453 = arith.constant 1 : index
    %c0_454 = arith.constant 0 : index
    %c0_455 = arith.constant 0 : index
    %415 = vector.load %arg2[%c1_453, %c0_454, %c0_455] : memref<9x40x128xbf16, #tpu.memory_space<vmem>>, vector<1x40x128xbf16>
    %416 = vector.shape_cast %415 : vector<1x40x128xbf16> to vector<40x128xbf16>
    %cst_456 = arith.constant dense<0.000000e+00> : vector<8x128xf32>
    %417 = tpu.matmul %414, %416, %cst_456 {dimension_numbers = #tpu.dot_dimension_numbers<[1], [0], [0], [1], [0, 0, 1, 1], [], []>} : vector<8x40xbf16>, vector<40x128xbf16>, vector<8x128xf32> -> vector<8x128xf32>
    %418 = arith.addf %412, %417 : vector<8x128xf32>
    %c0_457 = arith.constant 0 : index
    %c72_458 = arith.constant 72 : index
    %c0_459 = arith.constant 0 : index
    %419 = vector.load %arg1[%c0_457, %c72_458, %c0_459] : memref<1x100x40xbf16, #tpu.memory_space<vmem>>, vector<1x8x40xbf16>
    %420 = vector.shape_cast %419 : vector<1x8x40xbf16> to vector<8x40xbf16>
    %c2_460 = arith.constant 2 : index
    %c0_461 = arith.constant 0 : index
    %c0_462 = arith.constant 0 : index
    %421 = vector.load %arg2[%c2_460, %c0_461, %c0_462] : memref<9x40x128xbf16, #tpu.memory_space<vmem>>, vector<1x40x128xbf16>
    %422 = vector.shape_cast %421 : vector<1x40x128xbf16> to vector<40x128xbf16>
    %cst_463 = arith.constant dense<0.000000e+00> : vector<8x128xf32>
    %423 = tpu.matmul %420, %422, %cst_463 {dimension_numbers = #tpu.dot_dimension_numbers<[1], [0], [0], [1], [0, 0, 1, 1], [], []>} : vector<8x40xbf16>, vector<40x128xbf16>, vector<8x128xf32> -> vector<8x128xf32>
    %424 = arith.addf %418, %423 : vector<8x128xf32>
    %c0_464 = arith.constant 0 : index
    %c80_465 = arith.constant 80 : index
    %c0_466 = arith.constant 0 : index
    %425 = vector.load %arg1[%c0_464, %c80_465, %c0_466] : memref<1x100x40xbf16, #tpu.memory_space<vmem>>, vector<1x8x40xbf16>
    %426 = vector.shape_cast %425 : vector<1x8x40xbf16> to vector<8x40xbf16>
    %c3_467 = arith.constant 3 : index
    %c0_468 = arith.constant 0 : index
    %c0_469 = arith.constant 0 : index
    %427 = vector.load %arg2[%c3_467, %c0_468, %c0_469] : memref<9x40x128xbf16, #tpu.memory_space<vmem>>, vector<1x40x128xbf16>
    %428 = vector.shape_cast %427 : vector<1x40x128xbf16> to vector<40x128xbf16>
    %cst_470 = arith.constant dense<0.000000e+00> : vector<8x128xf32>
    %429 = tpu.matmul %426, %428, %cst_470 {dimension_numbers = #tpu.dot_dimension_numbers<[1], [0], [0], [1], [0, 0, 1, 1], [], []>} : vector<8x40xbf16>, vector<40x128xbf16>, vector<8x128xf32> -> vector<8x128xf32>
    %430 = arith.addf %424, %429 : vector<8x128xf32>
    %c0_471 = arith.constant 0 : index
    %c81_472 = arith.constant 81 : index
    %c0_473 = arith.constant 0 : index
    %431 = vector.load %arg1[%c0_471, %c81_472, %c0_473] : memref<1x100x40xbf16, #tpu.memory_space<vmem>>, vector<1x8x40xbf16>
    %432 = vector.shape_cast %431 : vector<1x8x40xbf16> to vector<8x40xbf16>
    %c4_474 = arith.constant 4 : index
    %c0_475 = arith.constant 0 : index
    %c0_476 = arith.constant 0 : index
    %433 = vector.load %arg2[%c4_474, %c0_475, %c0_476] : memref<9x40x128xbf16, #tpu.memory_space<vmem>>, vector<1x40x128xbf16>
    %434 = vector.shape_cast %433 : vector<1x40x128xbf16> to vector<40x128xbf16>
    %cst_477 = arith.constant dense<0.000000e+00> : vector<8x128xf32>
    %435 = tpu.matmul %432, %434, %cst_477 {dimension_numbers = #tpu.dot_dimension_numbers<[1], [0], [0], [1], [0, 0, 1, 1], [], []>} : vector<8x40xbf16>, vector<40x128xbf16>, vector<8x128xf32> -> vector<8x128xf32>
    %436 = arith.addf %430, %435 : vector<8x128xf32>
    %c0_478 = arith.constant 0 : index
    %c82_479 = arith.constant 82 : index
    %c0_480 = arith.constant 0 : index
    %437 = vector.load %arg1[%c0_478, %c82_479, %c0_480] : memref<1x100x40xbf16, #tpu.memory_space<vmem>>, vector<1x8x40xbf16>
    %438 = vector.shape_cast %437 : vector<1x8x40xbf16> to vector<8x40xbf16>
    %c5_481 = arith.constant 5 : index
    %c0_482 = arith.constant 0 : index
    %c0_483 = arith.constant 0 : index
    %439 = vector.load %arg2[%c5_481, %c0_482, %c0_483] : memref<9x40x128xbf16, #tpu.memory_space<vmem>>, vector<1x40x128xbf16>
    %440 = vector.shape_cast %439 : vector<1x40x128xbf16> to vector<40x128xbf16>
    %cst_484 = arith.constant dense<0.000000e+00> : vector<8x128xf32>
    %441 = tpu.matmul %438, %440, %cst_484 {dimension_numbers = #tpu.dot_dimension_numbers<[1], [0], [0], [1], [0, 0, 1, 1], [], []>} : vector<8x40xbf16>, vector<40x128xbf16>, vector<8x128xf32> -> vector<8x128xf32>
    %442 = arith.addf %436, %441 : vector<8x128xf32>
    %c0_485 = arith.constant 0 : index
    %c90 = arith.constant 90 : index
    %c0_486 = arith.constant 0 : index
    %443 = vector.load %arg1[%c0_485, %c90, %c0_486] : memref<1x100x40xbf16, #tpu.memory_space<vmem>>, vector<1x8x40xbf16>
    %444 = vector.shape_cast %443 : vector<1x8x40xbf16> to vector<8x40xbf16>
    %c6_487 = arith.constant 6 : index
    %c0_488 = arith.constant 0 : index
    %c0_489 = arith.constant 0 : index
    %445 = vector.load %arg2[%c6_487, %c0_488, %c0_489] : memref<9x40x128xbf16, #tpu.memory_space<vmem>>, vector<1x40x128xbf16>
    %446 = vector.shape_cast %445 : vector<1x40x128xbf16> to vector<40x128xbf16>
    %cst_490 = arith.constant dense<0.000000e+00> : vector<8x128xf32>
    %447 = tpu.matmul %444, %446, %cst_490 {dimension_numbers = #tpu.dot_dimension_numbers<[1], [0], [0], [1], [0, 0, 1, 1], [], []>} : vector<8x40xbf16>, vector<40x128xbf16>, vector<8x128xf32> -> vector<8x128xf32>
    %448 = arith.addf %442, %447 : vector<8x128xf32>
    %c0_491 = arith.constant 0 : index
    %c91 = arith.constant 91 : index
    %c0_492 = arith.constant 0 : index
    %449 = vector.load %arg1[%c0_491, %c91, %c0_492] : memref<1x100x40xbf16, #tpu.memory_space<vmem>>, vector<1x8x40xbf16>
    %450 = vector.shape_cast %449 : vector<1x8x40xbf16> to vector<8x40xbf16>
    %c7_493 = arith.constant 7 : index
    %c0_494 = arith.constant 0 : index
    %c0_495 = arith.constant 0 : index
    %451 = vector.load %arg2[%c7_493, %c0_494, %c0_495] : memref<9x40x128xbf16, #tpu.memory_space<vmem>>, vector<1x40x128xbf16>
    %452 = vector.shape_cast %451 : vector<1x40x128xbf16> to vector<40x128xbf16>
    %cst_496 = arith.constant dense<0.000000e+00> : vector<8x128xf32>
    %453 = tpu.matmul %450, %452, %cst_496 {dimension_numbers = #tpu.dot_dimension_numbers<[1], [0], [0], [1], [0, 0, 1, 1], [], []>} : vector<8x40xbf16>, vector<40x128xbf16>, vector<8x128xf32> -> vector<8x128xf32>
    %454 = arith.addf %448, %453 : vector<8x128xf32>
    %c0_497 = arith.constant 0 : index
    %c92 = arith.constant 92 : index
    %c0_498 = arith.constant 0 : index
    %455 = vector.load %arg1[%c0_497, %c92, %c0_498] : memref<1x100x40xbf16, #tpu.memory_space<vmem>>, vector<1x8x40xbf16>
    %456 = vector.shape_cast %455 : vector<1x8x40xbf16> to vector<8x40xbf16>
    %c8_499 = arith.constant 8 : index
    %c0_500 = arith.constant 0 : index
    %c0_501 = arith.constant 0 : index
    %457 = vector.load %arg2[%c8_499, %c0_500, %c0_501] : memref<9x40x128xbf16, #tpu.memory_space<vmem>>, vector<1x40x128xbf16>
    %458 = vector.shape_cast %457 : vector<1x40x128xbf16> to vector<40x128xbf16>
    %cst_502 = arith.constant dense<0.000000e+00> : vector<8x128xf32>
    %459 = tpu.matmul %456, %458, %cst_502 {dimension_numbers = #tpu.dot_dimension_numbers<[1], [0], [0], [1], [0, 0, 1, 1], [], []>} : vector<8x40xbf16>, vector<40x128xbf16>, vector<8x128xf32> -> vector<8x128xf32>
    %460 = arith.addf %454, %459 : vector<8x128xf32>
    %c0_503 = arith.constant 0 : index
    %c7_504 = arith.constant 7 : index
    %c0_505 = arith.constant 0 : index
    %c0_506 = arith.constant 0 : index
    %461 = vector.load %arg3[%c0_503, %c7_504, %c0_505, %c0_506] : memref<1x8x8x128xf32, #tpu.memory_space<vmem>>, vector<1x1x8x128xf32>
    %462 = vector.shape_cast %461 : vector<1x1x8x128xf32> to vector<8x128xf32>
    %463 = vector.shape_cast %460 : vector<8x128xf32> to vector<1x1x8x128xf32>
    tpu.vector_store %arg3[%c0_503, %c7_504, %c0_505, %c0_506], %463 {strides = array<i32>} : memref<1x8x8x128xf32, #tpu.memory_space<vmem>>, vector<1x1x8x128xf32>,
    %c0_507 = arith.constant 0 : index
    %c0_508 = arith.constant 0 : index
    %c0_509 = arith.constant 0 : index
    %c0_510 = arith.constant 0 : index
    %464 = vector.load %arg3[%c0_507, %c0_508, %c0_509, %c0_510] : memref<1x8x8x128xf32, #tpu.memory_space<vmem>>, vector<1x8x8x128xf32>
    %465 = vector.shape_cast %464 : vector<1x8x8x128xf32> to vector<8x8x128xf32>
    %466 = vector.extract_strided_slice %465 {offsets = [0, 0, 0], sizes = [8, 8, 64], strides = [1, 1, 1]} : vector<8x8x128xf32> to vector<8x8x64xf32>
    %cst_511 = arith.constant dense<0.000000e+00> : vector<8x64xf32>
    %467 = vector.multi_reduction <add>, %466, %cst_511 [0] : vector<8x8x64xf32> to vector<8x64xf32>
    %cst_512 = arith.constant dense<0.000000e+00> : vector<64xf32>
    %468 = vector.multi_reduction <add>, %467, %cst_512 [0] : vector<8x64xf32> to vector<64xf32>
    %469 = vector.shape_cast %468 : vector<64xf32> to vector<1x64xf32>
    %cst_513 = arith.constant 1.562500e-02 : f32
    %470 = vector.broadcast %cst_513 : f32 to vector<1x64xf32>
    %471 = arith.mulf %469, %470 : vector<1x64xf32>
    %472 = vector.shape_cast %471 : vector<1x64xf32> to vector<1x1x64xf32>
    %473 = vector.broadcast %472 : vector<1x1x64xf32> to vector<8x8x64xf32>
    %474 = arith.subf %466, %473 : vector<8x8x64xf32>
    %475 = vector.shape_cast %471 : vector<1x64xf32> to vector<1x1x64xf32>
    %476 = vector.broadcast %475 : vector<1x1x64xf32> to vector<8x8x64xf32>
    %477 = arith.subf %466, %476 : vector<8x8x64xf32>
    %478 = arith.mulf %474, %477 : vector<8x8x64xf32>
    %cst_514 = arith.constant dense<0.000000e+00> : vector<8x64xf32>
    %479 = vector.multi_reduction <add>, %478, %cst_514 [0] : vector<8x8x64xf32> to vector<8x64xf32>
    %cst_515 = arith.constant dense<0.000000e+00> : vector<64xf32>
    %480 = vector.multi_reduction <add>, %479, %cst_515 [0] : vector<8x64xf32> to vector<64xf32>
    %481 = vector.shape_cast %480 : vector<64xf32> to vector<1x64xf32>
    %482 = tpu.concatenate %469, %481 in 0 : vector<1x64xf32>, vector<1x64xf32> -> vector<2x64xf32>
    %c0_516 = arith.constant 0 : index
    %c0_517 = arith.constant 0 : index
    %c0_518 = arith.constant 0 : index
    %483 = vector.load %arg4[%c0_516, %c0_517, %c0_518] : memref<1x2x64xf32, #tpu.memory_space<vmem>>, vector<1x2x64xf32>
    %484 = vector.shape_cast %483 : vector<1x2x64xf32> to vector<2x64xf32>
    %485 = vector.shape_cast %482 : vector<2x64xf32> to vector<1x2x64xf32>
    tpu.vector_store %arg4[%c0_516, %c0_517, %c0_518], %485 {strides = array<i32>} : memref<1x2x64xf32, #tpu.memory_space<vmem>>, vector<1x2x64xf32>,
    return
  }
  func.func @transform_0(%arg0: i32) -> (i32, i32, i32) {
    %c0_i32 = arith.constant 0 : i32
    %c0_i32_0 = arith.constant 0 : i32
    %c0_i32_1 = arith.constant 0 : i32
    return %arg0, %c0_i32, %c0_i32_0 : i32, i32, i32
  }
  func.func @transform_1(%arg0: i32) -> (i32, i32, i32) {
    %c0_i32 = arith.constant 0 : i32
    %c0_i32_0 = arith.constant 0 : i32
    %c0_i32_1 = arith.constant 0 : i32
    %c0_i32_2 = arith.constant 0 : i32
    return %c0_i32, %c0_i32_0, %c0_i32_1 : i32, i32, i32
  }
  func.func @transform_2(%arg0: i32) -> (i32, i32, i32, i32) {
    %c0_i32 = arith.constant 0 : i32
    %c0_i32_0 = arith.constant 0 : i32
    %c0_i32_1 = arith.constant 0 : i32
    %c0_i32_2 = arith.constant 0 : i32
    return %arg0, %c0_i32, %c0_i32_0, %c0_i32_1 : i32, i32, i32, i32
  }
  func.func @transform_3(%arg0: i32) -> (i32, i32, i32) {
    %c0_i32 = arith.constant 0 : i32
    %c0_i32_0 = arith.constant 0 : i32
    %c0_i32_1 = arith.constant 0 : i32
    return %arg0, %c0_i32, %c0_i32_0 : i32, i32, i32
  }
}

</mosaic_0001>

<bundles_post_ra>
// kernel: tpu_custom_call.1
= control target key start
LH: loop header
LB: loop body
LE: loop exit
PB: predicated region body
PF: predicated region fallthrough
CT: control target
= control target key end

     0   :  { %9 = vsyncpa [#allocation3], 0  ;;  %s8575_s0 = inlined_call_operand.vmem [shape: bf16[2,100,40], index: 0, kind: input, shape index: {}]   ;;  %s8576_s1 = inlined_call_operand.hbm [shape: bf16[9,40,128], index: 1, kind: input, shape index: {}]   ;;  %s8577_s2 = inlined_call_operand.hbm [shape: f32[2,8,8,128], index: 2, kind: output, shape index: {0}]   ;;  %s8578_s3 = inlined_call_operand.hbm [shape: f32[2,2,64], index: 3, kind: output, shape index: {1}]  }
   0x1   :  { %10 = vsyncpa [#allocation4], 0 }
   0x2   :  { %12 = vsyncpa [#allocation4 + $0x1], 0 }
   0x3   :  { %13 = vsyncpa [#allocation7], 0 }
   0x4   :  { %15 = vsyncpa [#allocation7 + $0x1], 0  ;;  %s7648_s12 = smov 0   ;;  %s7650_s13 = smov 0  }
   0x5   :  { %s7652_s14 = smov 0   ;;  %s7654_s15 = smov 0  }
   0x6 LB: > { %s7669_s16 = sadd.s32 4294967295, %s7617_s15   ;;  %s5779_s17 = sadd.s32 4294967294, %s7617_s15   ;;  %s7617_s15 = sphi %s7654_s15, %s8586_s15   ;;  %s7613_s14 = sphi %s7652_s14, %s8585_s14   ;;  %s7609_s13 = sphi %s7650_s13, %s8584_s13   ;;  %s7605_s12 = sphi %s7648_s12, %s8583_s12  }
   0x7   : > { %s7673_s18 = sadd.s32 1, %s7617_s15   ;;  %s75_s19 = sadd.s32 1, %s7613_s14 }
   0x8   : > { %s72_s20 = ssub.s32 %s7617_s15, %s7673_s18  ;;  %p85_p0 = scmp.ne.s32.totalorder %s7613_s14, %s7609_s13 }
   0x9   : > { %p73_p1 = scmp.eq.s32.totalorder %s72_s20, 0  ;;  %p86_p2 = scmp.eq.s32.totalorder %s7669_s16, 1 }
   0xa   : > { %p91_p3 = scmp.ne.s32.totalorder %s7609_s13, %s7605_s12  ;;  %p92_p4 = scmp.eq.s32.totalorder %s5779_s17, 1 }
   0xb   : > { %s7684_s21 = scalar_select %p73_p1, %s7613_s14, %s75_s19  }
   0xc   : > { %p7686_p5 = por %p86_p2, %p85_p0  ;;  %p7690_p6 = por %p92_p4, %p91_p3 }
   0xd   : > { %p5780_p7 = scmp.ge.s32.totalorder %s7617_s15, 1  ;;  %p125_p8 = scmp.lt.s32.totalorder %s7617_s15, 3 }
   0xe   : > { %s8580_s23 = scalar_select %p7690_p6, 1, 0 }
   0xf   : > { %p7179_p9 = scmp.eq.s32.totalorder %s7669_s16, 0  ;;  %p7697_p10 = pnand %p5780_p7, %p125_p8 }
  0x10   : > { %s7619_s25 = smov [#allocation2]  }
  0x11   : > { %s137_s26 = sshll.u32 %s7619_s25, 4  ;;  %p7168_p11 = pneg %p7697_p10  ;;  %s138_s26 = int_to_ptr.vmem [resolvable:$true] %s137_s26 }
  0x12   : > { %s7508_s27 = scalar_lea.vmem %s138_s26, 2880  ;;  %p7516_p3 = scmp.lt.s32.totalorder %s138_s26, %s138_s26 }
  0x13   : > { %p7169_p12 = pnand %p7179_p9, %p7168_p11  ;;  %p7509_p0 = scmp.ne.s32.totalorder %s138_s26, %s7508_s27 }
  0x14   : > { %p7517_p4 = scmp.lt.s32.totalorder %s7508_s27, %s7508_s27 }
  0x15   : > { %p7499_p13 = pneg %p7169_p12 }
  0x16   : > { %p7518_p6 = por %p7517_p4, %p7516_p3 }
  0x17   : > { %p7511_p1 = pnand %p7509_p0, %p7499_p13 }
  0x19   : > { %p7512_p2 = pneg %p7511_p1 }
  0x1b   : > { %p7519_p7 = pnand %p7518_p6, %p7512_p2 }
  0x1d   : > { %7522 = shalt.err (!%p7519_p7)
}
  0x1e   : > { %s7620_s28 = smov 64   ;;  %s7621_s29 = smov 4  }
  0x1f   : > { %7171 = dma.hbm_to_vmem [thread:$0]  (!%p7169_p12), %s8576_s1, 2880, %s138_s26, [#allocation3], %s7620_s28, %s7620_s28, %s7621_s29  }
  0x20   : > { %161 = sbr.rel (%p7697_p10) target bundleno = 755 (0x2f3), region = 28 }
  0x25   : > { %7592 = dma.done.wait (%p7179_p9), [#allocation3], 2880  }
  0x26   : > { %7594 = vsyncadd (%p7179_p9), [#allocation3], 4294964416  ;;  %p190_p8 = scmp.lt.s32.totalorder %s7669_s16, 1  ;;  %v7622_v0 = vmov 0.0   ;;  %vm7623_vm0 = vmmov 0   ;;  %vm240_vm1 = vcmask 1043456  }
  0x27   : > { %6439 = vmatprep.subr.bf16.mxu0 %v7622_v0  ;;  %6449 = vmatprep.subr.bf16.mxu1 %v7622_v0  ;;  %v7221_v1 = vld [vmem:[#allocation2 + $0x24] ss:$0 sps:$4 sm:$0xff]   ;;  %v7222_v2 = vld [vmem:[#allocation2 + $0x10] ss:$0 sps:$4 sm:$0xff]   ;;  %v7223_v5 = vld [vmem:[#allocation2 + $0x1c] sm:$0xff]   ;;  %vm236_vm2 = vcmask 326656  }
  0x28   : > { %6445 = vmatprep.mubr.msk.bf16.mxu0 %vm7623_vm0, %v7622_v0  ;;  %6455 = vmatprep.mubr.msk.bf16.mxu1 %vm7623_vm0, %v7622_v0  ;;  %s191_s5 = scalar_select %p190_p8, %s7669_s16, 1  ;;  %v242_v3 = vsel %vm240_vm1, %v7221_v1, 0  ;;  %v303_v4 = vsel %vm240_vm1, %v7222_v2, 0  ;;  %v7224_v6 = vld [vmem:[#allocation2 + $0x8] sm:$0xff]   ;;  %v7225_v9 = vld [vmem:[#allocation2 + $0x14] sm:$0xff]   ;;  %v7226_v11 = vld [vmem:[#allocation2] sm:$0xff]  }
  0x29   : > { %6440 = vmatpush3.bf16.msra.mxu0 %v242_v3  ;;  %6450 = vmatpush3.bf16.msra.mxu1 %v303_v4  ;;  %v7228_v14 = vld [vmem:[#allocation2 + $0x38] ss:$0 sps:$4 sm:$0xff]   ;;  %v7229_v15 = vld [vmem:[#allocation2 + $0x4c] ss:$0 sps:$4 sm:$0xff]   ;;  %v7230_v20 = vld [vmem:[#allocation2 + $0x30] sm:$0xff]   ;;  %s8122_s10 = sand.u32 1, %s7609_s13  }
  0x2a   : > { %s7159_s6 = smul.u32 52, %s191_s5  ;;  %6441 = vmatprep.subr.bf16.mxu0 %v7622_v0  ;;  %6451 = vmatprep.subr.bf16.mxu1 %v7622_v0  ;;  %v375_v18 = vsel %vm240_vm1, %v7228_v14, 0  ;;  %v451_v19 = vsel %vm240_vm1, %v7229_v15, 0  ;;  %v7231_v24 = vld [vmem:[#allocation2 + $0x44] sm:$0xff]   ;;  %v7233_v29 = vld [vmem:[#allocation2 + $0x3c] sm:$0xff]   ;;  %v7240_v40 = vld [vmem:[#allocation2 + $0x6c] sm:$0xff]  }
  0x2b   : > { %v7232_v27 = vld [vmem:[#allocation2 + $0x28] sm:$0xff]   ;;  %v7237_v30 = vld [vmem:[#allocation2 + $0x60] ss:$0 sps:$4 sm:$0xff]   ;;  %v7238_v31 = vld [vmem:[#allocation2 + $0x74] ss:$0 sps:$4 sm:$0xff]   ;;  %s5785_s11 = sshll.u32 %s8122_s10, 6 }
  0x2c   : > { %s7726_s9 = scalar_lea.vmem %s8575_s0, %s7159_s6  ;;  %v531_v35 = vsel %vm240_vm1, %v7237_v30, 0  ;;  %v604_v36 = vsel %vm240_vm1, %v7238_v31, 0  ;;  %v7239_v39 = vld [vmem:[#allocation2 + $0x58] sm:$0xff]   ;;  %v7241_v42 = vld [vmem:[#allocation2 + $0x50] sm:$0xff]   ;;  %v7242_v48 = vld [vmem:[#allocation2 + $0x64] sm:$0xff]   ;;  %s8142_s17 = scalar_lea.vmem [#allocation5], %s5785_s11 }
  0x2d   : > { %v196_v7 = vld [vmem:[%s7726_s9] sm:$0xf]  ;;  %v202_v8 = vld [vmem:[%s7726_s9 + $0x4] sm:$0x1]  ;;  %6442 = vmatpush3.bf16.msra.mxu0 %v7223_v5  ;;  %6452 = vmatpush3.bf16.msra.mxu1 %v7224_v6  ;;  %v418_v22 = vld [vmem:[%s7726_s9 + $0x4] sm:$0xe] }
  0x2e   : > { %v5788_v10 = vcombine.low %v196_v7, %v202_v8  ;;  %6443 = vmatprep.subr.bf16.mxu0 %v7622_v0  ;;  %6453 = vmatprep.subr.bf16.mxu1 %v7622_v0  ;;  %v345_v21 = vld [vmem:[%s7726_s9] sm:$0xe]  ;;  %v419_v23 = vld [vmem:[%s7726_s9 + $0x8] sm:$0x1]  ;;  %v574_v41 = vld [vmem:[%s7726_s9 + $0x4] sm:$0xc] }
  0x2f   : > { %v5797_v25 = vcombine.low %v345_v21, %v202_v8  ;;  %v5802_v26 = vcombine.low %v418_v22, %v419_v23  ;;  %v494_v28 = vld [vmem:[%s7726_s9 + $0x8] sm:$0x3]  ;;  %v647_v45 = vld [vmem:[%s7726_s9 + $0x8] sm:$0xc]  ;;  %v7768_v47 = vld [vmem:[%s7726_s9 + $0xc] sm:$0x7] }
  0x30   : > { %v215_v12 = vshrl.u32 %v5788_v10, 16  ;;  %v217_v13 = vshll.u32 %v5788_v10, 16  ;;  %v5807_v34 = vcombine.low %v418_v22, %v494_v28  ;;  %v5812_v46 = vcombine.low %v574_v41, %v494_v28  ;;  %v7244_v49 = vld [vmem:[#allocation2 + $0x88] ss:$0 sps:$4 sm:$0xff]   ;;  %v7245_v50 = vld [vmem:[#allocation2 + $0x9c] ss:$0 sps:$4 sm:$0xff]  }
  0x31   : > { %6444 = vmatpush3.bf16.msra.mxu0 %v7225_v9  ;;  %6454 = vmatpush3.bf16.msra.mxu1 %v7226_v11  ;;  %v355_v32 = vrot.slane %v5797_v25, 1  ;;  %v431_v33 = vrot.slane %v5802_v26, 1  ;;  %v5822_v52 = vcombine.low %v647_v45, %v7768_v47  ;;  %v680_v54 = vsel %vm240_vm1, %v7244_v49, 0  ;;  %v7246_v58 = vld [vmem:[#allocation2 + $0x80] sm:$0xff]   ;;  %v648_v59 = vld [vmem:[%s7726_s9 + $0xc] sm:$0x3] }
  0x32   : > { %v219_v16 = vrot.slane %v217_v13, 1  ;;  %6459 = vmatprep.subr.bf16.mxu0 %v7622_v0  ;;  %6469 = vmatprep.subr.bf16.mxu1 %v7622_v0  ;;  %v505_v37 = vshrl.u32 %v5807_v34, 16  ;;  %v508_v38 = vshll.u32 %v5807_v34, 16  ;;  %v584_v53 = vrot.slane %v5812_v46, 2  ;;  %v7247_v60 = vld [vmem:[#allocation2 + $0x94] sm:$0xff]   ;;  %v7249_v62 = vld [vmem:[#allocation2 + $0x8c] sm:$0xff]  }
  0x33   : > { %v760_v55 = vsel %vm240_vm1, %v7245_v50, 0  ;;  %v734_v56 = vshrl.u32 %v5822_v52, 16  ;;  %v737_v57 = vshll.u32 %v5822_v52, 16  ;;  %v7248_v61 = vld [vmem:[#allocation2 + $0x78] sm:$0xff]   ;;  %v5817_v63 = vcombine.low %v647_v45, %v648_v59  ;;  %v7252_v3 = vld [vmem:[#allocation2 + $0xb0] ss:$0 sps:$4 sm:$0xff]  }
  0x34   : > { %v220_v17 = vor.u32 %v219_v16, %v215_v12  ;;  %6456 = vmatmul.mubr.msk.bf16.vlgmr.msra.gmra.mxu1 %vm236_vm2, %v196_v7  ;;  %v507_v43 = vrot.slane %v505_v37, 1  ;;  %v510_v44 = vrot.slane %v508_v38, 2  ;;  %v7787_v4 = vld [vmem:[%s7726_s9 + $0x4] sm:$0xe]  ;;  %v7791_v5 = vld [vmem:[%s7726_s9 + $0x8] sm:$0x3] }
  0x35   : > { %6470 = vmatpush3.bf16.msra.mxu1 %v451_v19  ;;  %6475 = vmatprep.mubr.msk.bf16.mxu1 %vm7623_vm0, %v7622_v0  ;;  %v736_v1 = vrot.slane %v734_v56, 2  ;;  %v739_v2 = vrot.slane %v737_v57, 3  ;;  %v7253_v6 = vld [vmem:[#allocation2 + $0x24] ss:$0 sps:$4 sm:$0xff]   ;;  %v660_v7 = vrot.slane %v5817_v63, 2  ;;  %v5832_v9 = vcombine.low %v7787_v4, %v7791_v5  ;;  %v7254_v12 = vld [vmem:[#allocation2 + $0xa8] sm:$0xff]  }
  0x36   : > { %6446 = vmatmul.mubr.msk.bf16.vlgmr.msra.gmra.mxu0 %vm236_vm2, %v220_v17  ;;  %6471 = vmatprep.subr.bf16.mxu1 %v7622_v0  ;;  %v511_v51 = vor.u32 %v510_v44, %v507_v43  ;;  %v833_v10 = vsel %vm240_vm1, %v7252_v3, 0  ;;  %v922_v11 = vsel %vm240_vm1, %v7253_v6, 0  ;;  %v803_v13 = vld [vmem:[%s7726_s9 + $0x8] sm:$0x8]  ;;  %v7255_v16 = vld [vmem:[#allocation2 + $0x1c] sm:$0xff]   ;;  %v7257_v19 = vld [vmem:[#allocation2 + $0x14] sm:$0xff]  }
  0x37   : > { %6460 = vmatpush3.bf16.msra.mxu0 %v375_v18  ;;  %6465 = vmatprep.mubr.msk.bf16.mxu0 %vm7623_vm0, %v7622_v0  ;;  %v740_v8 = vor.u32 %v739_v2, %v736_v1  ;;  %v896_v14 = vshrl.u32 %v5832_v9, 16  ;;  %v899_v15 = vshll.u32 %v5832_v9, 16  ;;  %v5827_v17 = vcombine.low %v803_v13, %v7768_v47  ;;  %v7256_v18 = vld [vmem:[#allocation2 + $0xa0] sm:$0xff]   ;;  %v7260_v22 = vld [vmem:[#allocation2 + $0x10] ss:$0 sps:$4 sm:$0xff]   ;;  %v7262_v28 = vld [vmem:[#allocation2 + $0x8] sm:$0xff]  }
  0x38   : > { %6461 = vmatprep.subr.bf16.mxu0 %v7622_v0  ;;  %v7261_v23 = vld [vmem:[#allocation2 + $0x38] ss:$0 sps:$4 sm:$0xff]   ;;  %v987_v26 = vsel %vm240_vm1, %v7260_v22, 0  ;;  %v7263_v30 = vld [vmem:[#allocation2 + $0x30] sm:$0xff]   ;;  %v1029_v31 = vld [vmem:[%s7726_s9 + $0x4] sm:$0xc] }
  0x39   : > { %6472 = vmatpush3.bf16.msra.mxu1 %v7231_v24  ;;  %v901_v21 = vrot.slane %v899_v15, 2  ;;  %v813_v24 = vrot.slane %v5827_v17, 3  ;;  %v7265_v34 = vld [vmem:[#allocation2 + $0x28] sm:$0xff]   ;;  %v7271_v46 = vld [vmem:[#allocation2 + $0x58] sm:$0xff]   ;;  %v7273_v52 = vld [vmem:[#allocation2 + $0x50] sm:$0xff]   ;;  %vm5575_vm3 = vcmask 523264  }
  0x3a   : > { %6473 = vmatprep.subr.bf16.mxu1 %v7622_v0  ;;  %v1101_v37 = vld [vmem:[%s7726_s9 + $0x8] sm:$0xc]  ;;  %v7831_v38 = vld [vmem:[%s7726_s9 + $0xc] sm:$0x7]  ;;  %v7277_v56 = vld [vmem:[#allocation2 + $0x88] ss:$0 sps:$4 sm:$0xff]  }
  0x3b   : > { %6462 = vmatpush3.bf16.msra.mxu0 %v7230_v20  ;;  %v898_v20 = vrot.slane %v896_v14, 1  ;;  %v7270_v45 = vld [vmem:[#allocation2 + $0x44] sm:$0xff]   ;;  %v1102_v47 = vld [vmem:[%s7726_s9 + $0xc] sm:$0x3]  ;;  %v1327_v1 = vld [vmem:[%s7726_s9 + $0xc] sm:$0x8] }
  0x3c   : > { %6463 = vmatprep.subr.bf16.mxu0 %v7622_v0  ;;  %v5847_v50 = vcombine.low %v1101_v37, %v1102_v47  ;;  %v1255_v63 = vld [vmem:[%s7726_s9 + $0x8] sm:$0x8]  ;;  %v1328_v2 = vld [vmem:[%s7726_s9 + $0x10] sm:$0x7]  ;;  %v7281_v6 = vld [vmem:[#allocation2 + $0x78] sm:$0xff]   ;;  %s6150_s19 = sshll.u32 %s7669_s16, 10 }
  0x3d   : > { %6474 = vmatpush3.bf16.msra.mxu1 %v7233_v29  ;;  %v902_v25 = vor.u32 %v901_v21, %v898_v20  ;;  %v878_v29 = vld [vmem:[%s7726_s9 + $0x8] sm:$0x1]  ;;  %v5857_v3 = vcombine.low %v1255_v63, %v7831_v38  ;;  %v7286_v9 = vld [vmem:[#allocation2 + $0xb0] ss:$0 sps:$4 sm:$0xff]   ;;  %v7287_v17 = vld [vmem:[#allocation2 + $0x94] sm:$0xff]   ;;  %s5660_s20 = sshll.u32 %s8142_s17, 4  ;;  %s8482_s26 = scalar_lea.hbm %s8577_s2, %s6150_s19  ;;  %s8484_s20 = int_to_ptr.vmem [resolvable:$true] %s5660_s20 }
  0x3e   : > { %6489 = vmatprep.subr.bf16.mxu1 %v7622_v0  ;;  %v1113_v57 = vrot.slane %v5847_v50, 2  ;;  %v1505_v14 = vsel %vm240_vm1, %v7286_v9, 0  ;;  %v7289_v21 = vld [vmem:[#allocation2 + $0x8c] sm:$0xff]   ;;  %v1550_v22 = vld [vmem:[%s7726_s9 + $0x8] sm:$0xc]  ;;  %s5642_s27 = scalar_lea.sflag [#allocation4], %s8122_s10 }
  0x3f   : > { %6464 = vmatpush3.bf16.msra.mxu0 %v7232_v27  ;;  %v1058_v27 = vsel %vm240_vm1, %v7261_v23, 0  ;;  %v7883_v23 = vld [vmem:[%s7726_s9 + $0xc] sm:$0x7]  ;;  %v7301_v47 = vld [vmem:[#allocation2 + $0x30] sm:$0xff]   ;;  %v1774_v50 = vld [vmem:[%s7726_s9 + $0xc] sm:$0x8] }
  0x40   : > { %6479 = vmatprep.subr.bf16.mxu0 %v7622_v0  ;;  %6476 = vmatmul.mubr.msk.bf16.vlgmr.msra.gmra.mxu1 %vm236_vm2, %v431_v33  ;;  %v5837_v33 = vcombine.low %v7787_v4, %v878_v29  ;;  %v1402_v4 = vld [vmem:[%s7726_s9 + $0x10] sm:$0xf]  ;;  %v7314_v9 = vld [vmem:[#allocation2 + $0x88] ss:$0 sps:$4 sm:$0xff]   ;;  %s7523_s28 = scalar_lea.vmem %s8484_s20, 1024  ;;  %s7624_s29 = smov [#allocation5]  }
  0x41   : > { %6490 = vmatpush3.bf16.msra.mxu1 %v604_v36  ;;  %6495 = vmatprep.mubr.msk.bf16.mxu1 %vm7623_vm0, %v7622_v0  ;;  %v7268_v36 = vld [vmem:[#allocation2 + $0x4c] ss:$0 sps:$4 sm:$0xff]   ;;  %p7524_p6 = scmp.ne.s32.totalorder %s8484_s20, %s7523_s28  ;;  %s7527_s30 = sshll.u32 %s7624_s29, 4  ;;  %s7528_s30 = int_to_ptr.vmem [resolvable:$false] %s7527_s30 }
  0x42   : > { %6466 = vmatmul.mubr.msk.bf16.vlgmr.msra.gmra.mxu0 %vm236_vm2, %v355_v32  ;;  %6491 = vmatprep.subr.bf16.mxu1 %v7622_v0  ;;  %v7264_v32 = vld [vmem:[#allocation2] sm:$0xff]   ;;  %v1133_v43 = vsel %vm240_vm1, %v7268_v36, 0  ;;  %v7295_v36 = vld [vmem:[#allocation2 + $0x14] sm:$0xff]   ;;  %s7529_s4 = scalar_lea.vmem %s7528_s30, 2048  ;;  %p7530_p11 = scmp.lt.s32.totalorder %s8484_s20, %s7528_s30 }
  0x43   : > { %6480 = vmatpush3.bf16.msra.mxu0 %v531_v35  ;;  %6485 = vmatprep.mubr.msk.bf16.mxu0 %vm7623_vm0, %v7622_v0  ;;  %v5842_v35 = vcombine.low %v1029_v31, %v7791_v5  ;;  %v7280_v5 = vld [vmem:[#allocation2 + $0x64] sm:$0xff]   ;;  %p7525_p9 = pnand %p7524_p6, %p7686_p5  ;;  %p7531_p12 = scmp.lt.s32.totalorder %s7529_s4, %s7523_s28 }
  0x44   : > { %6481 = vmatprep.subr.bf16.mxu0 %v7622_v0 }
  0x45   : > { %6492 = vmatpush3.bf16.msra.mxu1 %v7240_v40  ;;  %v7269_v40 = vld [vmem:[#allocation2 + $0x60] ss:$0 sps:$4 sm:$0xff]   ;;  %v1038_v41 = vrot.slane %v5842_v35, 2  ;;  %v1551_v35 = vld [vmem:[%s7726_s9 + $0xc] sm:$0x3]  ;;  %p7526_p10 = pneg %p7525_p9  ;;  %p7532_p13 = por %p7531_p12, %p7530_p11 }
  0x46   : > { %6493 = vmatprep.subr.bf16.mxu1 %v7622_v0  ;;  %v1212_v44 = vsel %vm240_vm1, %v7269_v40, 0  ;;  %v5882_v40 = vcombine.low %v1550_v22, %v1551_v35  ;;  %v2144_v35 = vld [vmem:[%s7726_s9 + $0x14] sm:$0xe] }
  0x47   : > { %6482 = vmatpush3.bf16.msra.mxu0 %v7239_v39  ;;  %v967_v39 = vrot.slane %v5837_v33, 1  ;;  %v7293_v33 = vld [vmem:[#allocation2 + $0x1c] sm:$0xff]   ;;  %p7533_p0 = pnand %p7532_p13, %p7526_p10 }
  0x48   : > { %6483 = vmatprep.subr.bf16.mxu0 %v7622_v0 }
  0x49   : > { %6494 = vmatpush3.bf16.msra.mxu1 %v7242_v48 }
  0x4a   : > { %6509 = vmatprep.subr.bf16.mxu1 %v7622_v0 }
  0x4b   : > { %6484 = vmatpush3.bf16.msra.mxu0 %v7241_v42  ;;  %v5852_v42 = vcombine.low %v1101_v37, %v7831_v38 }
  0x4c   : > { %6499 = vmatprep.subr.bf16.mxu0 %v7622_v0  ;;  %6496 = vmatmul.mubr.msk.bf16.vlgmr.msra.gmra.mxu1 %vm236_vm2, %v584_v53 }
  0x4d   : > { %6510 = vmatpush3.bf16.msra.mxu1 %v760_v55  ;;  %6515 = vmatprep.mubr.msk.bf16.mxu1 %vm7623_vm0, %v7622_v0  ;;  %v1186_v48 = vshrl.u32 %v5852_v42, 16  ;;  %v1189_v49 = vshll.u32 %v5852_v42, 16  ;;  %v7276_v55 = vld [vmem:[#allocation2 + $0x74] ss:$0 sps:$4 sm:$0xff]   ;;  %v7300_v42 = vld [vmem:[#allocation2 + $0x4c] ss:$0 sps:$4 sm:$0xff]  }
  0x4e   : > { %6486 = vmatmul.mubr.msk.bf16.vlgmr.msra.gmra.mxu0 %vm236_vm2, %v511_v51  ;;  %6511 = vmatprep.subr.bf16.mxu1 %v7622_v0  ;;  %v7272_v51 = vld [vmem:[#allocation2 + $0x3c] sm:$0xff]   ;;  %v1284_v59 = vsel %vm240_vm1, %v7276_v55, 0 }
  0x4f   : > { %6500 = vmatpush3.bf16.msra.mxu0 %v680_v54  ;;  %6505 = vmatprep.mubr.msk.bf16.mxu0 %vm7623_vm0, %v7622_v0  ;;  %v1188_v53 = vrot.slane %v1186_v48, 2  ;;  %v1191_v54 = vrot.slane %v1189_v49, 3  ;;  %v7302_v48 = vld [vmem:[#allocation2 + $0x44] sm:$0xff]  }
  0x50   : > { %6501 = vmatprep.subr.bf16.mxu0 %v7622_v0  ;;  %v1702_v49 = vld [vmem:[%s7726_s9 + $0x8] sm:$0x8] }
  0x51   : > { %6512 = vmatpush3.bf16.msra.mxu1 %v7247_v60  ;;  %v1359_v60 = vsel %vm240_vm1, %v7277_v56, 0  ;;  %v1849_v56 = vld [vmem:[%s7726_s9 + $0x10] sm:$0xf] }
  0x52   : > { %6513 = vmatprep.subr.bf16.mxu1 %v7622_v0 }
  0x53   : > { %6502 = vmatpush3.bf16.msra.mxu0 %v7246_v58  ;;  %v1192_v58 = vor.u32 %v1191_v54, %v1188_v53  ;;  %v7304_v53 = vld [vmem:[#allocation2 + $0x3c] sm:$0xff]   ;;  %v5887_v54 = vcombine.low %v1702_v49, %v7883_v23  ;;  %v7331_v49 = vld [vmem:[#allocation2 + $0x8] sm:$0xff]  }
  0x54   : > { %6503 = vmatprep.subr.bf16.mxu0 %v7622_v0 }
  0x55   : > { %6514 = vmatpush3.bf16.msra.mxu1 %v7249_v62  ;;  %v7279_v62 = vld [vmem:[#allocation2 + $0x80] sm:$0xff]  }
  0x56   : > { %6529 = vmatprep.subr.bf16.mxu1 %v7622_v0 }
  0x57   : > { %6504 = vmatpush3.bf16.msra.mxu0 %v7248_v61  ;;  %v7278_v61 = vld [vmem:[#allocation2 + $0x6c] sm:$0xff]  }
  0x58   : > { %6519 = vmatprep.subr.bf16.mxu0 %v7622_v0  ;;  %6516 = vmatmul.mubr.msk.bf16.vlgmr.msra.gmra.mxu1 %vm236_vm2, %v740_v8  ;;  %v7285_v8 = vld [vmem:[#allocation2 + $0x9c] ss:$0 sps:$4 sm:$0xff]  }
  0x59   : > { %6530 = vmatpush3.bf16.msra.mxu1 %v922_v11  ;;  %6535 = vmatprep.mubr.msk.bf16.mxu1 %vm7623_vm0, %v7622_v0  ;;  %v1264_v11 = vrot.slane %v5857_v3, 3  ;;  %v1438_v13 = vsel %vm240_vm1, %v7285_v8, 0  ;;  %v7310_v3 = vld [vmem:[#allocation2 + $0x58] sm:$0xff]  }
  0x5a   : > { %6506 = vmatmul.mubr.msk.bf16.vlgmr.msra.gmra.mxu0 %vm236_vm2, %v660_v7  ;;  %6531 = vmatprep.subr.bf16.mxu1 %v7622_v0  ;;  %v5862_v7 = vcombine.low %v1327_v1, %v1328_v2 }
  0x5b   : > { %6520 = vmatpush3.bf16.msra.mxu0 %v833_v10  ;;  %6525 = vmatprep.mubr.msk.bf16.mxu0 %vm7623_vm0, %v7622_v0  ;;  %v5867_v10 = vcombine.low %v1327_v1, %v1402_v4 }
  0x5c   : > { %6521 = vmatprep.subr.bf16.mxu0 %v7622_v0 }
  0x5d   : > { %6532 = vmatpush3.bf16.msra.mxu1 %v7255_v16  ;;  %v1412_v15 = vshrl.u32 %v5867_v10, 16  ;;  %v1415_v16 = vshll.u32 %v5867_v10, 16  ;;  %v2063_v10 = vld [vmem:[%s7726_s9 + $0x14] sm:$0xf] }
  0x5e   : > { %6533 = vmatprep.subr.bf16.mxu1 %v7622_v0 }
  0x5f   : > { %6522 = vmatpush3.bf16.msra.mxu0 %v7254_v12  ;;  %v1339_v12 = vrot.slane %v5862_v7, 3  ;;  %v1417_v20 = vrot.slane %v1415_v16, 4 }
  0x60   : > { %6523 = vmatprep.subr.bf16.mxu0 %v7622_v0 }
  0x61   : > { %6534 = vmatpush3.bf16.msra.mxu1 %v7257_v19  ;;  %v1414_v19 = vrot.slane %v1412_v15, 3  ;;  %v2020_v15 = vsel %vm240_vm1, %v7314_v9, 0  ;;  %v2437_v9 = vld [vmem:[%s7726_s9 + $0x14] sm:$0xf] }
  0x62   : > { %6549 = vmatprep.subr.bf16.mxu1 %v7622_v0 }
  0x63   : > { %6524 = vmatpush3.bf16.msra.mxu0 %v7256_v18  ;;  %v7288_v18 = vld [vmem:[#allocation2 + $0xa8] sm:$0xff]  }
  0x64   : > { %6539 = vmatprep.subr.bf16.mxu0 %v7622_v0  ;;  %6536 = vmatmul.mubr.msk.bf16.vlgmr.msra.gmra.mxu1 %vm236_vm2, %v902_v25  ;;  %v7291_v25 = vld [vmem:[#allocation2 + $0x24] ss:$0 sps:$4 sm:$0xff]  }
  0x65   : > { %6550 = vmatpush3.bf16.msra.mxu1 %v1058_v27  ;;  %6555 = vmatprep.mubr.msk.bf16.mxu1 %vm7623_vm0, %v7622_v0  ;;  %v1418_v27 = vor.u32 %v1417_v20, %v1414_v19  ;;  %v1595_v29 = vsel %vm240_vm1, %v7291_v25, 0  ;;  %v7317_v19 = vld [vmem:[#allocation2 + $0x94] sm:$0xff]   ;;  %v7957_v25 = vld [vmem:[%s7726_s9 + $0x10] sm:$0xf] }
  0x66   : > { %6526 = vmatmul.mubr.msk.bf16.vlgmr.msra.gmra.mxu0 %vm236_vm2, %v813_v24  ;;  %6551 = vmatprep.subr.bf16.mxu1 %v7622_v0  ;;  %v7290_v24 = vld [vmem:[#allocation2 + $0xa0] sm:$0xff]   ;;  %v7318_v20 = vld [vmem:[#allocation2 + $0x78] sm:$0xff]  }
  0x67   : > { %6540 = vmatpush3.bf16.msra.mxu0 %v987_v26  ;;  %6545 = vmatprep.mubr.msk.bf16.mxu0 %vm7623_vm0, %v7622_v0  ;;  %v7292_v26 = vld [vmem:[#allocation2 + $0x10] ss:$0 sps:$4 sm:$0xff]  }
  0x68   : > { %6541 = vmatprep.subr.bf16.mxu0 %v7622_v0 }
  0x69   : > { %6552 = vmatpush3.bf16.msra.mxu1 %v7263_v30  ;;  %v1660_v30 = vsel %vm240_vm1, %v7292_v26, 0  ;;  %v7319_v26 = vld [vmem:[#allocation2 + $0x8c] sm:$0xff]  }
  0x6a   : > { %6553 = vmatprep.subr.bf16.mxu1 %v7622_v0 }
  0x6b   : > { %6542 = vmatpush3.bf16.msra.mxu0 %v7262_v28  ;;  %v5877_v28 = vcombine.low %v1550_v22, %v7883_v23  ;;  %v7321_v23 = vld [vmem:[#allocation2 + $0xb0] ss:$0 sps:$4 sm:$0xff]  }
  0x6c   : > { %6543 = vmatprep.subr.bf16.mxu0 %v7622_v0 }
  0x6d   : > { %6554 = vmatpush3.bf16.msra.mxu1 %v7265_v34  ;;  %v1569_v31 = vshrl.u32 %v5877_v28, 16  ;;  %v7294_v34 = vld [vmem:[#allocation2 + $0x8] sm:$0xff]  }
  0x6e   : > { %6569 = vmatprep.subr.bf16.mxu1 %v7622_v0 }
  0x6f   : > { %6544 = vmatpush3.bf16.msra.mxu0 %v7264_v32  ;;  %v1572_v32 = vshll.u32 %v5877_v28, 16  ;;  %v1571_v37 = vrot.slane %v1569_v31, 2  ;;  %v1995_v28 = vld [vmem:[%s7726_s9 + $0x14] sm:$0xf]  ;;  %v2173_v31 = vsel %vm240_vm1, %v7321_v23, 0 }
  0x70   : > { %6559 = vmatprep.subr.bf16.mxu0 %v7622_v0  ;;  %6556 = vmatmul.mubr.msk.bf16.vlgmr.msra.gmra.mxu1 %vm236_vm2, %v1038_v41  ;;  %v7299_v41 = vld [vmem:[#allocation2 + $0x38] ss:$0 sps:$4 sm:$0xff]  }
  0x71   : > { %6570 = vmatpush3.bf16.msra.mxu1 %v1212_v44  ;;  %6575 = vmatprep.mubr.msk.bf16.mxu1 %vm7623_vm0, %v7622_v0  ;;  %v1574_v38 = vrot.slane %v1572_v32, 3  ;;  %v1640_v44 = vrot.slane %v5882_v40, 2  ;;  %v7326_v40 = vld [vmem:[#allocation2 + $0x14] sm:$0xff]  }
  0x72   : > { %6546 = vmatmul.mubr.msk.bf16.vlgmr.msra.gmra.mxu0 %vm236_vm2, %v967_v39  ;;  %6571 = vmatprep.subr.bf16.mxu1 %v7622_v0  ;;  %v7296_v39 = vld [vmem:[#allocation2] sm:$0xff]  }
  0x73   : > { %6560 = vmatpush3.bf16.msra.mxu0 %v1133_v43  ;;  %6565 = vmatprep.mubr.msk.bf16.mxu0 %vm7623_vm0, %v7622_v0  ;;  %v1575_v43 = vor.u32 %v1574_v38, %v1571_v37  ;;  %v7325_v38 = vld [vmem:[#allocation2 + $0xa0] sm:$0xff]  }
  0x74   : > { %6561 = vmatprep.subr.bf16.mxu0 %v7622_v0 }
  0x75   : > { %6572 = vmatpush3.bf16.msra.mxu1 %v7271_v46  ;;  %v1806_v46 = vsel %vm240_vm1, %v7300_v42, 0 }
  0x76   : > { %6573 = vmatprep.subr.bf16.mxu1 %v7622_v0 }
  0x77   : > { %6562 = vmatpush3.bf16.msra.mxu0 %v7270_v45  ;;  %v1731_v45 = vsel %vm240_vm1, %v7299_v41, 0 }
  0x78   : > { %6563 = vmatprep.subr.bf16.mxu0 %v7622_v0 }
  0x79   : > { %6574 = vmatpush3.bf16.msra.mxu1 %v7273_v52  ;;  %v7303_v52 = vld [vmem:[#allocation2 + $0x28] sm:$0xff]  }
  0x7a   : > { %6589 = vmatprep.subr.bf16.mxu1 %v7622_v0 }
  0x7b   : > { %6564 = vmatpush3.bf16.msra.mxu0 %v7272_v51  ;;  %v1775_v51 = vld [vmem:[%s7726_s9 + $0x10] sm:$0x7] }
  0x7c   : > { %6579 = vmatprep.subr.bf16.mxu0 %v7622_v0  ;;  %6576 = vmatmul.mubr.msk.bf16.vlgmr.msra.gmra.mxu1 %vm236_vm2, %v1192_v58  ;;  %v5892_v55 = vcombine.low %v1774_v50, %v1775_v51  ;;  %v7309_v58 = vld [vmem:[#allocation2 + $0x74] ss:$0 sps:$4 sm:$0xff]  }
  0x7d   : > { %6590 = vmatpush3.bf16.msra.mxu1 %v1359_v60  ;;  %6595 = vmatprep.mubr.msk.bf16.mxu1 %vm7623_vm0, %v7622_v0  ;;  %v5897_v60 = vcombine.low %v1774_v50, %v1849_v56  ;;  %v1952_v63 = vsel %vm240_vm1, %v7309_v58, 0  ;;  %v2219_v50 = vld [vmem:[%s7726_s9 + $0x10] sm:$0x7]  ;;  %v7996_v58 = vld [vmem:[%s7726_s9 + $0x18] sm:$0x1] }
  0x7e   : > { %6566 = vmatmul.mubr.msk.bf16.vlgmr.msra.gmra.mxu0 %vm236_vm2, %v1113_v57  ;;  %6591 = vmatprep.subr.bf16.mxu1 %v7622_v0  ;;  %v7308_v57 = vld [vmem:[#allocation2 + $0x60] ss:$0 sps:$4 sm:$0xff]   ;;  %v7332_v51 = vld [vmem:[#allocation2 + $0x30] sm:$0xff]  }
  0x7f   : > { %6580 = vmatpush3.bf16.msra.mxu0 %v1284_v59  ;;  %6585 = vmatprep.mubr.msk.bf16.mxu0 %vm7623_vm0, %v7622_v0  ;;  %v1711_v59 = vrot.slane %v5887_v54, 3  ;;  %v1859_v1 = vshrl.u32 %v5897_v60, 16  ;;  %v1862_v2 = vshll.u32 %v5897_v60, 16  ;;  %v7334_v54 = vld [vmem:[#allocation2 + $0x28] sm:$0xff]  }
  0x80   : > { %6581 = vmatprep.subr.bf16.mxu0 %v7622_v0 }
  0x81   : > { %6592 = vmatpush3.bf16.msra.mxu1 %v7279_v62  ;;  %v1885_v62 = vsel %vm240_vm1, %v7308_v57, 0  ;;  %v1861_v7 = vrot.slane %v1859_v1, 3  ;;  %v1864_v8 = vrot.slane %v1862_v2, 4  ;;  %v7337_v57 = vld [vmem:[#allocation2 + $0x60] ss:$0 sps:$4 sm:$0xff]   ;;  %v7339_v1 = vld [vmem:[#allocation2 + $0x58] sm:$0xff]  }
  0x82   : > { %6593 = vmatprep.subr.bf16.mxu1 %v7622_v0 }
  0x83   : > { %6582 = vmatpush3.bf16.msra.mxu0 %v7278_v61  ;;  %v1786_v61 = vrot.slane %v5892_v55, 3 }
  0x84   : > { %6583 = vmatprep.subr.bf16.mxu0 %v7622_v0 }
  0x85   : > { %6594 = vmatpush3.bf16.msra.mxu1 %v7281_v6  ;;  %v7313_v6 = vld [vmem:[#allocation2 + $0x64] sm:$0xff]  }
  0x86   : > { %6609 = vmatprep.subr.bf16.mxu1 %v7622_v0 }
  0x87   : > { %6584 = vmatpush3.bf16.msra.mxu0 %v7280_v5  ;;  %v7312_v5 = vld [vmem:[#allocation2 + $0x50] sm:$0xff]  }
  0x88   : > { %6599 = vmatprep.subr.bf16.mxu0 %v7622_v0  ;;  %6596 = vmatmul.mubr.msk.bf16.vlgmr.msra.gmra.mxu1 %vm236_vm2, %v1339_v12  ;;  %v7315_v12 = vld [vmem:[#allocation2 + $0x9c] ss:$0 sps:$4 sm:$0xff]  }
  0x89   : > { %6610 = vmatpush3.bf16.msra.mxu1 %v1505_v14  ;;  %6615 = vmatprep.mubr.msk.bf16.mxu1 %vm7623_vm0, %v7622_v0  ;;  %v2101_v16 = vsel %vm240_vm1, %v7315_v12, 0 }
  0x8a   : > { %6586 = vmatmul.mubr.msk.bf16.vlgmr.msra.gmra.mxu0 %vm236_vm2, %v1264_v11  ;;  %6611 = vmatprep.subr.bf16.mxu1 %v7622_v0  ;;  %v7936_v11 = vld [vmem:[%s7726_s9 + $0x18] sm:$0x1] }
  0x8b   : > { %6600 = vmatpush3.bf16.msra.mxu0 %v1438_v13  ;;  %6605 = vmatprep.mubr.msk.bf16.mxu0 %vm7623_vm0, %v7622_v0  ;;  %v1865_v13 = vor.u32 %v1864_v8, %v1861_v7  ;;  %v5910_v14 = vcombine.low %v2063_v10, %v7936_v11  ;;  %v5915_v41 = vcombine.low %v2144_v35, %v7936_v11  ;;  %v7344_v8 = vld [vmem:[#allocation2 + $0x88] ss:$0 sps:$4 sm:$0xff]  }
  0x8c   : > { %6601 = vmatprep.subr.bf16.mxu0 %v7622_v0  ;;  %v2690_v12 = vsel %vm240_vm1, %v7344_v8, 0  ;;  %v7366_v8 = vld [vmem:[#allocation2 + $0x38] ss:$0 sps:$4 sm:$0xff]  }
  0x8d   : > { %6612 = vmatpush3.bf16.msra.mxu1 %v7288_v18  ;;  %v7316_v18 = vld [vmem:[#allocation2 + $0x80] sm:$0xff]  }
  0x8e   : > { %6613 = vmatprep.subr.bf16.mxu1 %v7622_v0 }
  0x8f   : > { %6602 = vmatpush3.bf16.msra.mxu0 %v7287_v17  ;;  %v2078_v17 = vshll.u32 %v5910_v14, 16 }
  0x90   : > { %6603 = vmatprep.subr.bf16.mxu0 %v7622_v0 }
  0x91   : > { %6614 = vmatpush3.bf16.msra.mxu1 %v7290_v24  ;;  %v2080_v22 = vrot.slane %v2078_v17, 1  ;;  %v7954_v24 = vld [vmem:[%s7726_s9 + $0xc] sm:$0x8]  ;;  %v2659_v17 = vld [vmem:[%s7726_s9 + $0x1c] sm:$0x1] }
  0x92   : > { %6629 = vmatprep.subr.bf16.mxu1 %v7622_v0  ;;  %v5926_v55 = vcombine.low %v7954_v24, %v2219_v50 }
  0x93   : > { %6604 = vmatpush3.bf16.msra.mxu0 %v7289_v21  ;;  %v2076_v21 = vshrl.u32 %v5910_v14, 16  ;;  %v2586_v14 = vld [vmem:[%s7726_s9 + $0x14] sm:$0xe] }
  0x94   : > { %6619 = vmatprep.subr.bf16.mxu0 %v7622_v0  ;;  %6616 = vmatmul.mubr.msk.bf16.vlgmr.msra.gmra.mxu1 %vm236_vm2, %v1402_v4  ;;  %v7311_v4 = vld [vmem:[#allocation2 + $0x6c] sm:$0xff]  }
  0x95   : > { %6630 = vmatpush3.bf16.msra.mxu1 %v1660_v30  ;;  %6635 = vmatprep.mubr.msk.bf16.mxu1 %vm7623_vm0, %v7622_v0  ;;  %v2081_v30 = vor.u32 %v2080_v22, %v2076_v21  ;;  %v7348_v21 = vld [vmem:[#allocation2 + $0x78] sm:$0xff]   ;;  %v5944_v22 = vcombine.low %v2586_v14, %v7996_v58 }
  0x96   : > { %6606 = vmatmul.mubr.msk.bf16.vlgmr.msra.gmra.mxu0 %vm236_vm2, %v1418_v27  ;;  %6631 = vmatprep.subr.bf16.mxu1 %v7622_v0  ;;  %v7322_v27 = vld [vmem:[#allocation2 + $0x24] ss:$0 sps:$4 sm:$0xff]  }
  0x97   : > { %6620 = vmatpush3.bf16.msra.mxu0 %v1595_v29  ;;  %6625 = vmatprep.mubr.msk.bf16.mxu0 %vm7623_vm0, %v7622_v0  ;;  %v5921_v29 = vcombine.low %v7954_v24, %v7957_v25  ;;  %v2263_v32 = vsel %vm240_vm1, %v7322_v27, 0  ;;  %v7353_v24 = vld [vmem:[#allocation2 + $0xb0] ss:$0 sps:$4 sm:$0xff]  }
  0x98   : > { %6621 = vmatprep.subr.bf16.mxu0 %v7622_v0 }
  0x99   : > { %6632 = vmatpush3.bf16.msra.mxu1 %v7294_v34  ;;  %v7324_v34 = vld [vmem:[#allocation2 + $0x1c] sm:$0xff]   ;;  %v2240_v37 = vshll.u32 %v5921_v29, 16 }
  0x9a   : > { %6633 = vmatprep.subr.bf16.mxu1 %v7622_v0 }
  0x9b   : > { %6622 = vmatpush3.bf16.msra.mxu0 %v7293_v33  ;;  %v7323_v33 = vld [vmem:[#allocation2 + $0xa8] sm:$0xff]  }
  0x9c   : > { %6623 = vmatprep.subr.bf16.mxu0 %v7622_v0 }
  0x9d   : > { %6634 = vmatpush3.bf16.msra.mxu1 %v7296_v39  ;;  %v7329_v39 = vld [vmem:[#allocation2 + $0x10] ss:$0 sps:$4 sm:$0xff]  }
  0x9e   : > { %6649 = vmatprep.subr.bf16.mxu1 %v7622_v0 }
  0x9f   : > { %6624 = vmatpush3.bf16.msra.mxu0 %v7295_v36  ;;  %v2237_v36 = vshrl.u32 %v5921_v29, 16  ;;  %v2841_v29 = vsel %vm240_vm1, %v7353_v24, 0 }
  0xa0   : > { %6639 = vmatprep.subr.bf16.mxu0 %v7622_v0  ;;  %6636 = vmatmul.mubr.msk.bf16.vlgmr.msra.gmra.mxu1 %vm236_vm2, %v1640_v44  ;;  %v7330_v44 = vld [vmem:[#allocation2 + $0x38] ss:$0 sps:$4 sm:$0xff]  }
  0xa1   : > { %6650 = vmatpush3.bf16.msra.mxu1 %v1806_v46  ;;  %6655 = vmatprep.mubr.msk.bf16.mxu1 %vm7623_vm0, %v7622_v0  ;;  %v2239_v42 = vrot.slane %v2237_v36, 3 }
  0xa2   : > { %6626 = vmatmul.mubr.msk.bf16.vlgmr.msra.gmra.mxu0 %vm236_vm2, %v1575_v43  ;;  %6651 = vmatprep.subr.bf16.mxu1 %v7622_v0  ;;  %v2242_v43 = vrot.slane %v2240_v37, 4  ;;  %v7355_v37 = vld [vmem:[#allocation2 + $0xa8] sm:$0xff]  }
  0xa3   : > { %6640 = vmatpush3.bf16.msra.mxu0 %v1731_v45  ;;  %6645 = vmatprep.mubr.msk.bf16.mxu0 %vm7623_vm0, %v7622_v0  ;;  %v2153_v45 = vrot.slane %v5915_v41, 1 }
  0xa4   : > { %6641 = vmatprep.subr.bf16.mxu0 %v7622_v0  ;;  %v2243_v46 = vor.u32 %v2242_v43, %v2239_v42  ;;  %v8052_v42 = vld [vmem:[%s7726_s9 + $0x14] sm:$0xf] }
  0xa5   : > { %6652 = vmatpush3.bf16.msra.mxu1 %v7302_v48  ;;  %v2394_v48 = vsel %vm240_vm1, %v7330_v44, 0  ;;  %v7357_v44 = vld [vmem:[#allocation2 + $0xa0] sm:$0xff]  }
  0xa6   : > { %6653 = vmatprep.subr.bf16.mxu1 %v7622_v0 }
  0xa7   : > { %6642 = vmatpush3.bf16.msra.mxu0 %v7301_v47  ;;  %v2328_v47 = vsel %vm240_vm1, %v7329_v39, 0  ;;  %v7356_v39 = vld [vmem:[#allocation2 + $0x8c] sm:$0xff]  }
  0xa8   : > { %6643 = vmatprep.subr.bf16.mxu0 %v7622_v0 }
  0xa9   : > { %6654 = vmatpush3.bf16.msra.mxu1 %v7304_v53  ;;  %v7336_v53 = vld [vmem:[#allocation2 + $0x4c] ss:$0 sps:$4 sm:$0xff]  }
  0xaa   : > { %6669 = vmatprep.subr.bf16.mxu1 %v7622_v0  ;;  %v2462_v60 = vsel %vm240_vm1, %v7336_v53, 0 }
  0xab   : > { %6644 = vmatpush3.bf16.msra.mxu0 %v7303_v52  ;;  %v7333_v52 = vld [vmem:[#allocation2] sm:$0xff]  }
  0xac   : > { %6659 = vmatprep.subr.bf16.mxu0 %v7622_v0  ;;  %6656 = vmatmul.mubr.msk.bf16.vlgmr.msra.gmra.mxu1 %vm236_vm2, %v1786_v61 }
  0xad   : > { %6670 = vmatpush3.bf16.msra.mxu1 %v1952_v63  ;;  %6675 = vmatprep.mubr.msk.bf16.mxu1 %vm7623_vm0, %v7622_v0  ;;  %v7338_v63 = vld [vmem:[#allocation2 + $0x44] sm:$0xff]  }
  0xae   : > { %6646 = vmatmul.mubr.msk.bf16.vlgmr.msra.gmra.mxu0 %vm236_vm2, %v1711_v59  ;;  %6671 = vmatprep.subr.bf16.mxu1 %v7622_v0  ;;  %v2308_v59 = vrot.slane %v5926_v55, 3 }
  0xaf   : > { %6660 = vmatpush3.bf16.msra.mxu0 %v1885_v62  ;;  %6665 = vmatprep.mubr.msk.bf16.mxu0 %vm7623_vm0, %v7622_v0  ;;  %v2543_v62 = vsel %vm240_vm1, %v7337_v57, 0 }
  0xb0   : > { %6661 = vmatprep.subr.bf16.mxu0 %v7622_v0 }
  0xb1   : > { %6672 = vmatpush3.bf16.msra.mxu1 %v7311_v4  ;;  %v7341_v4 = vld [vmem:[#allocation2 + $0x50] sm:$0xff]  }
  0xb2   : > { %6673 = vmatprep.subr.bf16.mxu1 %v7622_v0 }
  0xb3   : > { %6662 = vmatpush3.bf16.msra.mxu0 %v7310_v3  ;;  %v7340_v3 = vld [vmem:[#allocation2 + $0x3c] sm:$0xff]  }
  0xb4   : > { %6663 = vmatprep.subr.bf16.mxu0 %v7622_v0 }
  0xb5   : > { %6674 = vmatpush3.bf16.msra.mxu1 %v7313_v6 }
  0xb6   : > { %6689 = vmatprep.subr.bf16.mxu1 %v7622_v0 }
  0xb7   : > { %6664 = vmatpush3.bf16.msra.mxu0 %v7312_v5  ;;  %v7343_v5 = vld [vmem:[#allocation2 + $0x74] ss:$0 sps:$4 sm:$0xff]  }
  0xb8   : > { %6679 = vmatprep.subr.bf16.mxu0 %v7622_v0  ;;  %6676 = vmatmul.mubr.msk.bf16.vlgmr.msra.gmra.mxu1 %vm236_vm2, %v1849_v56  ;;  %v2505_v56 = vld [vmem:[%s7726_s9 + $0x14] sm:$0xf]  ;;  %v2615_v10 = vsel %vm240_vm1, %v7343_v5, 0 }
  0xb9   : > { %6690 = vmatpush3.bf16.msra.mxu1 %v2101_v16  ;;  %6695 = vmatprep.mubr.msk.bf16.mxu1 %vm7623_vm0, %v7622_v0  ;;  %v5939_v61 = vcombine.low %v2505_v56, %v7996_v58  ;;  %v2658_v16 = vld [vmem:[%s7726_s9 + $0x18] sm:$0xe] }
  0xba   : > { %6666 = vmatmul.mubr.msk.bf16.vlgmr.msra.gmra.mxu0 %vm236_vm2, %v1865_v13  ;;  %6691 = vmatprep.subr.bf16.mxu1 %v7622_v0  ;;  %v7345_v13 = vld [vmem:[#allocation2 + $0x6c] sm:$0xff]   ;;  %v5949_v23 = vcombine.low %v2658_v16, %v2659_v17  ;;  %v7363_v5 = vld [vmem:[#allocation2 + $0x14] sm:$0xff]  }
  0xbb   : > { %6680 = vmatpush3.bf16.msra.mxu0 %v2020_v15  ;;  %6685 = vmatprep.mubr.msk.bf16.mxu0 %vm7623_vm0, %v7622_v0  ;;  %v2520_v2 = vshll.u32 %v5939_v61, 16  ;;  %v2518_v6 = vshrl.u32 %v5939_v61, 16  ;;  %v7346_v15 = vld [vmem:[#allocation2 + $0x80] sm:$0xff]   ;;  %v3032_v17 = vld [vmem:[%s7726_s9 + $0x14] sm:$0xe] }
  0xbc   : > { %6681 = vmatprep.subr.bf16.mxu0 %v7622_v0  ;;  %v2670_v27 = vrot.slane %v5949_v23, 1 }
  0xbd   : > { %6692 = vmatpush3.bf16.msra.mxu1 %v7317_v19  ;;  %v2522_v7 = vrot.slane %v2520_v2, 1  ;;  %v2733_v19 = vld [vmem:[%s7726_s9 + $0x1c] sm:$0x3] }
  0xbe   : > { %6693 = vmatprep.subr.bf16.mxu1 %v7622_v0 }
  0xbf   : > { %6682 = vmatpush3.bf16.msra.mxu0 %v7316_v18  ;;  %v2523_v11 = vor.u32 %v2522_v7, %v2518_v6  ;;  %v7347_v18 = vld [vmem:[#allocation2 + $0x64] sm:$0xff]  }
  0xc0   : > { %6683 = vmatprep.subr.bf16.mxu0 %v7622_v0  ;;  %v7364_v7 = vld [vmem:[#allocation2] sm:$0xff]  }
  0xc1   : > { %6694 = vmatpush3.bf16.msra.mxu1 %v7319_v26  ;;  %v2595_v26 = vrot.slane %v5944_v22, 1 }
  0xc2   : > { %6709 = vmatprep.subr.bf16.mxu1 %v7622_v0 }
  0xc3   : > { %6684 = vmatpush3.bf16.msra.mxu0 %v7318_v20  ;;  %v7352_v20 = vld [vmem:[#allocation2 + $0x9c] ss:$0 sps:$4 sm:$0xff]  }
  0xc4   : > { %6699 = vmatprep.subr.bf16.mxu0 %v7622_v0  ;;  %6696 = vmatmul.mubr.msk.bf16.vlgmr.msra.gmra.mxu1 %vm236_vm2, %v2081_v30 }
  0xc5   : > { %6710 = vmatpush3.bf16.msra.mxu1 %v2263_v32  ;;  %6715 = vmatprep.mubr.msk.bf16.mxu1 %vm7623_vm0, %v7622_v0 }
  0xc6   : > { %6686 = vmatmul.mubr.msk.bf16.vlgmr.msra.gmra.mxu0 %vm236_vm2, %v1995_v28  ;;  %6711 = vmatprep.subr.bf16.mxu1 %v7622_v0  ;;  %v2769_v28 = vsel %vm240_vm1, %v7352_v20, 0  ;;  %v3104_v20 = vld [vmem:[%s7726_s9 + $0x18] sm:$0xe] }
  0xc7   : > { %6700 = vmatpush3.bf16.msra.mxu0 %v2173_v31  ;;  %6705 = vmatprep.mubr.msk.bf16.mxu0 %vm7623_vm0, %v7622_v0 }
  0xc8   : > { %6701 = vmatprep.subr.bf16.mxu0 %v7622_v0 }
  0xc9   : > { %6712 = vmatpush3.bf16.msra.mxu1 %v7324_v34  ;;  %v2812_v34 = vld [vmem:[%s7726_s9 + $0x18] sm:$0xc] }
  0xca   : > { %6713 = vmatprep.subr.bf16.mxu1 %v7622_v0 }
  0xcb   : > { %6702 = vmatpush3.bf16.msra.mxu0 %v7323_v33  ;;  %v7354_v33 = vld [vmem:[#allocation2 + $0x94] sm:$0xff]  }
  0xcc   : > { %6703 = vmatprep.subr.bf16.mxu0 %v7622_v0 }
  0xcd   : > { %6714 = vmatpush3.bf16.msra.mxu1 %v7326_v40 }
  0xce   : > { %6729 = vmatprep.subr.bf16.mxu1 %v7622_v0 }
  0xcf   : > { %6704 = vmatpush3.bf16.msra.mxu0 %v7325_v38 }
  0xd0   : > { %6719 = vmatprep.subr.bf16.mxu0 %v7622_v0  ;;  %6716 = vmatmul.mubr.msk.bf16.vlgmr.msra.gmra.mxu1 %vm236_vm2, %v2243_v46  ;;  %v7359_v46 = vld [vmem:[#allocation2 + $0x24] ss:$0 sps:$4 sm:$0xff]  }
  0xd1   : > { %6730 = vmatpush3.bf16.msra.mxu1 %v2394_v48  ;;  %6735 = vmatprep.mubr.msk.bf16.mxu1 %vm7623_vm0, %v7622_v0  ;;  %v7360_v48 = vld [vmem:[#allocation2 + $0x10] ss:$0 sps:$4 sm:$0xff]   ;;  %v2929_v55 = vsel %vm240_vm1, %v7359_v46, 0 }
  0xd2   : > { %6706 = vmatmul.mubr.msk.bf16.vlgmr.msra.gmra.mxu0 %vm236_vm2, %v2153_v45  ;;  %6731 = vmatprep.subr.bf16.mxu1 %v7622_v0  ;;  %v5959_v45 = vcombine.low %v2812_v34, %v2733_v19  ;;  %v2990_v56 = vsel %vm240_vm1, %v7360_v48, 0 }
  0xd3   : > { %6720 = vmatpush3.bf16.msra.mxu0 %v2328_v47  ;;  %6725 = vmatprep.mubr.msk.bf16.mxu0 %vm7623_vm0, %v7622_v0 }
  0xd4   : > { %6721 = vmatprep.subr.bf16.mxu0 %v7622_v0  ;;  %v2821_v53 = vrot.slane %v5959_v45, 2 }
  0xd5   : > { %6732 = vmatpush3.bf16.msra.mxu1 %v7332_v51 }
  0xd6   : > { %6733 = vmatprep.subr.bf16.mxu1 %v7622_v0 }
  0xd7   : > { %6722 = vmatpush3.bf16.msra.mxu0 %v7331_v49  ;;  %v8057_v49 = vld [vmem:[%s7726_s9 + $0x18] sm:$0x1] }
  0xd8   : > { %6723 = vmatprep.subr.bf16.mxu0 %v7622_v0  ;;  %v5974_v24 = vcombine.low %v3032_v17, %v8057_v49 }
  0xd9   : > { %6734 = vmatpush3.bf16.msra.mxu1 %v7334_v54  ;;  %v5965_v54 = vcombine.low %v8052_v42, %v8057_v49  ;;  %v7378_v49 = vld [vmem:[#allocation2 + $0x6c] sm:$0xff]  }
  0xda   : > { %6749 = vmatprep.subr.bf16.mxu1 %v7622_v0 }
  0xdb   : > { %6724 = vmatpush3.bf16.msra.mxu0 %v7333_v52  ;;  %v2906_v58 = vshll.u32 %v5965_v54, 16  ;;  %v2904_v2 = vshrl.u32 %v5965_v54, 16 }
  0xdc   : > { %6739 = vmatprep.subr.bf16.mxu0 %v7622_v0  ;;  %6736 = vmatmul.mubr.msk.bf16.vlgmr.msra.gmra.mxu1 %vm236_vm2, %v7957_v25  ;;  %v5954_v25 = vcombine.low %v2658_v16, %v2733_v19  ;;  %v7368_v16 = vld [vmem:[#allocation2 + $0x30] sm:$0xff]   ;;  %v7369_v19 = vld [vmem:[#allocation2 + $0x44] sm:$0xff]  }
  0xdd   : > { %6750 = vmatpush3.bf16.msra.mxu1 %v2543_v62  ;;  %6755 = vmatprep.mubr.msk.bf16.mxu1 %vm7623_vm0, %v7622_v0  ;;  %v7362_v62 = vld [vmem:[#allocation2 + $0x8] sm:$0xff]  }
  0xde   : > { %6726 = vmatmul.mubr.msk.bf16.vlgmr.msra.gmra.mxu0 %vm236_vm2, %v2308_v59  ;;  %6751 = vmatprep.subr.bf16.mxu1 %v7622_v0  ;;  %v2743_v30 = vshrl.u32 %v5954_v25, 16  ;;  %v2746_v31 = vshll.u32 %v5954_v25, 16 }
  0xdf   : > { %6740 = vmatpush3.bf16.msra.mxu0 %v2462_v60  ;;  %6745 = vmatprep.mubr.msk.bf16.mxu0 %vm7623_vm0, %v7622_v0  ;;  %v7361_v60 = vld [vmem:[#allocation2 + $0x1c] sm:$0xff]  }
  0xe0   : > { %6741 = vmatprep.subr.bf16.mxu0 %v7622_v0  ;;  %v2745_v40 = vrot.slane %v2743_v30, 1  ;;  %v2748_v41 = vrot.slane %v2746_v31, 2  ;;  %v7371_v31 = vld [vmem:[#allocation2 + $0x3c] sm:$0xff]  }
  0xe1   : > { %6752 = vmatpush3.bf16.msra.mxu1 %v7339_v1 }
  0xe2   : > { %6753 = vmatprep.subr.bf16.mxu1 %v7622_v0  ;;  %v2749_v52 = vor.u32 %v2748_v41, %v2745_v40 }
  0xe3   : > { %6742 = vmatpush3.bf16.msra.mxu0 %v7338_v63 }
  0xe4   : > { %6743 = vmatprep.subr.bf16.mxu0 %v7622_v0 }
  0xe5   : > { %6754 = vmatpush3.bf16.msra.mxu1 %v7341_v4 }
  0xe6   : > { %6769 = vmatprep.subr.bf16.mxu1 %v7622_v0 }
  0xe7   : > { %6744 = vmatpush3.bf16.msra.mxu0 %v7340_v3  ;;  %v2908_v3 = vrot.slane %v2906_v58, 1  ;;  %v7380_v58 = vld [vmem:[#allocation2 + $0x64] sm:$0xff]  }
  0xe8   : > { %6759 = vmatprep.subr.bf16.mxu0 %v7622_v0  ;;  %6756 = vmatmul.mubr.msk.bf16.vlgmr.msra.gmra.mxu1 %vm236_vm2, %v2523_v11 }
  0xe9   : > { %6770 = vmatpush3.bf16.msra.mxu1 %v2690_v12  ;;  %6775 = vmatprep.mubr.msk.bf16.mxu1 %vm7623_vm0, %v7622_v0  ;;  %v2909_v11 = vor.u32 %v2908_v3, %v2904_v2  ;;  %v3061_v12 = vsel %vm240_vm1, %v7366_v8, 0  ;;  %v7383_v3 = vld [vmem:[#allocation2 + $0x9c] ss:$0 sps:$4 sm:$0xff]  }
  0xea   : > { %6746 = vmatmul.mubr.msk.bf16.vlgmr.msra.gmra.mxu0 %vm236_vm2, %v2437_v9  ;;  %6771 = vmatprep.subr.bf16.mxu1 %v7622_v0 }
  0xeb   : > { %6760 = vmatpush3.bf16.msra.mxu0 %v2615_v10  ;;  %6765 = vmatprep.mubr.msk.bf16.mxu0 %vm7623_vm0, %v7622_v0  ;;  %v7367_v10 = vld [vmem:[#allocation2 + $0x4c] ss:$0 sps:$4 sm:$0xff]  }
  0xec   : > { %6761 = vmatprep.subr.bf16.mxu0 %v7622_v0 }
  0xed   : > { %6772 = vmatpush3.bf16.msra.mxu1 %v7346_v15 }
  0xee   : > { %6773 = vmatprep.subr.bf16.mxu1 %v7622_v0 }
  0xef   : > { %6762 = vmatpush3.bf16.msra.mxu0 %v7345_v13  ;;  %v3136_v13 = vsel %vm240_vm1, %v7367_v10, 0 }
  0xf0   : > { %6763 = vmatprep.subr.bf16.mxu0 %v7622_v0 }
  0xf1   : > { %6774 = vmatpush3.bf16.msra.mxu1 %v7348_v21  ;;  %v3105_v21 = vld [vmem:[%s7726_s9 + $0x1c] sm:$0x1] }
  0xf2   : > { %6789 = vmatprep.subr.bf16.mxu1 %v7622_v0 }
  0xf3   : > { %6764 = vmatpush3.bf16.msra.mxu0 %v7347_v18 }
  0xf4   : > { %6779 = vmatprep.subr.bf16.mxu0 %v7622_v0  ;;  %v8044_v35 = vpop.f32.mrf.mxu1  ;;  %6776 = vmatmul.mubr.msk.bf16.vlgmr.msra.gmra.mxu1 %vm236_vm2, %v2670_v27  ;;  %v7370_v27 = vld [vmem:[#allocation2 + $0x28] sm:$0xff]  }
  0xf5   : > { %6790 = vmatpush3.bf16.msra.mxu1 %v2841_v29  ;;  %6795 = vmatprep.mubr.msk.bf16.mxu1 %vm7623_vm0, %v7622_v0  ;;  %v3179_v29 = vld [vmem:[%s7726_s9 + $0x1c] sm:$0x3] }
  0xf6   : > { %v8040_v32 = vpop.f32.mrf.mxu0  ;;  %6766 = vmatmul.mubr.msk.bf16.vlgmr.msra.gmra.mxu0 %vm236_vm2, %v2595_v26  ;;  %v6457_v38 = vpop.f32.mrf.mxu1  ;;  %6791 = vmatprep.subr.bf16.mxu1 %v7622_v0 }
  0xf7   : > { %6780 = vmatpush3.bf16.msra.mxu0 %v2769_v28  ;;  %6785 = vmatprep.mubr.msk.bf16.mxu0 %vm7623_vm0, %v7622_v0  ;;  %v340_v25 = vadd.f32 %v8044_v35, %v8040_v32  ;;  %v5979_v28 = vcombine.low %v3104_v20, %v3105_v21  ;;  %v3041_v38 = vrot.slane %v5974_v24, 1  ;;  %v7387_v24 = vld [vmem:[#allocation2 + $0x8c] sm:$0xff]  }
  0xf8   : > { %v6447_v36 = vpop.f32.mrf.mxu0  ;;  %6781 = vmatprep.subr.bf16.mxu0 %v7622_v0  ;;  %v342_v47 = vpop.f32.mrf.mxu1 }
  0xf9   : > { %6792 = vmatpush3.bf16.msra.mxu1 %v7355_v37  ;;  %v7376_v37 = vld [vmem:[#allocation2 + $0x74] ss:$0 sps:$4 sm:$0xff]   ;;  %v3116_v32 = vrot.slane %v5979_v28, 1  ;;  %v7377_v47 = vld [vmem:[#allocation2 + $0x58] sm:$0xff]   ;;  %v7390_v28 = vld [vmem:[#allocation2 + $0xb0] ss:$0 sps:$4 sm:$0xff]  }
  0xfa   : > { %v281_v43 = vpop.f32.mrf.mxu0  ;;  %v6458_v51 = vpop.f32.mrf.mxu1  ;;  %6793 = vmatprep.subr.bf16.mxu1 %v7622_v0  ;;  %v3287_v41 = vsel %vm240_vm1, %v7376_v37, 0 }
  0xfb   : > { %6782 = vmatpush3.bf16.msra.mxu0 %v7354_v33  ;;  %v7375_v33 = vld [vmem:[#allocation2 + $0x60] ss:$0 sps:$4 sm:$0xff]  }
  0xfc   : > { %v6448_v50 = vpop.f32.mrf.mxu0  ;;  %6783 = vmatprep.subr.bf16.mxu0 %v7622_v0  ;;  %v3215_v35 = vsel %vm240_vm1, %v7375_v33, 0  ;;  %v7391_v33 = vld [vmem:[#allocation2 + $0x24] ss:$0 sps:$4 sm:$0xff]  }
  0xfd   : > { %6794 = vmatpush3.bf16.msra.mxu1 %v7357_v44  ;;  %v3258_v50 = vld [vmem:[%s7726_s9 + $0x18] sm:$0xc] }
  0xfe   : > { %6809 = vmatprep.subr.bf16.mxu1 %v7622_v0 }
  0xff   : > { %6784 = vmatpush3.bf16.msra.mxu0 %v7356_v39  ;;  %v5984_v39 = vcombine.low %v3104_v20, %v3179_v29 }
 0x100   : > { %6799 = vmatprep.subr.bf16.mxu0 %v7622_v0  ;;  %v8070_v59 = vpop.f32.mrf.mxu1  ;;  %6796 = vmatmul.mubr.msk.bf16.vlgmr.msra.gmra.mxu1 %vm236_vm2, %v2821_v53 }
 0x101   : > { %6810 = vmatpush3.bf16.msra.mxu1 %v2990_v56  ;;  %6815 = vmatprep.mubr.msk.bf16.mxu1 %vm7623_vm0, %v7622_v0  ;;  %v3189_v43 = vshrl.u32 %v5984_v39, 16  ;;  %v3192_v44 = vshll.u32 %v5984_v39, 16  ;;  %v3603_v39 = vsel %vm240_vm1, %v7391_v33, 0 }
 0x102   : > { %v8067_v57 = vpop.f32.mrf.mxu0  ;;  %6786 = vmatmul.mubr.msk.bf16.vlgmr.msra.gmra.mxu0 %vm236_vm2, %v2749_v52  ;;  %v6477_v63 = vpop.f32.mrf.mxu1  ;;  %6811 = vmatprep.subr.bf16.mxu1 %v7622_v0 }
 0x103   : > { %6800 = vmatpush3.bf16.msra.mxu0 %v2929_v55  ;;  %6805 = vmatprep.mubr.msk.bf16.mxu0 %vm7623_vm0, %v7622_v0  ;;  %v417_v34 = vadd.f32 %v8067_v57, %v340_v25  ;;  %v3191_v53 = vrot.slane %v3189_v43, 1  ;;  %v3194_v54 = vrot.slane %v3192_v44, 2  ;;  %v7379_v57 = vld [vmem:[#allocation2 + $0x50] sm:$0xff]   ;;  %v8127_v63 = vld [vmem:[%s7726_s9 + $0x20] sm:$0x7] }
 0x104   : > { %v6467_v61 = vpop.f32.mrf.mxu0  ;;  %6801 = vmatprep.subr.bf16.mxu0 %v7622_v0  ;;  %v490_v4 = vpop.f32.mrf.mxu1 }
 0x105   : > { %6812 = vmatpush3.bf16.msra.mxu1 %v7362_v62  ;;  %v493_v40 = vadd.f32 %v8070_v59, %v417_v34  ;;  %v5989_v59 = vcombine.low %v3258_v50, %v3179_v29  ;;  %v7382_v61 = vld [vmem:[#allocation2 + $0x88] ss:$0 sps:$4 sm:$0xff]   ;;  %v3330_v62 = vld [vmem:[%s7726_s9 + $0x1c] sm:$0xc]  ;;  %v3195_v4 = vor.u32 %v3194_v54, %v3191_v53  ;;  %v8152_v29 = vld [vmem:[%s7726_s9 + $0x18] sm:$0xe] }
 0x106   : > { %v414_v1 = vpop.f32.mrf.mxu0  ;;  %v6478_v9 = vpop.f32.mrf.mxu1  ;;  %6813 = vmatprep.subr.bf16.mxu1 %v7622_v0  ;;  %v7394_v50 = vld [vmem:[#allocation2 + $0xa0] sm:$0xff]   ;;  %v7395_v54 = vld [vmem:[#allocation2 + $0x14] sm:$0xff]  }
 0x107   : > { %6802 = vmatpush3.bf16.msra.mxu0 %v7361_v60  ;;  %v3441_v9 = vsel %vm240_vm1, %v7383_v3, 0 }
 0x108   : > { %v6468_v6 = vpop.f32.mrf.mxu0  ;;  %6803 = vmatprep.subr.bf16.mxu0 %v7622_v0 }
 0x109   : > { %6814 = vmatpush3.bf16.msra.mxu1 %v7364_v7  ;;  %v5999_v6 = vcombine.low %v3330_v62, %v8127_v63  ;;  %v3362_v7 = vsel %vm240_vm1, %v7382_v61, 0 }
 0x10a   : > { %6829 = vmatprep.subr.bf16.mxu1 %v7622_v0 }
 0x10b   : > { %6804 = vmatpush3.bf16.msra.mxu0 %v7363_v5  ;;  %v3267_v5 = vrot.slane %v5989_v59, 2 }
 0x10c   : > { %6819 = vmatprep.subr.bf16.mxu0 %v7622_v0  ;;  %v8086_v15 = vpop.f32.mrf.mxu1  ;;  %6816 = vmatmul.mubr.msk.bf16.vlgmr.msra.gmra.mxu1 %vm236_vm2, %v8052_v42 }
 0x10d   : > { %6830 = vmatpush3.bf16.msra.mxu1 %v3136_v13  ;;  %6835 = vmatprep.mubr.msk.bf16.mxu1 %vm7623_vm0, %v7622_v0  ;;  %v7384_v13 = vld [vmem:[#allocation2 + $0x80] sm:$0xff]  }
 0x10e   : > { %v567_v14 = vpop.f32.mrf.mxu0  ;;  %6806 = vmatmul.mubr.msk.bf16.vlgmr.msra.gmra.mxu0 %vm236_vm2, %v2909_v11  ;;  %v6497_v22 = vpop.f32.mrf.mxu1  ;;  %6831 = vmatprep.subr.bf16.mxu1 %v7622_v0 }
 0x10f   : > { %6820 = vmatpush3.bf16.msra.mxu0 %v3061_v12  ;;  %6825 = vmatprep.mubr.msk.bf16.mxu0 %vm7623_vm0, %v7622_v0  ;;  %v573_v45 = vadd.f32 %v567_v14, %v493_v40  ;;  %v3331_v14 = vld [vmem:[%s7726_s9 + $0x20] sm:$0x3]  ;;  %v7392_v40 = vld [vmem:[#allocation2 + $0xa8] sm:$0xff]  }
 0x110   : > { %v6487_v18 = vpop.f32.mrf.mxu0  ;;  %6821 = vmatprep.subr.bf16.mxu0 %v7622_v0  ;;  %v643_v26 = vpop.f32.mrf.mxu1  ;;  %v5994_v21 = vcombine.low %v3330_v62, %v3331_v14 }
 0x111   : > { %6832 = vmatpush3.bf16.msra.mxu1 %v7369_v19  ;;  %v646_v55 = vadd.f32 %v8086_v15, %v573_v45  ;;  %v3415_v15 = vshrl.u32 %v5999_v6, 16  ;;  %v7385_v18 = vld [vmem:[#allocation2 + $0x94] sm:$0xff]   ;;  %v7393_v45 = vld [vmem:[#allocation2 + $0x1c] sm:$0xff]  }
 0x112   : > { %v570_v23 = vpop.f32.mrf.mxu0  ;;  %v6498_v36 = vpop.f32.mrf.mxu1  ;;  %6833 = vmatprep.subr.bf16.mxu1 %v7622_v0  ;;  %v3342_v34 = vrot.slane %v5994_v21, 2 }
 0x113   : > { %6822 = vmatpush3.bf16.msra.mxu0 %v7368_v16  ;;  %v3418_v16 = vshll.u32 %v5999_v6, 16  ;;  %v7386_v23 = vld [vmem:[#allocation2 + $0x78] sm:$0xff]   ;;  %v3417_v25 = vrot.slane %v3415_v15, 2  ;;  %v7406_v15 = vld [vmem:[#allocation2 + $0x4c] ss:$0 sps:$4 sm:$0xff]  }
 0x114   : > { %v6488_v30 = vpop.f32.mrf.mxu0  ;;  %6823 = vmatprep.subr.bf16.mxu0 %v7622_v0 }
 0x115   : > { %6834 = vmatpush3.bf16.msra.mxu1 %v7371_v31  ;;  %v3420_v26 = vrot.slane %v3418_v16, 3  ;;  %v8155_v30 = vld [vmem:[%s7726_s9 + $0x1c] sm:$0x3]  ;;  %v3782_v16 = vld [vmem:[%s7726_s9 + $0x1c] sm:$0xc] }
 0x116   : > { %6849 = vmatprep.subr.bf16.mxu1 %v7622_v0  ;;  %v6010_v37 = vcombine.low %v8152_v29, %v8155_v30 }
 0x117   : > { %6824 = vmatpush3.bf16.msra.mxu0 %v7370_v27  ;;  %v3421_v36 = vor.u32 %v3420_v26, %v3417_v25 }
 0x118   : > { %6839 = vmatprep.subr.bf16.mxu0 %v7622_v0  ;;  %v796_v46 = vpop.f32.mrf.mxu1  ;;  %6836 = vmatmul.mubr.msk.bf16.vlgmr.msra.gmra.mxu1 %vm236_vm2, %v3116_v32  ;;  %v3580_v43 = vshll.u32 %v6010_v37, 16 }
 0x119   : > { %6850 = vmatpush3.bf16.msra.mxu1 %v3287_v41  ;;  %6855 = vmatprep.mubr.msk.bf16.mxu1 %vm7623_vm0, %v7622_v0  ;;  %v3484_v41 = vld [vmem:[%s7726_s9 + $0x1c] sm:$0x8] }
 0x11a   : > { %v716_v42 = vpop.f32.mrf.mxu0  ;;  %6826 = vmatmul.mubr.msk.bf16.vlgmr.msra.gmra.mxu0 %vm236_vm2, %v3041_v38  ;;  %v6517_v51 = vpop.f32.mrf.mxu1  ;;  %6851 = vmatprep.subr.bf16.mxu1 %v7622_v0  ;;  %v3513_v38 = vsel %vm240_vm1, %v7390_v28, 0 }
 0x11b   : > { %6840 = vmatpush3.bf16.msra.mxu0 %v3215_v35  ;;  %6845 = vmatprep.mubr.msk.bf16.mxu0 %vm7623_vm0, %v7622_v0  ;;  %v722_v1 = vadd.f32 %v716_v42, %v646_v55  ;;  %v3577_v42 = vshrl.u32 %v6010_v37, 16  ;;  %v7398_v55 = vld [vmem:[#allocation2 + $0x10] ss:$0 sps:$4 sm:$0xff]  }
 0x11c   : > { %v6507_v48 = vpop.f32.mrf.mxu0  ;;  %6841 = vmatprep.subr.bf16.mxu0 %v7622_v0  ;;  %v799_v56 = vpop.f32.mrf.mxu1 }
 0x11d   : > { %6852 = vmatpush3.bf16.msra.mxu1 %v7378_v49  ;;  %v802_v8 = vadd.f32 %v796_v46, %v722_v1  ;;  %v6004_v48 = vcombine.low %v3484_v41, %v8127_v63  ;;  %v3579_v51 = vrot.slane %v3577_v42, 1  ;;  %v7400_v1 = vld [vmem:[#allocation2 + $0x8] sm:$0xff]  }
 0x11e   : > { %v719_v52 = vpop.f32.mrf.mxu0  ;;  %v6518_v2 = vpop.f32.mrf.mxu1  ;;  %6853 = vmatprep.subr.bf16.mxu1 %v7622_v0 }
 0x11f   : > { %6842 = vmatpush3.bf16.msra.mxu0 %v7377_v47  ;;  %v3582_v52 = vrot.slane %v3580_v43, 2  ;;  %v3559_v2 = vld [vmem:[%s7726_s9 + $0x1c] sm:$0x1] }
 0x120   : > { %v6508_v60 = vpop.f32.mrf.mxu0  ;;  %6843 = vmatprep.subr.bf16.mxu0 %v7622_v0 }
 0x121   : > { %6854 = vmatpush3.bf16.msra.mxu1 %v7380_v58  ;;  %v3493_v58 = vrot.slane %v6004_v48, 3  ;;  %v3583_v59 = vor.u32 %v3582_v52, %v3579_v51  ;;  %v3668_v60 = vsel %vm240_vm1, %v7398_v55, 0  ;;  %v7415_v48 = vld [vmem:[#allocation2 + $0x88] ss:$0 sps:$4 sm:$0xff]  }
 0x122   : > { %6869 = vmatprep.subr.bf16.mxu1 %v7622_v0 }
 0x123   : > { %6844 = vmatpush3.bf16.msra.mxu0 %v7379_v57  ;;  %v7399_v57 = vld [vmem:[#allocation2 + $0x38] ss:$0 sps:$4 sm:$0xff]  }
 0x124   : > { %6859 = vmatprep.subr.bf16.mxu0 %v7622_v0  ;;  %v8137_v12 = vpop.f32.mrf.mxu1  ;;  %6856 = vmatmul.mubr.msk.bf16.vlgmr.msra.gmra.mxu1 %vm236_vm2, %v3267_v5  ;;  %v3739_v61 = vsel %vm240_vm1, %v7399_v57, 0  ;;  %v3710_v5 = vld [vmem:[%s7726_s9 + $0x18] sm:$0xc]  ;;  %v7416_v57 = vld [vmem:[#allocation2 + $0x6c] sm:$0xff]  }
 0x125   : > { %6870 = vmatpush3.bf16.msra.mxu1 %v3441_v9  ;;  %6875 = vmatprep.mubr.msk.bf16.mxu1 %vm7623_vm0, %v7622_v0 }
 0x126   : > { %v869_v10 = vpop.f32.mrf.mxu0  ;;  %6846 = vmatmul.mubr.msk.bf16.vlgmr.msra.gmra.mxu0 %vm236_vm2, %v3195_v4  ;;  %v6537_v19 = vpop.f32.mrf.mxu1  ;;  %6871 = vmatprep.subr.bf16.mxu1 %v7622_v0  ;;  %v7401_v4 = vld [vmem:[#allocation2 + $0x30] sm:$0xff]  }
 0x127   : > { %v875_v11 = vadd.f32 %v869_v10, %v802_v8  ;;  %6860 = vmatpush3.bf16.msra.mxu0 %v3362_v7  ;;  %6865 = vmatprep.mubr.msk.bf16.mxu0 %vm7623_vm0, %v7622_v0  ;;  %v6015_v8 = vcombine.low %v8152_v29, %v3559_v2  ;;  %v7402_v10 = vld [vmem:[#allocation2] sm:$0xff]  }
 0x128   : > { %v6527_v17 = vpop.f32.mrf.mxu0  ;;  %6861 = vmatprep.subr.bf16.mxu0 %v7622_v0  ;;  %v961_v22 = vpop.f32.mrf.mxu1  ;;  %v7408_v29 = vld [vmem:[#allocation2 + $0x44] sm:$0xff]  }
 0x129   : > { %876 = vst [vmem:[%s8142_s17] sm:$0xff] %v875_v11  ;;  %6872 = vmatpush3.bf16.msra.mxu1 %v7385_v18  ;;  %v7403_v11 = vld [vmem:[#allocation2 + $0x28] sm:$0xff]   ;;  %v8199_v17 = vld [vmem:[%s7726_s9 + $0x20] sm:$0x7]  ;;  %v3648_v21 = vrot.slane %v6015_v8, 1 }
 0x12a   : > { %v872_v20 = vpop.f32.mrf.mxu0  ;;  %v6538_v31 = vpop.f32.mrf.mxu1  ;;  %6873 = vmatprep.subr.bf16.mxu1 %v7622_v0 }
 0x12b   : > { %6862 = vmatpush3.bf16.msra.mxu0 %v7384_v13  ;;  %v6020_v13 = vcombine.low %v3710_v5, %v8155_v30  ;;  %v7407_v20 = vld [vmem:[#allocation2 + $0x60] ss:$0 sps:$4 sm:$0xff]   ;;  %v7418_v5 = vld [vmem:[#allocation2 + $0x64] sm:$0xff]  }
 0x12c   : > { %v6528_v27 = vpop.f32.mrf.mxu0  ;;  %6863 = vmatprep.subr.bf16.mxu0 %v7622_v0  ;;  %v3783_v30 = vld [vmem:[%s7726_s9 + $0x20] sm:$0x3] }
 0x12d   : > { %6874 = vmatpush3.bf16.msra.mxu1 %v7387_v24  ;;  %v3719_v22 = vrot.slane %v6020_v13, 2  ;;  %v3814_v24 = vsel %vm240_vm1, %v7406_v15, 0  ;;  %v7424_v13 = vld [vmem:[#allocation2 + $0xb0] ss:$0 sps:$4 sm:$0xff]  }
 0x12e   : > { %6889 = vmatprep.subr.bf16.mxu1 %v7622_v0 }
 0x12f   : > { %6864 = vmatpush3.bf16.msra.mxu0 %v7386_v23  ;;  %v6030_v23 = vcombine.low %v3782_v16, %v8199_v17 }
 0x130   : > { %6879 = vmatprep.subr.bf16.mxu0 %v7622_v0  ;;  %v8167_v35 = vpop.f32.mrf.mxu1  ;;  %6876 = vmatmul.mubr.msk.bf16.vlgmr.msra.gmra.mxu1 %vm236_vm2, %v3421_v36  ;;  %v7409_v36 = vld [vmem:[#allocation2 + $0x58] sm:$0xff]  }
 0x131   : > { %6890 = vmatpush3.bf16.msra.mxu1 %v3603_v39  ;;  %6895 = vmatprep.mubr.msk.bf16.mxu1 %vm7623_vm0, %v7622_v0  ;;  %v3867_v31 = vshrl.u32 %v6030_v23, 16  ;;  %v3870_v33 = vshll.u32 %v6030_v23, 16  ;;  %v6025_v39 = vcombine.low %v3782_v16, %v3783_v30  ;;  %v7425_v23 = vld [vmem:[#allocation2 + $0x94] sm:$0xff]   ;;  %v7427_v30 = vld [vmem:[#allocation2 + $0x8c] sm:$0xff]  }
 0x132   : > { %v8164_v32 = vpop.f32.mrf.mxu0  ;;  %6866 = vmatmul.mubr.msk.bf16.vlgmr.msra.gmra.mxu0 %vm236_vm2, %v3342_v34  ;;  %v6557_v46 = vpop.f32.mrf.mxu1  ;;  %6891 = vmatprep.subr.bf16.mxu1 %v7622_v0 }
 0x133   : > { %6880 = vmatpush3.bf16.msra.mxu0 %v3513_v38  ;;  %6885 = vmatprep.mubr.msk.bf16.mxu0 %vm7623_vm0, %v7622_v0  ;;  %v1024_v18 = vadd.f32 %v8164_v32, %v8137_v12  ;;  %v3893_v12 = vsel %vm240_vm1, %v7407_v20, 0  ;;  %v3869_v41 = vrot.slane %v3867_v31, 2  ;;  %v3872_v42 = vrot.slane %v3870_v33, 3  ;;  %v4231_v31 = vld [vmem:[%s7726_s9 + $0x1c] sm:$0xc] }
 0x134   : > { %v6547_v44 = vpop.f32.mrf.mxu0  ;;  %6881 = vmatprep.subr.bf16.mxu0 %v7622_v0  ;;  %v1097_v49 = vpop.f32.mrf.mxu1  ;;  %v8262_v33 = vld [vmem:[%s7726_s9 + $0x20] sm:$0x7] }
 0x135   : > { %6892 = vmatpush3.bf16.msra.mxu1 %v7393_v45  ;;  %v1100_v25 = vadd.f32 %v8167_v35, %v1024_v18  ;;  %v7411_v44 = vld [vmem:[#allocation2 + $0x50] sm:$0xff]   ;;  %v3794_v49 = vrot.slane %v6025_v39, 2  ;;  %v4186_v18 = vsel %vm240_vm1, %v7424_v13, 0 }
 0x136   : > { %v1026_v47 = vpop.f32.mrf.mxu0  ;;  %v6558_v56 = vpop.f32.mrf.mxu1  ;;  %6893 = vmatprep.subr.bf16.mxu1 %v7622_v0  ;;  %v7414_v45 = vld [vmem:[#allocation2 + $0x74] ss:$0 sps:$4 sm:$0xff]   ;;  %v7430_v39 = vld [vmem:[#allocation2 + $0x10] ss:$0 sps:$4 sm:$0xff]  }
 0x137   : > { %6882 = vmatpush3.bf16.msra.mxu0 %v7392_v40  ;;  %v7410_v40 = vld [vmem:[#allocation2 + $0x3c] sm:$0xff]   ;;  %v3965_v51 = vsel %vm240_vm1, %v7414_v45, 0 }
 0x138   : > { %v6548_v53 = vpop.f32.mrf.mxu0  ;;  %6883 = vmatprep.subr.bf16.mxu0 %v7622_v0 }
 0x139   : > { %6894 = vmatpush3.bf16.msra.mxu1 %v7395_v54  ;;  %v4040_v53 = vsel %vm240_vm1, %v7415_v48, 0  ;;  %v7432_v48 = vld [vmem:[#allocation2 + $0x8] sm:$0xff]  }
 0x13a   : > { %6909 = vmatprep.subr.bf16.mxu1 %v7622_v0 }
 0x13b   : > { %6884 = vmatpush3.bf16.msra.mxu0 %v7394_v50  ;;  %v3873_v50 = vor.u32 %v3872_v42, %v3869_v41  ;;  %v4341_v41 = vsel %vm240_vm1, %v7430_v39, 0 }
 0x13c   : > { %6899 = vmatprep.subr.bf16.mxu0 %v7622_v0  ;;  %v1248_v63 = vpop.f32.mrf.mxu1  ;;  %6896 = vmatmul.mubr.msk.bf16.vlgmr.msra.gmra.mxu1 %vm236_vm2, %v3583_v59 }
 0x13d   : > { %6910 = vmatpush3.bf16.msra.mxu1 %v3739_v61  ;;  %6915 = vmatprep.mubr.msk.bf16.mxu1 %vm7623_vm0, %v7622_v0  ;;  %v4008_v61 = vld [vmem:[%s7726_s9 + $0x20] sm:$0x8] }
 0x13e   : > { %v1169_v62 = vpop.f32.mrf.mxu0  ;;  %6886 = vmatmul.mubr.msk.bf16.vlgmr.msra.gmra.mxu0 %vm236_vm2, %v3493_v58  ;;  %v6577_v6 = vpop.f32.mrf.mxu1  ;;  %6911 = vmatprep.subr.bf16.mxu1 %v7622_v0  ;;  %v3936_v58 = vld [vmem:[%s7726_s9 + $0x1c] sm:$0x8] }
 0x13f   : > { %6900 = vmatpush3.bf16.msra.mxu0 %v3668_v60  ;;  %6905 = vmatprep.mubr.msk.bf16.mxu0 %vm7623_vm0, %v7622_v0  ;;  %v1175_v27 = vadd.f32 %v1169_v62, %v1100_v25  ;;  %v7417_v60 = vld [vmem:[#allocation2 + $0x80] sm:$0xff]   ;;  %v7426_v25 = vld [vmem:[#allocation2 + $0xa8] sm:$0xff]  }
 0x140   : > { %v6567_v3 = vpop.f32.mrf.mxu0  ;;  %6901 = vmatprep.subr.bf16.mxu0 %v7622_v0  ;;  %v1251_v9 = vpop.f32.mrf.mxu1  ;;  %v4009_v62 = vld [vmem:[%s7726_s9 + $0x24] sm:$0x7] }
 0x141   : > { %6912 = vmatpush3.bf16.msra.mxu1 %v7401_v4  ;;  %v1254_v32 = vadd.f32 %v1248_v63, %v1175_v27  ;;  %v6035_v3 = vcombine.low %v3936_v58, %v8199_v17  ;;  %v6040_v6 = vcombine.low %v4008_v61, %v4009_v62  ;;  %v7419_v9 = vld [vmem:[#allocation2 + $0x78] sm:$0xff]   ;;  %v7434_v58 = vld [vmem:[#allocation2] sm:$0xff]  }
 0x142   : > { %v1172_v7 = vpop.f32.mrf.mxu0  ;;  %v6578_v19 = vpop.f32.mrf.mxu1  ;;  %6913 = vmatprep.subr.bf16.mxu1 %v7622_v0 }
 0x143   : > { %6902 = vmatpush3.bf16.msra.mxu0 %v7400_v1  ;;  %v8239_v7 = vld [vmem:[%s7726_s9 + $0x24] sm:$0xf]  ;;  %v4020_v16 = vrot.slane %v6040_v6, 3  ;;  %v4383_v6 = vld [vmem:[%s7726_s9 + $0x1c] sm:$0x8] }
 0x144   : > { %v6568_v14 = vpop.f32.mrf.mxu0  ;;  %6903 = vmatprep.subr.bf16.mxu0 %v7622_v0  ;;  %v6045_v15 = vcombine.low %v4008_v61, %v8239_v7  ;;  %v7438_v61 = vld [vmem:[#allocation2 + $0x4c] ss:$0 sps:$4 sm:$0xff]  }
 0x145   : > { %6914 = vmatpush3.bf16.msra.mxu1 %v7403_v11  ;;  %v3945_v14 = vrot.slane %v6035_v3, 3 }
 0x146   : > { %6929 = vmatprep.subr.bf16.mxu1 %v7622_v0  ;;  %v4093_v20 = vshrl.u32 %v6045_v15, 16 }
 0x147   : > { %6904 = vmatpush3.bf16.msra.mxu0 %v7402_v10  ;;  %v7423_v10 = vld [vmem:[#allocation2 + $0x9c] ss:$0 sps:$4 sm:$0xff]  }
 0x148   : > { %6919 = vmatprep.subr.bf16.mxu0 %v7622_v0  ;;  %v1395_v28 = vpop.f32.mrf.mxu1  ;;  %6916 = vmatmul.mubr.msk.bf16.vlgmr.msra.gmra.mxu1 %vm236_vm2, %v3719_v22  ;;  %v4119_v17 = vsel %vm240_vm1, %v7423_v10, 0  ;;  %v4095_v27 = vrot.slane %v4093_v20, 3  ;;  %v4456_v10 = vld [vmem:[%s7726_s9 + $0x24] sm:$0x7] }
 0x149   : > { %6930 = vmatpush3.bf16.msra.mxu1 %v3893_v12  ;;  %6935 = vmatprep.mubr.msk.bf16.mxu1 %vm7623_vm0, %v7622_v0  ;;  %v8306_v20 = vld [vmem:[%s7726_s9 + $0x24] sm:$0xf] }
 0x14a   : > { %v1320_v26 = vpop.f32.mrf.mxu0  ;;  %6906 = vmatmul.mubr.msk.bf16.vlgmr.msra.gmra.mxu0 %vm236_vm2, %v3648_v21  ;;  %v6597_v37 = vpop.f32.mrf.mxu1  ;;  %6931 = vmatprep.subr.bf16.mxu1 %v7622_v0  ;;  %v4096_v21 = vshll.u32 %v6045_v15, 16 }
 0x14b   : > { %6920 = vmatpush3.bf16.msra.mxu0 %v3814_v24  ;;  %6925 = vmatprep.mubr.msk.bf16.mxu0 %vm7623_vm0, %v7622_v0  ;;  %v1326_v46 = vadd.f32 %v1320_v26, %v1254_v32  ;;  %v7429_v37 = vld [vmem:[#allocation2 + $0x24] ss:$0 sps:$4 sm:$0xff]  }
 0x14c   : > { %v6587_v34 = vpop.f32.mrf.mxu0  ;;  %6921 = vmatprep.subr.bf16.mxu0 %v7622_v0  ;;  %v1398_v35 = vpop.f32.mrf.mxu1 }
 0x14d   : > { %6932 = vmatpush3.bf16.msra.mxu1 %v7409_v36  ;;  %v1401_v52 = vadd.f32 %v1395_v28, %v1326_v46  ;;  %v4098_v28 = vrot.slane %v4096_v21, 4  ;;  %v7428_v36 = vld [vmem:[#allocation2 + $0xa0] sm:$0xff]   ;;  %v6055_v35 = vcombine.low %v4231_v31, %v8262_v33 }
 0x14e   : > { %v1323_v38 = vpop.f32.mrf.mxu0  ;;  %v6598_v47 = vpop.f32.mrf.mxu1  ;;  %6933 = vmatprep.subr.bf16.mxu1 %v7622_v0  ;;  %v7431_v46 = vld [vmem:[#allocation2 + $0x1c] sm:$0xff]  }
 0x14f   : > { %6922 = vmatpush3.bf16.msra.mxu0 %v7408_v29  ;;  %v4099_v32 = vor.u32 %v4098_v28, %v4095_v27 }
 0x150   : > { %v6588_v43 = vpop.f32.mrf.mxu0  ;;  %6923 = vmatprep.subr.bf16.mxu0 %v7622_v0 }
 0x151   : > { %6934 = vmatpush3.bf16.msra.mxu1 %v7411_v44  ;;  %v4250_v43 = vshrl.u32 %v6055_v35, 16  ;;  %v4253_v44 = vshll.u32 %v6055_v35, 16 }
 0x152   : > { %6949 = vmatprep.subr.bf16.mxu1 %v7622_v0 }
 0x153   : > { %6924 = vmatpush3.bf16.msra.mxu0 %v7410_v40  ;;  %v4276_v40 = vsel %vm240_vm1, %v7429_v37, 0 }
 0x154   : > { %6939 = vmatprep.subr.bf16.mxu0 %v7622_v0  ;;  %v1541_v56 = vpop.f32.mrf.mxu1  ;;  %6936 = vmatmul.mubr.msk.bf16.vlgmr.msra.gmra.mxu1 %vm236_vm2, %v3873_v50 }
 0x155   : > { %6950 = vmatpush3.bf16.msra.mxu1 %v4040_v53  ;;  %6955 = vmatprep.mubr.msk.bf16.mxu1 %vm7623_vm0, %v7622_v0  ;;  %v4255_v53 = vrot.slane %v4253_v44, 3 }
 0x156   : > { %v1474_v54 = vpop.f32.mrf.mxu0  ;;  %6926 = vmatmul.mubr.msk.bf16.vlgmr.msra.gmra.mxu0 %vm236_vm2, %v3794_v49  ;;  %v6617_v1 = vpop.f32.mrf.mxu1  ;;  %6951 = vmatprep.subr.bf16.mxu1 %v7622_v0  ;;  %v4232_v49 = vld [vmem:[%s7726_s9 + $0x20] sm:$0x3] }
 0x157   : > { %v1480_v55 = vadd.f32 %v1474_v54, %v1401_v52  ;;  %6940 = vmatpush3.bf16.msra.mxu0 %v3965_v51  ;;  %6945 = vmatprep.mubr.msk.bf16.mxu0 %vm7623_vm0, %v7622_v0  ;;  %v4252_v52 = vrot.slane %v4250_v43, 2 }
 0x158   : > { %v6607_v59 = vpop.f32.mrf.mxu0  ;;  %6941 = vmatprep.subr.bf16.mxu0 %v7622_v0  ;;  %v1544_v4 = vpop.f32.mrf.mxu1 }
 0x159   : > { %v1547_v63 = vadd.f32 %v1541_v56, %v1480_v55  ;;  %6952 = vmatpush3.bf16.msra.mxu1 %v7417_v60  ;;  %v7433_v55 = vld [vmem:[#allocation2 + $0x14] sm:$0xff]   ;;  %v6060_v56 = vcombine.low %v4231_v31, %v4232_v49  ;;  %v4256_v62 = vor.u32 %v4255_v53, %v4252_v52  ;;  %v4744_v49 = vld [vmem:[%s7726_s9 + $0x28] sm:$0xf]  ;;  %v7453_v53 = vld [vmem:[#allocation2 + $0x9c] ss:$0 sps:$4 sm:$0xff]  }
 0x15a   : > { %v1477_v2 = vpop.f32.mrf.mxu0  ;;  %v6618_v11 = vpop.f32.mrf.mxu1  ;;  %6953 = vmatprep.subr.bf16.mxu1 %v7622_v0  ;;  %v7437_v59 = vld [vmem:[#allocation2 + $0x38] ss:$0 sps:$4 sm:$0xff]  }
 0x15b   : > { %5876 = vst [vmem:[%s8142_s17 + $0x8] sm:$0xff] %v1547_v63  ;;  %6942 = vmatpush3.bf16.msra.mxu0 %v7416_v57  ;;  %v4321_v63 = vrot.slane %v6060_v56, 2  ;;  %v4412_v1 = vsel %vm240_vm1, %v7437_v59, 0  ;;  %v4487_v2 = vsel %vm240_vm1, %v7438_v61, 0 }
 0x15c   : > { %v6608_v8 = vpop.f32.mrf.mxu0  ;;  %6943 = vmatprep.subr.bf16.mxu0 %v7622_v0 }
 0x15d   : > { %6954 = vmatpush3.bf16.msra.mxu1 %v7419_v9  ;;  %v7440_v8 = vld [vmem:[#allocation2 + $0x44] sm:$0xff]   ;;  %v4455_v9 = vld [vmem:[%s7726_s9 + $0x20] sm:$0x8] }
 0x15e   : > { %6969 = vmatprep.subr.bf16.mxu1 %v7622_v0 }
 0x15f   : > { %6944 = vmatpush3.bf16.msra.mxu0 %v7418_v5  ;;  %v7439_v5 = vld [vmem:[#allocation2 + $0x30] sm:$0xff]  }
 0x160   : > { %6959 = vmatprep.subr.bf16.mxu0 %v7622_v0  ;;  %v8251_v22 = vpop.f32.mrf.mxu1  ;;  %6956 = vmatmul.mubr.msk.bf16.vlgmr.msra.gmra.mxu1 %vm236_vm2, %v4020_v16 }
 0x161   : > { %6970 = vmatpush3.bf16.msra.mxu1 %v4186_v18  ;;  %6975 = vmatprep.mubr.msk.bf16.mxu1 %vm7623_vm0, %v7622_v0  ;;  %v6070_v18 = vcombine.low %v4455_v9, %v4456_v10 }
 0x162   : > { %v8248_v19 = vpop.f32.mrf.mxu0  ;;  %6946 = vmatmul.mubr.msk.bf16.vlgmr.msra.gmra.mxu0 %vm236_vm2, %v3945_v14  ;;  %v6637_v12 = vpop.f32.mrf.mxu1  ;;  %6971 = vmatprep.subr.bf16.mxu1 %v7622_v0  ;;  %v6065_v14 = vcombine.low %v4383_v6, %v8262_v33  ;;  %v7456_v6 = vld [vmem:[#allocation2 + $0x78] sm:$0xff]  }
 0x163   : > { %6960 = vmatpush3.bf16.msra.mxu0 %v4119_v17  ;;  %6965 = vmatprep.mubr.msk.bf16.mxu0 %vm7623_vm0, %v7622_v0  ;;  %v1697_v15 = vadd.f32 %v8251_v22, %v8248_v19  ;;  %v7441_v17 = vld [vmem:[#allocation2 + $0x28] sm:$0xff]   ;;  %v6075_v19 = vcombine.low %v4455_v9, %v8306_v20  ;;  %v4467_v22 = vrot.slane %v6070_v18, 3 }
 0x164   : > { %v6627_v24 = vpop.f32.mrf.mxu0  ;;  %6961 = vmatprep.subr.bf16.mxu0 %v7622_v0  ;;  %v1699_v29 = vpop.f32.mrf.mxu1  ;;  %v4392_v27 = vrot.slane %v6065_v14, 3  ;;  %v8353_v14 = vld [vmem:[%s7726_s9 + $0x24] sm:$0xf] }
 0x165   : > { %6972 = vmatpush3.bf16.msra.mxu1 %v7426_v25  ;;  %v7446_v24 = vld [vmem:[#allocation2 + $0x60] ss:$0 sps:$4 sm:$0xff]   ;;  %v4540_v33 = vshrl.u32 %v6075_v19, 16 }
 0x166   : > { %v1634_v26 = vpop.f32.mrf.mxu0  ;;  %v6638_v38 = vpop.f32.mrf.mxu1  ;;  %6973 = vmatprep.subr.bf16.mxu1 %v7622_v0  ;;  %v4566_v28 = vsel %vm240_vm1, %v7446_v24, 0 }
 0x167   : > { %6962 = vmatpush3.bf16.msra.mxu0 %v7425_v23  ;;  %v7442_v23 = vld [vmem:[#allocation2 + $0x3c] sm:$0xff]   ;;  %v7447_v26 = vld [vmem:[#allocation2 + $0x74] ss:$0 sps:$4 sm:$0xff]  }
 0x168   : > { %v6628_v34 = vpop.f32.mrf.mxu0  ;;  %6963 = vmatprep.subr.bf16.mxu0 %v7622_v0  ;;  %v7448_v38 = vld [vmem:[#allocation2 + $0x58] sm:$0xff]  }
 0x169   : > { %6974 = vmatpush3.bf16.msra.mxu1 %v7428_v36  ;;  %v4543_v34 = vshll.u32 %v6075_v19, 16 }
 0x16a   : > { %6989 = vmatprep.subr.bf16.mxu1 %v7622_v0 }
 0x16b   : > { %6964 = vmatpush3.bf16.msra.mxu0 %v7427_v30  ;;  %v4633_v30 = vsel %vm240_vm1, %v7447_v26, 0  ;;  %v4825_v26 = vld [vmem:[%s7726_s9 + $0x28] sm:$0xe] }
 0x16c   : > { %6979 = vmatprep.subr.bf16.mxu0 %v7622_v0  ;;  %v8274_v45 = vpop.f32.mrf.mxu1  ;;  %6976 = vmatmul.mubr.msk.bf16.vlgmr.msra.gmra.mxu1 %vm236_vm2, %v8239_v7 }
 0x16d   : > { %6990 = vmatpush3.bf16.msra.mxu1 %v4341_v41  ;;  %6995 = vmatprep.mubr.msk.bf16.mxu1 %vm7623_vm0, %v7622_v0  ;;  %v4542_v41 = vrot.slane %v4540_v33, 3 }
 0x16e   : > { %v8271_v42 = vpop.f32.mrf.mxu0  ;;  %6966 = vmatmul.mubr.msk.bf16.vlgmr.msra.gmra.mxu0 %vm236_vm2, %v4099_v32  ;;  %v6657_v50 = vpop.f32.mrf.mxu1  ;;  %6991 = vmatprep.subr.bf16.mxu1 %v7622_v0  ;;  %v7449_v32 = vld [vmem:[#allocation2 + $0x6c] sm:$0xff]  }
 0x16f   : > { %6980 = vmatpush3.bf16.msra.mxu0 %v4276_v40  ;;  %6985 = vmatprep.mubr.msk.bf16.mxu0 %vm7623_vm0, %v7622_v0  ;;  %v1773_v25 = vadd.f32 %v8271_v42, %v1697_v15  ;;  %v4545_v42 = vrot.slane %v4543_v34, 4  ;;  %v8328_v50 = vld [vmem:[%s7726_s9 + $0x2c] sm:$0x1]  ;;  %v7463_v34 = vld [vmem:[#allocation2 + $0xa0] sm:$0xff]  }
 0x170   : > { %v6647_v47 = vpop.f32.mrf.mxu0  ;;  %6981 = vmatprep.subr.bf16.mxu0 %v7622_v0  ;;  %v1845_v54 = vpop.f32.mrf.mxu1 }
 0x171   : > { %6992 = vmatpush3.bf16.msra.mxu1 %v7432_v48  ;;  %v1848_v29 = vadd.f32 %v8274_v45, %v1773_v25  ;;  %v7450_v45 = vld [vmem:[#allocation2 + $0x50] sm:$0xff]   ;;  %v7452_v48 = vld [vmem:[#allocation2 + $0x88] ss:$0 sps:$4 sm:$0xff]   ;;  %v4546_v54 = vor.u32 %v4545_v42, %v4542_v41 }
 0x172   : > { %v1770_v51 = vpop.f32.mrf.mxu0  ;;  %v6658_v60 = vpop.f32.mrf.mxu1  ;;  %6993 = vmatprep.subr.bf16.mxu1 %v7622_v0  ;;  %v4701_v56 = vsel %vm240_vm1, %v7452_v48, 0  ;;  %v4900_v48 = vld [vmem:[%s7726_s9 + $0x24] sm:$0x7] }
 0x173   : > { %6982 = vmatpush3.bf16.msra.mxu0 %v7431_v46  ;;  %v7451_v46 = vld [vmem:[#allocation2 + $0x64] sm:$0xff]  }
 0x174   : > { %v6648_v57 = vpop.f32.mrf.mxu0  ;;  %6983 = vmatprep.subr.bf16.mxu0 %v7622_v0 }
 0x175   : > { %6994 = vmatpush3.bf16.msra.mxu1 %v7434_v58  ;;  %v4782_v58 = vsel %vm240_vm1, %v7453_v53, 0 }
 0x176   : > { %7009 = vmatprep.subr.bf16.mxu1 %v7622_v0 }
 0x177   : > { %6984 = vmatpush3.bf16.msra.mxu0 %v7433_v55  ;;  %v6088_v55 = vcombine.low %v4744_v49, %v8328_v50 }
 0x178   : > { %6999 = vmatprep.subr.bf16.mxu0 %v7622_v0  ;;  %v1988_v4 = vpop.f32.mrf.mxu1  ;;  %6996 = vmatmul.mubr.msk.bf16.vlgmr.msra.gmra.mxu1 %vm236_vm2, %v4321_v63 }
 0x179   : > { %7010 = vmatpush3.bf16.msra.mxu1 %v4487_v2  ;;  %7015 = vmatprep.mubr.msk.bf16.mxu1 %vm7623_vm0, %v7622_v0  ;;  %v4759_v63 = vshll.u32 %v6088_v55, 16  ;;  %v7455_v2 = vld [vmem:[#allocation2 + $0x94] sm:$0xff]  }
 0x17a   : > { %v1921_v3 = vpop.f32.mrf.mxu0  ;;  %6986 = vmatmul.mubr.msk.bf16.vlgmr.msra.gmra.mxu0 %vm236_vm2, %v4256_v62  ;;  %v6677_v11 = vpop.f32.mrf.mxu1  ;;  %7011 = vmatprep.subr.bf16.mxu1 %v7622_v0  ;;  %v7454_v62 = vld [vmem:[#allocation2 + $0x80] sm:$0xff]  }
 0x17b   : > { %7000 = vmatpush3.bf16.msra.mxu0 %v4412_v1  ;;  %7005 = vmatprep.mubr.msk.bf16.mxu0 %vm7623_vm0, %v7622_v0  ;;  %v1927_v36 = vadd.f32 %v1921_v3, %v1848_v29  ;;  %v4761_v9 = vrot.slane %v4759_v63, 1  ;;  %v7459_v11 = vld [vmem:[#allocation2 + $0xb0] ss:$0 sps:$4 sm:$0xff]  }
 0x17c   : > { %v6667_v7 = vpop.f32.mrf.mxu0  ;;  %7001 = vmatprep.subr.bf16.mxu0 %v7622_v0  ;;  %v1991_v16 = vpop.f32.mrf.mxu1 }
 0x17d   : > { %7012 = vmatpush3.bf16.msra.mxu1 %v7440_v8  ;;  %v1994_v43 = vadd.f32 %v1988_v4, %v1927_v36  ;;  %v7457_v7 = vld [vmem:[#allocation2 + $0x8c] sm:$0xff]   ;;  %v4757_v8 = vshrl.u32 %v6088_v55, 16  ;;  %v7460_v16 = vld [vmem:[#allocation2 + $0x24] ss:$0 sps:$4 sm:$0xff]  }
 0x17e   : > { %v1924_v13 = vpop.f32.mrf.mxu0  ;;  %v6678_v12 = vpop.f32.mrf.mxu1  ;;  %7013 = vmatprep.subr.bf16.mxu1 %v7622_v0  ;;  %v7471_v55 = vld [vmem:[#allocation2] sm:$0xff]  }
 0x17f   : > { %7002 = vmatpush3.bf16.msra.mxu0 %v7439_v5  ;;  %v8350_v13 = vld [vmem:[%s7726_s9 + $0x20] sm:$0x8]  ;;  %v4762_v18 = vor.u32 %v4761_v9, %v4757_v8  ;;  %v7461_v12 = vld [vmem:[#allocation2 + $0xa8] sm:$0xff]  }
 0x180   : > { %v6668_v21 = vpop.f32.mrf.mxu0  ;;  %7003 = vmatprep.subr.bf16.mxu0 %v7622_v0  ;;  %v6104_v53 = vcombine.low %v8350_v13, %v4900_v48  ;;  %v7476_v9 = vld [vmem:[#allocation2 + $0x44] sm:$0xff]  }
 0x181   : > { %7014 = vmatpush3.bf16.msra.mxu1 %v7442_v23  ;;  %v4854_v21 = vsel %vm240_vm1, %v7459_v11, 0  ;;  %v4944_v23 = vsel %vm240_vm1, %v7460_v16, 0 }
 0x182   : > { %7029 = vmatprep.subr.bf16.mxu1 %v7622_v0 }
 0x183   : > { %7004 = vmatpush3.bf16.msra.mxu0 %v7441_v17  ;;  %v4676_v17 = vld [vmem:[%s7726_s9 + $0x28] sm:$0xf] }
 0x184   : > { %7019 = vmatprep.subr.bf16.mxu0 %v7622_v0  ;;  %v2137_v37 = vpop.f32.mrf.mxu1  ;;  %7016 = vmatmul.mubr.msk.bf16.vlgmr.msra.gmra.mxu1 %vm236_vm2, %v4467_v22 }
 0x185   : > { %7030 = vmatpush3.bf16.msra.mxu1 %v4633_v30  ;;  %7035 = vmatprep.mubr.msk.bf16.mxu1 %vm7623_vm0, %v7622_v0 }
 0x186   : > { %v2056_v31 = vpop.f32.mrf.mxu0  ;;  %7006 = vmatmul.mubr.msk.bf16.vlgmr.msra.gmra.mxu0 %vm236_vm2, %v4392_v27  ;;  %v6697_v35 = vpop.f32.mrf.mxu1  ;;  %7031 = vmatprep.subr.bf16.mxu1 %v7622_v0 }
 0x187   : > { %7020 = vmatpush3.bf16.msra.mxu0 %v4566_v28  ;;  %7025 = vmatprep.mubr.msk.bf16.mxu0 %vm7623_vm0, %v7622_v0  ;;  %v2062_v51 = vadd.f32 %v2056_v31, %v1994_v43  ;;  %v7462_v28 = vld [vmem:[#allocation2 + $0x1c] sm:$0xff]   ;;  %v6093_v31 = vcombine.low %v4825_v26, %v8328_v50  ;;  %v7470_v50 = vld [vmem:[#allocation2 + $0x30] sm:$0xff]  }
 0x188   : > { %v6687_v39 = vpop.f32.mrf.mxu0  ;;  %7021 = vmatprep.subr.bf16.mxu0 %v7622_v0  ;;  %v2140_v44 = vpop.f32.mrf.mxu1 }
 0x189   : > { %7032 = vmatpush3.bf16.msra.mxu1 %v7449_v32  ;;  %v2143_v57 = vadd.f32 %v2137_v37, %v2062_v51  ;;  %v7464_v39 = vld [vmem:[#allocation2 + $0x14] sm:$0xff]   ;;  %v7467_v32 = vld [vmem:[#allocation2 + $0x10] ss:$0 sps:$4 sm:$0xff]   ;;  %v4834_v41 = vrot.slane %v6093_v31, 1 }
 0x18a   : > { %v2059_v40 = vpop.f32.mrf.mxu0  ;;  %v6698_v52 = vpop.f32.mrf.mxu1  ;;  %7033 = vmatprep.subr.bf16.mxu1 %v7622_v0  ;;  %v5009_v43 = vsel %vm240_vm1, %v7467_v32, 0  ;;  %v5339_v32 = vld [vmem:[%s7726_s9 + $0x2c] sm:$0xe] }
 0x18b   : > { %7022 = vmatpush3.bf16.msra.mxu0 %v7448_v38  ;;  %v7468_v40 = vld [vmem:[#allocation2 + $0x38] ss:$0 sps:$4 sm:$0xff]  }
 0x18c   : > { %v6688_v47 = vpop.f32.mrf.mxu0  ;;  %7023 = vmatprep.subr.bf16.mxu0 %v7622_v0  ;;  %v5075_v44 = vsel %vm240_vm1, %v7468_v40, 0 }
 0x18d   : > { %7034 = vmatpush3.bf16.msra.mxu1 %v7451_v46  ;;  %v7469_v47 = vld [vmem:[#allocation2 + $0x8] sm:$0xff]  }
 0x18e   : > { %7049 = vmatprep.subr.bf16.mxu1 %v7622_v0 }
 0x18f   : > { %7024 = vmatpush3.bf16.msra.mxu0 %v7450_v45 }
 0x190   : > { %7039 = vmatprep.subr.bf16.mxu0 %v7622_v0  ;;  %v8337_v61 = vpop.f32.mrf.mxu1  ;;  %7036 = vmatmul.mubr.msk.bf16.vlgmr.msra.gmra.mxu1 %vm236_vm2, %v8306_v20  ;;  %v6099_v20 = vcombine.low %v8350_v13, %v8353_v14  ;;  %v7477_v13 = vld [vmem:[#allocation2 + $0x58] sm:$0xff]  }
 0x191   : > { %7050 = vmatpush3.bf16.msra.mxu1 %v4782_v58  ;;  %7055 = vmatprep.mubr.msk.bf16.mxu1 %vm7623_vm0, %v7622_v0  ;;  %v7474_v58 = vld [vmem:[#allocation2 + $0x4c] ss:$0 sps:$4 sm:$0xff]  }
 0x192   : > { %v2209_v59 = vpop.f32.mrf.mxu0  ;;  %7026 = vmatmul.mubr.msk.bf16.vlgmr.msra.gmra.mxu0 %vm236_vm2, %v4546_v54  ;;  %v6717_v3 = vpop.f32.mrf.mxu1  ;;  %7051 = vmatprep.subr.bf16.mxu1 %v7622_v0  ;;  %v4918_v27 = vshrl.u32 %v6099_v20, 16  ;;  %v4921_v19 = vshll.u32 %v6099_v20, 16 }
 0x193   : > { %v2215_v60 = vadd.f32 %v2209_v59, %v2143_v57  ;;  %7040 = vmatpush3.bf16.msra.mxu0 %v4701_v56  ;;  %7045 = vmatprep.mubr.msk.bf16.mxu0 %vm7623_vm0, %v7622_v0  ;;  %v7472_v56 = vld [vmem:[#allocation2 + $0x28] sm:$0xff]  }
 0x194   : > { %v6707_v1 = vpop.f32.mrf.mxu0  ;;  %7041 = vmatprep.subr.bf16.mxu0 %v7622_v0  ;;  %v2302_v5 = vpop.f32.mrf.mxu1  ;;  %v4920_v36 = vrot.slane %v4918_v27, 3  ;;  %v4923_v37 = vrot.slane %v4921_v19, 4  ;;  %v5186_v59 = vld [vmem:[%s7726_s9 + $0x28] sm:$0xf] }
 0x195   : > { %5920 = vst [vmem:[%s8142_s17 + $0x10] sm:$0xff] %v2215_v60  ;;  %7052 = vmatpush3.bf16.msra.mxu1 %v7455_v2  ;;  %v8396_v60 = vld [vmem:[%s7726_s9 + $0x2c] sm:$0x1]  ;;  %v7475_v1 = vld [vmem:[#allocation2 + $0x60] ss:$0 sps:$4 sm:$0xff]   ;;  %v4989_v2 = vrot.slane %v6104_v53, 3 }
 0x196   : > { %v2212_v4 = vpop.f32.mrf.mxu0  ;;  %v6718_v15 = vpop.f32.mrf.mxu1  ;;  %7053 = vmatprep.subr.bf16.mxu1 %v7622_v0  ;;  %v4924_v42 = vor.u32 %v4923_v37, %v4920_v36  ;;  %v6117_v3 = vcombine.low %v5186_v59, %v8396_v60  ;;  %v7482_v27 = vld [vmem:[#allocation2 + $0x88] ss:$0 sps:$4 sm:$0xff]   ;;  %v7483_v36 = vld [vmem:[#allocation2 + $0x6c] sm:$0xff]   ;;  %v5267_v37 = vld [vmem:[%s7726_s9 + $0x28] sm:$0xe] }
 0x197   : > { %7042 = vmatpush3.bf16.msra.mxu0 %v7454_v62  ;;  %v5143_v4 = vsel %vm240_vm1, %v7474_v58, 0  ;;  %v5118_v19 = vld [vmem:[%s7726_s9 + $0x28] sm:$0xf] }
 0x198   : > { %v6708_v10 = vpop.f32.mrf.mxu0  ;;  %7043 = vmatprep.subr.bf16.mxu0 %v7622_v0  ;;  %v5199_v20 = vshrl.u32 %v6117_v3, 16 }
 0x199   : > { %7054 = vmatpush3.bf16.msra.mxu1 %v7457_v7  ;;  %v5201_v10 = vshll.u32 %v6117_v3, 16  ;;  %v5493_v3 = vld [vmem:[%s7726_s9 + $0x2c] sm:$0xc] }
 0x19a   : > { %7069 = vmatprep.subr.bf16.mxu1 %v7622_v0 }
 0x19b   : > { %7044 = vmatpush3.bf16.msra.mxu0 %v7456_v6  ;;  %v5224_v6 = vsel %vm240_vm1, %v7475_v1, 0 }
 0x19c   : > { %7059 = vmatprep.subr.bf16.mxu0 %v7622_v0  ;;  %v8366_v25 = vpop.f32.mrf.mxu1  ;;  %7056 = vmatmul.mubr.msk.bf16.vlgmr.msra.gmra.mxu1 %vm236_vm2, %v4762_v18  ;;  %v7478_v18 = vld [vmem:[#allocation2 + $0x3c] sm:$0xff]  }
 0x19d   : > { %7070 = vmatpush3.bf16.msra.mxu1 %v4944_v23  ;;  %7075 = vmatprep.mubr.msk.bf16.mxu1 %vm7623_vm0, %v7622_v0 }
 0x19e   : > { %v8363_v24 = vpop.f32.mrf.mxu0  ;;  %7046 = vmatmul.mubr.msk.bf16.vlgmr.msra.gmra.mxu0 %vm236_vm2, %v4676_v17  ;;  %v6737_v29 = vpop.f32.mrf.mxu1  ;;  %7071 = vmatprep.subr.bf16.mxu1 %v7622_v0 }
 0x19f   : > { %7060 = vmatpush3.bf16.msra.mxu0 %v4854_v21  ;;  %7065 = vmatprep.mubr.msk.bf16.mxu0 %vm7623_vm0, %v7622_v0  ;;  %v2365_v62 = vadd.f32 %v8363_v24, %v8337_v61  ;;  %v5203_v21 = vrot.slane %v5201_v10, 1  ;;  %v7479_v24 = vld [vmem:[#allocation2 + $0x50] sm:$0xff]  }
 0x1a0   : > { %v6727_v22 = vpop.f32.mrf.mxu0  ;;  %7061 = vmatprep.subr.bf16.mxu0 %v7622_v0  ;;  %v2433_v33 = vpop.f32.mrf.mxu1 }
 0x1a1   : > { %7072 = vmatpush3.bf16.msra.mxu1 %v7462_v28  ;;  %v2436_v5 = vadd.f32 %v8366_v25, %v2365_v62  ;;  %v7481_v25 = vld [vmem:[#allocation2 + $0x74] ss:$0 sps:$4 sm:$0xff]   ;;  %v5204_v22 = vor.u32 %v5203_v21, %v5199_v20 }
 0x1a2   : > { %v2367_v30 = vpop.f32.mrf.mxu0  ;;  %v6738_v35 = vpop.f32.mrf.mxu1  ;;  %7073 = vmatprep.subr.bf16.mxu1 %v7622_v0  ;;  %v5296_v28 = vsel %vm240_vm1, %v7481_v25, 0 }
 0x1a3   : > { %7062 = vmatpush3.bf16.msra.mxu0 %v7461_v12  ;;  %v5371_v30 = vsel %vm240_vm1, %v7482_v27, 0  ;;  %v5340_v35 = vld [vmem:[%s7726_s9 + $0x30] sm:$0x1] }
 0x1a4   : > { %v6728_v38 = vpop.f32.mrf.mxu0  ;;  %7063 = vmatprep.subr.bf16.mxu0 %v7622_v0 }
 0x1a5   : > { %7074 = vmatpush3.bf16.msra.mxu1 %v7464_v39  ;;  %v7484_v39 = vld [vmem:[#allocation2 + $0x80] sm:$0xff]  }
 0x1a6   : > { %7089 = vmatprep.subr.bf16.mxu1 %v7622_v0 }
 0x1a7   : > { %7064 = vmatpush3.bf16.msra.mxu0 %v7463_v34 }
 0x1a8   : > { %7079 = vmatprep.subr.bf16.mxu0 %v7622_v0  ;;  %v2579_v46 = vpop.f32.mrf.mxu1  ;;  %7076 = vmatmul.mubr.msk.bf16.vlgmr.msra.gmra.mxu1 %vm236_vm2, %v4924_v42 }
 0x1a9   : > { %7090 = vmatpush3.bf16.msra.mxu1 %v5075_v44  ;;  %7095 = vmatprep.mubr.msk.bf16.mxu1 %vm7623_vm0, %v7622_v0 }
 0x1aa   : > { %v2498_v45 = vpop.f32.mrf.mxu0  ;;  %7066 = vmatmul.mubr.msk.bf16.vlgmr.msra.gmra.mxu0 %vm236_vm2, %v4834_v41  ;;  %v6757_v51 = vpop.f32.mrf.mxu1  ;;  %7091 = vmatprep.subr.bf16.mxu1 %v7622_v0 }
 0x1ab   : > { %7080 = vmatpush3.bf16.msra.mxu0 %v5009_v43  ;;  %7085 = vmatprep.mubr.msk.bf16.mxu0 %vm7623_vm0, %v7622_v0  ;;  %v2504_v7 = vadd.f32 %v2498_v45, %v2436_v5  ;;  %v6122_v43 = vcombine.low %v5267_v37, %v8396_v60  ;;  %v7485_v45 = vld [vmem:[#allocation2 + $0x64] sm:$0xff]  }
 0x1ac   : > { %v6747_v49 = vpop.f32.mrf.mxu0  ;;  %7081 = vmatprep.subr.bf16.mxu0 %v7622_v0  ;;  %v2582_v54 = vpop.f32.mrf.mxu1 }
 0x1ad   : > { %7092 = vmatpush3.bf16.msra.mxu1 %v7470_v50  ;;  %v2585_v17 = vadd.f32 %v2579_v46, %v2504_v7  ;;  %v6127_v46 = vcombine.low %v5339_v32, %v5340_v35  ;;  %v7486_v49 = vld [vmem:[#allocation2 + $0x78] sm:$0xff]   ;;  %v5276_v53 = vrot.slane %v6122_v43, 1 }
 0x1ae   : > { %v2501_v52 = vpop.f32.mrf.mxu0  ;;  %v6758_v63 = vpop.f32.mrf.mxu1  ;;  %7093 = vmatprep.subr.bf16.mxu1 %v7622_v0  ;;  %v7490_v50 = vld [vmem:[#allocation2 + $0x9c] ss:$0 sps:$4 sm:$0xff]  }
 0x1af   : > { %7082 = vmatpush3.bf16.msra.mxu0 %v7469_v47  ;;  %v5414_v47 = vld [vmem:[%s7726_s9 + $0x30] sm:$0x3]  ;;  %v7492_v63 = vld [vmem:[#allocation2 + $0x94] sm:$0xff]  }
 0x1b0   : > { %v6748_v57 = vpop.f32.mrf.mxu0  ;;  %7083 = vmatprep.subr.bf16.mxu0 %v7622_v0  ;;  %v7491_v52 = vld [vmem:[#allocation2 + $0xb0] ss:$0 sps:$4 sm:$0xff]   ;;  %v6132_v54 = vcombine.low %v5339_v32, %v5414_v47 }
 0x1b1   : > { %7094 = vmatpush3.bf16.msra.mxu1 %v7472_v56  ;;  %v5450_v56 = vsel %vm240_vm1, %v7490_v50, 0  ;;  %v5522_v57 = vsel %vm240_vm1, %v7491_v52, 0 }
 0x1b2   : > { %7109 = vmatprep.subr.bf16.mxu1 %v7622_v0  ;;  %v5424_v59 = vshrl.u32 %v6132_v54, 16  ;;  %v5427_v60 = vshll.u32 %v6132_v54, 16 }
 0x1b3   : > { %7084 = vmatpush3.bf16.msra.mxu0 %v7471_v55  ;;  %v5351_v55 = vrot.slane %v6127_v46, 1 }
 0x1b4   : > { %7099 = vmatprep.subr.bf16.mxu0 %v7622_v0  ;;  %v2726_v8 = vpop.f32.mrf.mxu1  ;;  %7096 = vmatmul.mubr.msk.bf16.vlgmr.msra.gmra.mxu1 %vm236_vm2, %v8353_v14 }
 0x1b5   : > { %7110 = vmatpush3.bf16.msra.mxu1 %v5224_v6  ;;  %7115 = vmatprep.mubr.msk.bf16.mxu1 %vm7623_vm0, %v7622_v0  ;;  %v5426_v6 = vrot.slane %v5424_v59, 1 }
 0x1b6   : > { %v2651_v61 = vpop.f32.mrf.mxu0  ;;  %7086 = vmatmul.mubr.msk.bf16.vlgmr.msra.gmra.mxu0 %vm236_vm2, %v4989_v2  ;;  %v6777_v15 = vpop.f32.mrf.mxu1  ;;  %7111 = vmatprep.subr.bf16.mxu1 %v7622_v0  ;;  %v7493_v2 = vld [vmem:[#allocation2 + $0xa8] sm:$0xff]  }
 0x1b7   : > { %7100 = vmatpush3.bf16.msra.mxu0 %v5143_v4  ;;  %7105 = vmatprep.mubr.msk.bf16.mxu0 %vm7623_vm0, %v7622_v0  ;;  %v2657_v12 = vadd.f32 %v2651_v61, %v2585_v17  ;;  %v5429_v61 = vrot.slane %v5427_v60, 2 }
 0x1b8   : > { %v6767_v11 = vpop.f32.mrf.mxu0  ;;  %7101 = vmatprep.subr.bf16.mxu0 %v7622_v0  ;;  %v2729_v14 = vpop.f32.mrf.mxu1 }
 0x1b9   : > { %7112 = vmatpush3.bf16.msra.mxu1 %v7477_v13  ;;  %v2732_v29 = vadd.f32 %v2726_v8, %v2657_v12  ;;  %v7494_v8 = vld [vmem:[#allocation2 + $0x8c] sm:$0xff]   ;;  %v7495_v11 = vld [vmem:[#allocation2 + $0xa0] sm:$0xff]   ;;  %v5430_v15 = vor.u32 %v5429_v61, %v5426_v6 }
 0x1ba   : > { %v2654_v16 = vpop.f32.mrf.mxu0  ;;  %v6778_v26 = vpop.f32.mrf.mxu1  ;;  %7113 = vmatprep.subr.bf16.mxu1 %v7622_v0 }
 0x1bb   : > { %7102 = vmatpush3.bf16.msra.mxu0 %v7476_v9  ;;  %v6137_v9 = vcombine.low %v5493_v3, %v5414_v47 }
 0x1bc   : > { %v6768_v23 = vpop.f32.mrf.mxu0  ;;  %7103 = vmatprep.subr.bf16.mxu0 %v7622_v0 }
 0x1bd   : > { %7114 = vmatpush3.bf16.msra.mxu1 %v7479_v24  ;;  %v5502_v16 = vrot.slane %v6137_v9, 2 }
 0x1be   : > { %7129 = vmatprep.subr.bf16.mxu1 %v7622_v0 }
 0x1bf   : > { %7104 = vmatpush3.bf16.msra.mxu0 %v7478_v18 }
 0x1c0   : > { %7119 = vmatprep.subr.bf16.mxu0 %v7622_v0  ;;  %v2877_v34 = vpop.f32.mrf.mxu1  ;;  %7116 = vmatmul.mubr.msk.bf16.vlgmr.msra.gmra.mxu1 %vm236_vm2, %v5204_v22 }
 0x1c1   : > { %7130 = vmatpush3.bf16.msra.mxu1 %v5371_v30  ;;  %7135 = vmatprep.mubr.msk.bf16.mxu1 %vm7623_vm0, %v7622_v0 }
 0x1c2   : > { %v2805_v31 = vpop.f32.mrf.mxu0  ;;  %7106 = vmatmul.mubr.msk.bf16.vlgmr.msra.gmra.mxu0 %vm236_vm2, %v5118_v19  ;;  %v6797_v41 = vpop.f32.mrf.mxu1  ;;  %7131 = vmatprep.subr.bf16.mxu1 %v7622_v0 }
 0x1c3   : > { %v2811_v33 = vadd.f32 %v2805_v31, %v2732_v29  ;;  %7120 = vmatpush3.bf16.msra.mxu0 %v5296_v28  ;;  %7125 = vmatprep.mubr.msk.bf16.mxu0 %vm7623_vm0, %v7622_v0 }
 0x1c4   : > { %v6787_v38 = vpop.f32.mrf.mxu0  ;;  %7121 = vmatprep.subr.bf16.mxu0 %v7622_v0  ;;  %v2880_v44 = vpop.f32.mrf.mxu1 }
 0x1c5   : > { %v2883_v40 = vadd.f32 %v2877_v34, %v2811_v33  ;;  %7132 = vmatpush3.bf16.msra.mxu1 %v7484_v39 }
 0x1c6   : > { %v2808_v42 = vpop.f32.mrf.mxu0  ;;  %v6798_v51 = vpop.f32.mrf.mxu1  ;;  %7133 = vmatprep.subr.bf16.mxu1 %v7622_v0 }
 0x1c7   : > { %5964 = vst [vmem:[%s8142_s17 + $0x18] sm:$0xff] %v2883_v40  ;;  %7122 = vmatpush3.bf16.msra.mxu0 %v7483_v36 }
 0x1c8   : > { %v6788_v48 = vpop.f32.mrf.mxu0  ;;  %7123 = vmatprep.subr.bf16.mxu0 %v7622_v0 }
 0x1c9   : > { %7134 = vmatpush3.bf16.msra.mxu1 %v7486_v49 }
 0x1ca   : > { %7149 = vmatprep.subr.bf16.mxu1 %v7622_v0 }
 0x1cb   : > { %7124 = vmatpush3.bf16.msra.mxu0 %v7485_v45 }
 0x1cc   : > { %7139 = vmatprep.subr.bf16.mxu0 %v7622_v0  ;;  %v3026_v62 = vpop.f32.mrf.mxu1  ;;  %7136 = vmatmul.mubr.msk.bf16.vlgmr.msra.gmra.mxu1 %vm236_vm2, %v5351_v55 }
 0x1cd   : > { %7150 = vmatpush3.bf16.msra.mxu1 %v5522_v57  ;;  %7155 = vmatprep.mubr.msk.bf16.mxu1 %vm7623_vm0, %v7622_v0 }
 0x1ce   : > { %v2965_v58 = vpop.f32.mrf.mxu0  ;;  %7126 = vmatmul.mubr.msk.bf16.vlgmr.msra.gmra.mxu0 %vm236_vm2, %v5276_v53  ;;  %v6817_v4 = vpop.f32.mrf.mxu1  ;;  %7151 = vmatprep.subr.bf16.mxu1 %v7622_v0 }
 0x1cf   : > { %7140 = vmatpush3.bf16.msra.mxu0 %v5450_v56  ;;  %7145 = vmatprep.mubr.msk.bf16.mxu0 %vm7623_vm0, %v7622_v0  ;;  %v3027_v22 = vadd.f32 %v3026_v62, %v2965_v58 }
 0x1d0   : > { %v6807_v1 = vpop.f32.mrf.mxu0  ;;  %7141 = vmatprep.subr.bf16.mxu0 %v7622_v0  ;;  %v3029_v7 = vpop.f32.mrf.mxu1 }
 0x1d1   : > { %7152 = vmatpush3.bf16.msra.mxu1 %v7493_v2 }
 0x1d2   : > { %v2968_v5 = vpop.f32.mrf.mxu0  ;;  %v6818_v13 = vpop.f32.mrf.mxu1  ;;  %7153 = vmatprep.subr.bf16.mxu1 %v7622_v0 }
 0x1d3   : > { %7142 = vmatpush3.bf16.msra.mxu0 %v7492_v63 }
 0x1d4   : > { %v6808_v10 = vpop.f32.mrf.mxu0  ;;  %7143 = vmatprep.subr.bf16.mxu0 %v7622_v0 }
 0x1d5   : > { %7154 = vmatpush3.bf16.msra.mxu1 %v7495_v11 }
 0x1d7   : > { %7144 = vmatpush3.bf16.msra.mxu0 %v7494_v8 }
 0x1d8   : > { %v3172_v14 = vpop.f32.mrf.mxu1  ;;  %7156 = vmatmul.mubr.msk.bf16.vlgmr.msra.gmra.mxu1 %vm236_vm2, %v5502_v16 }
 0x1da   : > { %v3097_v17 = vpop.f32.mrf.mxu0  ;;  %7146 = vmatmul.mubr.msk.bf16.vlgmr.msra.gmra.mxu0 %vm236_vm2, %v5430_v15  ;;  %v6837_v20 = vpop.f32.mrf.mxu1 }
 0x1db   : > { %v3103_v30 = vadd.f32 %v3097_v17, %v3027_v22 }
 0x1dc   : > { %v6827_v18 = vpop.f32.mrf.mxu0  ;;  %v3175_v23 = vpop.f32.mrf.mxu1 }
 0x1dd   : > { %v3178_v33 = vadd.f32 %v3172_v14, %v3103_v30 }
 0x1de   : > { %v3100_v21 = vpop.f32.mrf.mxu0  ;;  %v6838_v25 = vpop.f32.mrf.mxu1 }
 0x1e0   : > { %v6828_v24 = vpop.f32.mrf.mxu0 }
 0x1e4   : > { %v3323_v26 = vpop.f32.mrf.mxu1 }
 0x1e6   : > { %v3251_v12 = vpop.f32.mrf.mxu0  ;;  %v6857_v0 = vpop.f32.mrf.mxu1 }
 0x1e7   : > { %v3257_v36 = vadd.f32 %v3251_v12, %v3178_v33 }
 0x1e8   : > { %v6847_v27 = vpop.f32.mrf.mxu0  ;;  %v3326_v28 = vpop.f32.mrf.mxu1 }
 0x1e9   : > { %v3329_v35 = vadd.f32 %v3323_v26, %v3257_v36 }
 0x1ea   : > { %v3254_v19 = vpop.f32.mrf.mxu0  ;;  %v6858_v31 = vpop.f32.mrf.mxu1 }
 0x1ec   : > { %v6848_v29 = vpop.f32.mrf.mxu0 }
 0x1f0   : > { %v3477_v37 = vpop.f32.mrf.mxu1 }
 0x1f2   : > { %v3398_v34 = vpop.f32.mrf.mxu0  ;;  %v6877_v39 = vpop.f32.mrf.mxu1 }
 0x1f3   : > { %v3404_v42 = vadd.f32 %v3398_v34, %v3329_v35 }
 0x1f4   : > { %v6867_v38 = vpop.f32.mrf.mxu0  ;;  %v3480_v40 = vpop.f32.mrf.mxu1 }
 0x1f5   : > { %v3483_v44 = vadd.f32 %v3477_v37, %v3404_v42 }
 0x1f6   : > { %v3401_v32 = vpop.f32.mrf.mxu0  ;;  %v6878_v43 = vpop.f32.mrf.mxu1 }
 0x1f8   : > { %v6868_v41 = vpop.f32.mrf.mxu0 }
 0x1fc   : > { %v3639_v47 = vpop.f32.mrf.mxu1 }
 0x1fe   : > { %v3549_v45 = vpop.f32.mrf.mxu0  ;;  %v6897_v49 = vpop.f32.mrf.mxu1 }
 0x1ff   : > { %v3555_v46 = vadd.f32 %v3549_v45, %v3483_v44 }
 0x200   : > { %v6887_v48 = vpop.f32.mrf.mxu0  ;;  %v3642_v51 = vpop.f32.mrf.mxu1 }
 0x201   : > { %6009 = vst [vmem:[%s8142_s17 + $0x20] sm:$0xff] %v3555_v46 }
 0x202   : > { %v3552_v50 = vpop.f32.mrf.mxu0  ;;  %v6898_v53 = vpop.f32.mrf.mxu1 }
 0x204   : > { %v6888_v52 = vpop.f32.mrf.mxu0 }
 0x208   : > { %v3775_v55 = vpop.f32.mrf.mxu1 }
 0x20a   : > { %v3704_v54 = vpop.f32.mrf.mxu0  ;;  %v6917_v57 = vpop.f32.mrf.mxu1 }
 0x20b   : > { %v3705_v61 = vadd.f32 %v3704_v54, %v3639_v47 }
 0x20c   : > { %v6907_v56 = vpop.f32.mrf.mxu0  ;;  %v3778_v59 = vpop.f32.mrf.mxu1 }
 0x20d   : > { %v3781_v8 = vadd.f32 %v3775_v55, %v3705_v61 }
 0x20e   : > { %v3707_v58 = vpop.f32.mrf.mxu0  ;;  %v6918_v62 = vpop.f32.mrf.mxu1 }
 0x210   : > { %v6908_v60 = vpop.f32.mrf.mxu0 }
 0x214   : > { %v3929_v1 = vpop.f32.mrf.mxu1 }
 0x216   : > { %v3850_v63 = vpop.f32.mrf.mxu0  ;;  %v6937_v3 = vpop.f32.mrf.mxu1 }
 0x217   : > { %v3856_v10 = vadd.f32 %v3850_v63, %v3781_v8 }
 0x218   : > { %v6927_v2 = vpop.f32.mrf.mxu0  ;;  %v3932_v5 = vpop.f32.mrf.mxu1 }
 0x219   : > { %v3935_v17 = vadd.f32 %v3929_v1, %v3856_v10 }
 0x21a   : > { %v3853_v4 = vpop.f32.mrf.mxu0  ;;  %v6938_v7 = vpop.f32.mrf.mxu1 }
 0x21c   : > { %v6928_v6 = vpop.f32.mrf.mxu0 }
 0x220   : > { %v4076_v11 = vpop.f32.mrf.mxu1 }
 0x222   : > { %v4001_v9 = vpop.f32.mrf.mxu0  ;;  %v6957_v15 = vpop.f32.mrf.mxu1 }
 0x223   : > { %v4007_v20 = vadd.f32 %v4001_v9, %v3935_v17 }
 0x224   : > { %v6947_v13 = vpop.f32.mrf.mxu0  ;;  %v4079_v14 = vpop.f32.mrf.mxu1 }
 0x225   : > { %v4082_v23 = vadd.f32 %v4076_v11, %v4007_v20 }
 0x226   : > { %v4004_v16 = vpop.f32.mrf.mxu0  ;;  %v6958_v21 = vpop.f32.mrf.mxu1 }
 0x228   : > { %v6948_v18 = vpop.f32.mrf.mxu0 }
 0x22c   : > { %v4222_v12 = vpop.f32.mrf.mxu1 }
 0x22e   : > { %v4155_v24 = vpop.f32.mrf.mxu0  ;;  %v6977_v0 = vpop.f32.mrf.mxu1 }
 0x22f   : > { %v4161_v25 = vadd.f32 %v4155_v24, %v4082_v23 }
 0x230   : > { %v6967_v26 = vpop.f32.mrf.mxu0  ;;  %v4225_v22 = vpop.f32.mrf.mxu1 }
 0x231   : > { %v4228_v27 = vadd.f32 %v4222_v12, %v4161_v25 }
 0x232   : > { %v4158_v19 = vpop.f32.mrf.mxu0  ;;  %v6978_v29 = vpop.f32.mrf.mxu1 }
 0x233   : > { %6054 = vst [vmem:[%s8142_s17 + $0x28] sm:$0xff] %v4228_v27 }
 0x234   : > { %v6968_v28 = vpop.f32.mrf.mxu0 }
 0x238   : > { %v4377_v31 = vpop.f32.mrf.mxu1 }
 0x23a   : > { %v4312_v30 = vpop.f32.mrf.mxu0  ;;  %v6997_v34 = vpop.f32.mrf.mxu1 }
 0x23b   : > { %v4378_v51 = vadd.f32 %v4377_v31, %v4312_v30 }
 0x23c   : > { %v6987_v33 = vpop.f32.mrf.mxu0  ;;  %v4380_v37 = vpop.f32.mrf.mxu1 }
 0x23e   : > { %v4315_v36 = vpop.f32.mrf.mxu0  ;;  %v6998_v39 = vpop.f32.mrf.mxu1 }
 0x240   : > { %v6988_v38 = vpop.f32.mrf.mxu0 }
 0x244   : > { %v4523_v35 = vpop.f32.mrf.mxu1 }
 0x246   : > { %v4448_v32 = vpop.f32.mrf.mxu0  ;;  %v7017_v41 = vpop.f32.mrf.mxu1 }
 0x247   : > { %v4454_v54 = vadd.f32 %v4448_v32, %v4378_v51 }
 0x248   : > { %v7007_v40 = vpop.f32.mrf.mxu0  ;;  %v4526_v43 = vpop.f32.mrf.mxu1 }
 0x249   : > { %v4529_v56 = vadd.f32 %v4523_v35, %v4454_v54  ;;  %v8460_v43 = vld [vmem:[%s8142_s17 + $0x8] sm:$0xff] }
 0x24a   : > { %v4451_v42 = vpop.f32.mrf.mxu0  ;;  %v7018_v45 = vpop.f32.mrf.mxu1 }
 0x24b   : > { %v8466_v45 = vld [vmem:[%s8142_s17 + $0x10] sm:$0xff] }
 0x24c   : > { %v7008_v44 = vpop.f32.mrf.mxu0 }
 0x24d   : > { %v8463_v44 = vld [vmem:[%s8142_s17] sm:$0xff] }
 0x250   : > { %v4669_v47 = vpop.f32.mrf.mxu1 }
 0x252   : > { %v4602_v46 = vpop.f32.mrf.mxu0  ;;  %v7037_v49 = vpop.f32.mrf.mxu1 }
 0x253   : > { %v4608_v58 = vadd.f32 %v4602_v46, %v4529_v56  ;;  %v8473_v49 = vld [vmem:[%s8142_s17 + $0x18] sm:$0xff] }
 0x254   : > { %v7027_v48 = vpop.f32.mrf.mxu0  ;;  %v4672_v52 = vpop.f32.mrf.mxu1 }
 0x255   : > { %v4675_v1 = vadd.f32 %v4669_v47, %v4608_v58  ;;  %v5577_v47 = vsel %vm5575_vm3, %v8460_v43, 0.0  ;;  %v5576_v52 = vsel %vm5575_vm3, %v8463_v44, 0.0 }
 0x256   : > { %v4605_v50 = vpop.f32.mrf.mxu0  ;;  %v7038_v55 = vpop.f32.mrf.mxu1  ;;  %v5578_v56 = vadd.f32 %v5577_v47, %v5576_v52 }
 0x257   : > { %v5571_v55 = vld [vmem:[%s8142_s17 + $0x20] sm:$0xff] }
 0x258   : > { %v7028_v53 = vpop.f32.mrf.mxu0 }
 0x259   : > { %v5579_v53 = vsel %vm5575_vm3, %v8466_v45, 0.0 }
 0x25c   : > { %v4818_v59 = vpop.f32.mrf.mxu1 }
 0x25e   : > { %v4737_v57 = vpop.f32.mrf.mxu0  ;;  %v7057_v62 = vpop.f32.mrf.mxu1 }
 0x25f   : > { %v4743_v4 = vadd.f32 %v4737_v57, %v4675_v1  ;;  %v5572_v62 = vld [vmem:[%s8142_s17 + $0x28] sm:$0xff] }
 0x260   : > { %v7047_v60 = vpop.f32.mrf.mxu0  ;;  %v4821_v2 = vpop.f32.mrf.mxu1 }
 0x261   : > { %v4824_v6 = vadd.f32 %v4818_v59, %v4743_v4  ;;  %v5581_v59 = vsel %vm5575_vm3, %v8473_v49, 0.0 }
 0x262   : > { %v4740_v63 = vpop.f32.mrf.mxu0  ;;  %v7058_v5 = vpop.f32.mrf.mxu1 }
 0x263   : > { %v5580_v63 = vadd.f32 %v5579_v53, %v5578_v56 }
 0x264   : > { %v7048_v3 = vpop.f32.mrf.mxu0 }
 0x265   : > { %v5583_v3 = vsel %vm5575_vm3, %v5571_v55, 0.0 }
 0x268   : > { %v4980_v8 = vpop.f32.mrf.mxu1 }
 0x26a   : > { %v4890_v61 = vpop.f32.mrf.mxu0  ;;  %v7077_v10 = vpop.f32.mrf.mxu1 }
 0x26b   : > { %v4896_v7 = vadd.f32 %v4890_v61, %v4824_v6 }
 0x26c   : > { %v7067_v9 = vpop.f32.mrf.mxu0  ;;  %v4983_v13 = vpop.f32.mrf.mxu1 }
 0x26d   : > { %6098 = vst [vmem:[%s8142_s17 + $0x30] sm:$0xff] %v4896_v7 }
 0x26e   : > { %v4893_v11 = vpop.f32.mrf.mxu0  ;;  %v7078_v16 = vpop.f32.mrf.mxu1 }
 0x270   : > { %v7068_v15 = vpop.f32.mrf.mxu0 }
 0x274   : > { %v5111_v14 = vpop.f32.mrf.mxu1  ;;  %v5573_v2 = vld [vmem:[%s8142_s17 + $0x30] sm:$0xff] }
 0x276   : > { %v5045_v17 = vpop.f32.mrf.mxu0  ;;  %v7097_v20 = vpop.f32.mrf.mxu1 }
 0x277   : > { %v5046_v29 = vadd.f32 %v5045_v17, %v4980_v8 }
 0x278   : > { %v7087_v18 = vpop.f32.mrf.mxu0  ;;  %v5114_v23 = vpop.f32.mrf.mxu1 }
 0x279   : > { %v5117_v31 = vadd.f32 %v5111_v14, %v5046_v29 }
 0x27a   : > { %v5048_v21 = vpop.f32.mrf.mxu0  ;;  %v7098_v25 = vpop.f32.mrf.mxu1 }
 0x27c   : > { %v7088_v24 = vpop.f32.mrf.mxu0 }
 0x280   : > { %v5260_v26 = vpop.f32.mrf.mxu1 }
 0x282   : > { %v5179_v12 = vpop.f32.mrf.mxu0  ;;  %v7117_v0 = vpop.f32.mrf.mxu1 }
 0x283   : > { %v5185_v34 = vadd.f32 %v5179_v12, %v5117_v31 }
 0x284   : > { %v7107_v27 = vpop.f32.mrf.mxu0  ;;  %v5263_v22 = vpop.f32.mrf.mxu1 }
 0x285   : > { %v5266_v32 = vadd.f32 %v5260_v26, %v5185_v34 }
 0x286   : > { %v5182_v19 = vpop.f32.mrf.mxu0  ;;  %v7118_v30 = vpop.f32.mrf.mxu1 }
 0x288   : > { %v7108_v28 = vpop.f32.mrf.mxu0 }
 0x28c   : > { %v5407_v36 = vpop.f32.mrf.mxu1 }
 0x28e   : > { %v5332_v33 = vpop.f32.mrf.mxu0  ;;  %v7137_v38 = vpop.f32.mrf.mxu1 }
 0x28f   : > { %v5338_v41 = vadd.f32 %v5332_v33, %v5266_v32 }
 0x290   : > { %v7127_v37 = vpop.f32.mrf.mxu0  ;;  %v5410_v35 = vpop.f32.mrf.mxu1 }
 0x291   : > { %v5413_v46 = vadd.f32 %v5407_v36, %v5338_v41 }
 0x292   : > { %v5335_v39 = vpop.f32.mrf.mxu0  ;;  %v7138_v42 = vpop.f32.mrf.mxu1 }
 0x294   : > { %v7128_v40 = vpop.f32.mrf.mxu0 }
 0x298   : > { %v5558_v51 = vpop.f32.mrf.mxu1 }
 0x29a   : > { %v5486_v48 = vpop.f32.mrf.mxu0  ;;  %v7157_v58 = vpop.f32.mrf.mxu1 }
 0x29b   : > { %v5492_v50 = vadd.f32 %v5486_v48, %v5413_v46 }
 0x29c   : > { %v7147_v54 = vpop.f32.mrf.mxu0  ;;  %v5561_v1 = vpop.f32.mrf.mxu1 }
 0x29d   : > { %v5564_v57 = vadd.f32 %v5558_v51, %v5492_v50 }
 0x29e   : > { %v5489_v60 = vpop.f32.mrf.mxu0 }
 0x29f   : > { %6142 = vst [vmem:[%s8142_s17 + $0x38] sm:$0xff] %v5564_v57 }
 0x2a0   : > { %v7148_v4 = vpop.f32.mrf.mxu0 }
 0x2a1   : > { %7536 = shalt.err (!%p7533_p0)
}
 0x2a2   : > { %s7537_s5 = scalar_lea.hbm %s8482_s26, 1024  ;;  %s7541_s8 = scalar_lea.hbm %s8577_s2, 2048 }
 0x2a3   : > { %p7538_p1 = scmp.ne.s32.totalorder %s8482_s26, %s7537_s5  ;;  %p7542_p4 = scmp.lt.s32.totalorder %s8482_s26, %s8577_s2 }
 0x2a4   : > { %p7543_p7 = scmp.lt.s32.totalorder %s7541_s8, %s7537_s5 }
 0x2a5   : > { %p7539_p2 = pnand %p7538_p1, %p7686_p5 }
 0x2a6   : > { %p7544_p8 = por %p7543_p7, %p7542_p4 }
 0x2a7   : > { %p7540_p3 = pneg %p7539_p2 }
 0x2a9   : > { %p7545_p6 = pnand %p7544_p8, %p7540_p3 }
 0x2ab   : > { %7548 = shalt.err (!%p7545_p6)
}
 0x2ac   : > { %s7625_s19 = smov 128   ;;  %s7626_s24 = smov 8   ;;  %v5582_v5 = vadd.f32 %v5581_v59, %v5580_v63  ;;  %v7158_v6 = vpop.f32.mrf.mxu1  ;;  %v5585_v61 = vsel %vm5575_vm3, %v5572_v62, 0.0  ;;  %v5587_v8 = vsel %vm5575_vm3, %v5573_v2, 0.0  ;;  %v5574_v10 = vld [vmem:[%s8142_s17 + $0x38] sm:$0xff]  ;;  %vm5637_vm4 = vcmask 1040384  }
 0x2ad   : > { %7164 = dma.vmem_to_hbm [thread:$0]  (%p7686_p5), %s8484_s20, 1024, %s8482_s26, %s5642_s27, %s7625_s19, %s7625_s19, %s7626_s24   ;;  %v5589_v13 = vsel %vm5575_vm3, %v5574_v10, 0.0  ;;  %vm5639_vm5 = vcmask 517120  }
 0x2ae   : > { %v5584_v7 = vadd.f32 %v5583_v3, %v5582_v5  ;;  %s5786_s17 = sshll.u32 %s8122_s10, 1  ;;  %s6147_s20 = sshll.u32 %s7669_s16, 5 }
 0x2af   : > { %s189_s25 = scalar_lea.vmem [#allocation6], %s5786_s17  ;;  %s8539_s29 = scalar_lea.hbm %s8578_s3, %s6147_s20 }
 0x2b0   : > { %v5586_v9 = vadd.f32 %v5585_v61, %v5584_v7  ;;  %s5676_s26 = sshll.u32 %s189_s25, 4  ;;  %s5647_s30 = scalar_lea.sflag [#allocation7], %s8122_s10  ;;  %s5677_s26 = int_to_ptr.vmem [resolvable:$true] %s5676_s26 }
 0x2b1   : > { %s7549_s4 = scalar_lea.vmem %s5677_s26, 32  ;;  %s7627_s16 = smov [#allocation6]  }
 0x2b2   : > { %v5588_v11 = vadd.f32 %v5587_v8, %v5586_v9  ;;  %p7550_p9 = scmp.ne.s32.totalorder %s5677_s26, %s7549_s4  ;;  %s7553_s5 = sshll.u32 %s7627_s16, 4  ;;  %s7554_s5 = int_to_ptr.vmem [resolvable:$false] %s7553_s5 }
 0x2b3   : > { %s7555_s6 = scalar_lea.vmem %s7554_s5, 64  ;;  %p7556_p12 = scmp.lt.s32.totalorder %s5677_s26, %s7554_s5 }
 0x2b4   : > { %v5590_v15 = vadd.f32 %v5589_v13, %v5588_v11  ;;  %p7551_p10 = pnand %p7550_p9, %p7686_p5  ;;  %p7557_p13 = scmp.lt.s32.totalorder %s7555_s6, %s7549_s4 }
 0x2b6   : > { %v5591_v16 = vsel %vm5575_vm3, %v5590_v15, 0.0  ;;  %p7552_p11 = pneg %p7551_p10  ;;  %p7558_p0 = por %p7557_p13, %p7556_p12 }
 0x2b7   : > { %v5592_v17 = vrot.slane %v5591_v16, 4 }
 0x2b8   : > { %p7559_p1 = pnand %p7558_p0, %p7552_p11 }
 0x2b9   : > { %v5593_v14 = vadd.f32 %v5592_v17, %v5591_v16 }
 0x2bb   : > { %v5594_v18 = vrot.slane %v5593_v14, 2 }
 0x2bd   : > { %v5595_v20 = vadd.f32 %v5594_v18, %v5593_v14 }
 0x2bf   : > { %v5596_v21 = vrot.slane %v5595_v20, 1 }
 0x2c1   : > { %v5597_v23 = vadd.f32 %v5596_v21, %v5595_v20 }
 0x2c3   : > { %v5598_v24 = vmul.f32 0.015625, %v5597_v23 }
 0x2c5   : > { %v5599_v25 = vsub.f32 %v8463_v44, %v5598_v24  ;;  %v5600_v12 = vsub.f32 %v8460_v43, %v5598_v24  ;;  %v5601_v26 = vsub.f32 %v8466_v45, %v5598_v24  ;;  %v5602_v27 = vsub.f32 %v8473_v49, %v5598_v24 }
 0x2c6   : > { %v5603_v0 = vsub.f32 %v5571_v55, %v5598_v24  ;;  %v5604_v29 = vsub.f32 %v5572_v62, %v5598_v24  ;;  %v5605_v36 = vsub.f32 %v5573_v2, %v5598_v24  ;;  %v5606_v32 = vsub.f32 %v5574_v10, %v5598_v24 }
 0x2c7   : > { %v5607_v19 = vmul.f32 %v5599_v25, %v5599_v25  ;;  %v5608_v22 = vmul.f32 %v5600_v12, %v5600_v12  ;;  %v5609_v28 = vmul.f32 %v5601_v26, %v5601_v26  ;;  %v5610_v30 = vmul.f32 %v5602_v27, %v5602_v27 }
 0x2c8   : > { %v5611_v37 = vmul.f32 %v5603_v0, %v5603_v0  ;;  %v5612_v35 = vmul.f32 %v5604_v29, %v5604_v29  ;;  %v5613_v42 = vmul.f32 %v5605_v36, %v5605_v36  ;;  %v5614_v45 = vmul.f32 %v5606_v32, %v5606_v32 }
 0x2c9   : > { %v5615_v31 = vsel %vm5575_vm3, %v5607_v19, 0.0  ;;  %v5616_v33 = vsel %vm5575_vm3, %v5608_v22, 0.0  ;;  %v5618_v38 = vsel %vm5575_vm3, %v5609_v28, 0.0  ;;  %v5620_v40 = vsel %vm5575_vm3, %v5610_v30, 0.0 }
 0x2ca   : > { %v5617_v34 = vadd.f32 %v5616_v33, %v5615_v31  ;;  %v5622_v43 = vsel %vm5575_vm3, %v5611_v37, 0.0  ;;  %v5624_v46 = vsel %vm5575_vm3, %v5612_v35, 0.0  ;;  %v5626_v48 = vsel %vm5575_vm3, %v5613_v42, 0.0 }
 0x2cb   : > { %v5628_v50 = vsel %vm5575_vm3, %v5614_v45, 0.0 }
 0x2cc   : > { %v5619_v39 = vadd.f32 %v5618_v38, %v5617_v34 }
 0x2ce   : > { %v5621_v41 = vadd.f32 %v5620_v40, %v5619_v39 }
 0x2d0   : > { %v5623_v44 = vadd.f32 %v5622_v43, %v5621_v41 }
 0x2d2   : > { %v5625_v47 = vadd.f32 %v5624_v46, %v5623_v44 }
 0x2d4   : > { %v5627_v49 = vadd.f32 %v5626_v48, %v5625_v47 }
 0x2d6   : > { %v5629_v51 = vadd.f32 %v5628_v50, %v5627_v49 }
 0x2d8   : > { %v5630_v52 = vsel %vm5575_vm3, %v5629_v51, 0.0 }
 0x2d9   : > { %v5631_v53 = vrot.slane %v5630_v52, 4 }
 0x2db   : > { %v5632_v54 = vadd.f32 %v5631_v53, %v5630_v52 }
 0x2dd   : > { %v5633_v55 = vrot.slane %v5632_v54, 2 }
 0x2df   : > { %v5634_v56 = vadd.f32 %v5633_v55, %v5632_v54 }
 0x2e1   : > { %v5635_v57 = vrot.slane %v5634_v56, 1 }
 0x2e3   : > { %v5636_v58 = vadd.f32 %v5635_v57, %v5634_v56 }
 0x2e5   : > { %v5638_v59 = vsel %vm5637_vm4, %v5597_v23, %v5636_v58 }
 0x2e6   : > { %5640 = vst.msk [vmem:[%s189_s25] sm:$0x3] %vm5639_vm5, %v5638_v59 }
 0x2e7   : > { %7562 = shalt.err (!%p7559_p1)
}
 0x2e8   : > { %s7563_s7 = scalar_lea.hbm %s8539_s29, 32  ;;  %s7567_s9 = scalar_lea.hbm %s8578_s3, 64 }
 0x2e9   : > { %p7564_p2 = scmp.ne.s32.totalorder %s8539_s29, %s7563_s7  ;;  %p7568_p7 = scmp.lt.s32.totalorder %s8539_s29, %s8578_s3 }
 0x2ea   : > { %p7569_p8 = scmp.lt.s32.totalorder %s7567_s9, %s7563_s7 }
 0x2eb   : > { %p7565_p3 = pnand %p7564_p2, %p7686_p5 }
 0x2ec   : > { %p7570_p6 = por %p7569_p8, %p7568_p7 }
 0x2ed   : > { %p7566_p4 = pneg %p7565_p3 }
 0x2ef   : > { %p7571_p9 = pnand %p7570_p6, %p7566_p4 }
 0x2f1   : > { %7574 = shalt.err (!%p7571_p9)
}
 0x2f2   : > { %7165 = dma.vmem_to_hbm [thread:$0]  (%p7686_p5), %s5677_s26, 32, %s8539_s29, %s5647_s30  }
 0x2f3 PF: > { %p7181_p10 = scmp.ge.s32.totalorder %s7617_s15, 2  ;;  %s5688_s24 = sand.u32 1, %s7605_s12  }
 0x2f4   : > { %p8582_p11 = scmp.ne.s32.totalorder %s8580_s23, 0  ;;  %s5689_s17 = scalar_lea.sflag [#allocation4], %s5688_s24 }
 0x2f6   : > { %p7173_p12 = pnand %p7181_p10, %p8582_p11 }
 0x2f8   : > { %p7174_p13 = pneg %p7173_p12 }
 0x2fa   : > { %7596 = dma.done.wait (%p7174_p13), %s5689_s17, 1024  }
 0x2fb   : > { %7598 = vsyncadd (%p7174_p13), %s5689_s17, 4294966272  ;;  %s5698_s20 = scalar_lea.sflag [#allocation7], %s5688_s24 }
 0x2fc   : > { %7600 = dma.done.wait (%p7174_p13), %s5698_s20, 32  }
 0x2fd   : > { %7602 = vsyncadd (%p7174_p13), %s5698_s20, 4294967264  ;;  %p18_p5 = scmp.ge.s32.totalorder %s7673_s18, 4   ;;  %s8583_s12 = smov %s7609_s13 }
 0x2fe   : > { %s8584_s13 = smov %s7613_s14  ;;  %s8585_s14 = smov %s7684_s21 }
 0x2ff   : > { %s8586_s15 = smov %s7673_s18  ;;  %20 = sbr.rel (!%p18_p5) target bundleno = 6 (0x6), region = 100 }
 0x304   :  { %5703 = vsyncpa [#allocation3], 1 }
 0x305   :  { %5705 = vsyncpa [#allocation3 + $0x1], 1 }
 0x306   :  { %5706 = vsyncpa [#allocation4], 1 }
 0x307   :  { %5708 = vsyncpa [#allocation4 + $0x1], 1 }
 0x308   :  { %5709 = vsyncpa [#allocation7], 1 }
 0x309   :  { %5711 = vsyncpa [#allocation7 + $0x1], 1 }

</bundles_post_ra>
